<compile_context>
chip_gen: v6e
topology: v6e:2x2x1
jax: 0.10.0
libtpu: 0.0.40
codegen_flags: <defaults>
</compile_context>

<pallas_src>
import functools

import jax
import jax.numpy as jnp
from jax.experimental import pallas as pl
from jax.experimental.pallas import tpu as pltpu

H = 1024  # hidden width of the head (fixed by the module)


def _round_up(x, m):
    return pl.cdiv(x, m) * m


def _classbox_kernel(x_ref, w1_ref, t1_ref, w2_ref, t2_ref, wh_ref, bh_ref,
                     logits_ref, probs_ref, deltas_ref):
    cpad = logits_ref.shape[-1]   # lane-padded class width (multiple of 128)

    # bf16 cast of the streamed x tile (free filler under the MXU)
    x = x_ref[...].astype(jnp.bfloat16)

    # conv1 (kernel == pool_size) -> matmul; BN1 scale already folded into w1
    h1 = jnp.dot(x, w1_ref[...], preferred_element_type=jnp.float32)
    h1 = jnp.maximum(h1 + t1_ref[...], 0.0).astype(jnp.bfloat16)

    # conv2 (1x1) -> matmul; BN2 scale already folded into w2
    h2 = jnp.dot(h1, w2_ref[...], preferred_element_type=jnp.float32)
    h2 = jnp.maximum(h2 + t2_ref[...], 0.0).astype(jnp.bfloat16)

    # fused classifier + bbox head: one lane-dense matmul [tm, cpad + dpad]
    head = jnp.dot(h2, wh_ref[...], preferred_element_type=jnp.float32) + bh_ref[...]
    logits = head[:, :cpad]          # padded class cols carry -1e30 bias
    deltas = head[:, cpad:]

    logits_ref[...] = logits
    deltas_ref[...] = deltas

    # softmax over classes (padded columns contribute exp(-1e30 - m) == 0)
    m = jnp.max(logits, axis=-1, keepdims=True)
    e = jnp.exp(logits - m)
    denom = jnp.sum(e, axis=-1, keepdims=True)
    probs_ref[...] = e * pl.reciprocal(denom, approx=True)   # EUP slot


def prepare_class_box_params(params, *, class_nums, eps=1e-3):
    """One-time fold/transpose/pad/cast of the head weights.

    Call this ONCE (outside the per-step jit) and reuse the result for every
    forward call; it replaces the per-call transpose + bf16 cast HBM pass.
    """
    conv1_w = params["conv1_w"]                       # [H, C, ph, pw]
    c, ph, pw = conv1_w.shape[1:]
    k1 = c * ph * pw

    s1 = params["bn1_gamma"] / jnp.sqrt(params["bn1_var"] + eps)
    t1 = (params["conv1_b"] - params["bn1_mean"]) * s1 + params["bn1_beta"]
    w1 = (conv1_w.reshape(H, k1).T * s1[None, :]).astype(jnp.bfloat16)   # [K1, H]

    s2 = params["bn2_gamma"] / jnp.sqrt(params["bn2_var"] + eps)
    t2 = (params["conv2_b"] - params["bn2_mean"]) * s2 + params["bn2_beta"]
    w2 = (params["conv2_w"].reshape(H, H).T * s2[None, :]).astype(jnp.bfloat16)

    cpad = _round_up(class_nums, 128)          # lane-padded class width
    dpad = _round_up(4 * class_nums, 128)      # lane-padded bbox width

    # Fused head weight [H, cpad + dpad]: cols [0, class_nums) = classifier,
    # cols [cpad, cpad + 4*class_nums) = bbox regressor, rest zero.
    wh = jnp.zeros((H, cpad + dpad), jnp.float32)
    wh = wh.at[:, :class_nums].set(params["cls_w"].T)
    wh = wh.at[:, cpad:cpad + 4 * class_nums].set(params["box_w"].T)
    wh = wh.astype(jnp.bfloat16)

    bh = jnp.zeros((cpad + dpad,), jnp.float32)
    bh = bh.at[:class_nums].set(params["cls_b"])
    bh = bh.at[class_nums:cpad].set(-1e30)     # kill padded class cols in softmax
    bh = bh.at[cpad:cpad + 4 * class_nums].set(params["box_b"])

    return {
        "w1": w1,
        "t1": t1.reshape(1, H).astype(jnp.float32),
        "w2": w2,
        "t2": t2.reshape(1, H).astype(jnp.float32),
        "wh": wh,
        "bh": bh.reshape(1, cpad + dpad).astype(jnp.float32),
    }


def class_box_net_forward(x_pooled, prepared, *, class_nums, tm=256):
    """x_pooled: [M, indepth, ph, pw] float32 (NCHW ROI-pooled features).

    prepared: output of prepare_class_box_params (cached, reused every call).
    tm: row tile; 256 fills MXU rows on v6e/v7x (raise toward 384-512 on v5e
    for large-M workloads, where 128 MiB VMEM gives headroom).
    """
    M = x_pooled.shape[0]
    k1 = prepared["w1"].shape[0]
    cpad = _round_up(class_nums, 128)
    dpad = _round_up(4 * class_nums, 128)
    assert prepared["wh"].shape == (H, cpad + dpad)

    # Row tile: multiple of 8, clamped to M; prefer >=2 grid steps so both of
    # v7x's TensorCores get work under dimension_semantics=("parallel",).
    m8 = _round_up(max(M, 1), 8)
    tm = max(8, min(tm, m8))
    if pl.cdiv(m8, tm) < 2 and tm > 8:
        tm = _round_up(tm // 2, 8)
    m_pad = _round_up(max(M, 1), tm)

    # Rows padded only (zeros); NO dtype cast / lane padding here -- the bf16
    # cast happens in-kernel on the streamed tile (saves a full XLA HBM pass).
    x_flat = x_pooled.reshape(M, k1)
    if m_pad != M:
        x_flat = jnp.pad(x_flat, ((0, m_pad - M), (0, 0)))

    grid = (m_pad // tm,)

    row_spec = lambda w: pl.BlockSpec((tm, w), lambda i: (i, 0))
    # Grid-invariant operands: constant index_map + single buffer (fetched once).
    const_spec = lambda r, c: pl.BlockSpec((r, c), lambda i: (0, 0),
                                           pipeline_mode=pl.Buffered(1))

    flops = 2 * m_pad * H * (k1 + H + cpad + dpad)
    bytes_accessed = (m_pad * k1 * 4                               # x (f32)
                      + (k1 * H + H * H + H * (cpad + dpad)) * 2   # bf16 weights
                      + (2 * H + cpad + dpad) * 4                  # shifts / bias
                      + m_pad * (2 * cpad + dpad) * 4)             # outputs (f32)

    logits_p, probs_p, deltas_p = pl.pallas_call(
        _classbox_kernel,
        out_shape=(
            jax.ShapeDtypeStruct((m_pad, cpad), jnp.float32),
            jax.ShapeDtypeStruct((m_pad, cpad), jnp.float32),
            jax.ShapeDtypeStruct((m_pad, dpad), jnp.float32),
        ),
        grid_spec=pltpu.PrefetchScalarGridSpec(
            num_scalar_prefetch=0,
            grid=grid,
            in_specs=[
                row_spec(k1),                    # x tile (f32, cast in-kernel)
                const_spec(k1, H),               # w1 (bf16, BN1 scale folded)
                const_spec(1, H),                # t1 (f32 shift)
                const_spec(H, H),                # w2 (bf16, BN2 scale folded)
                const_spec(1, H),                # t2 (f32 shift)
                const_spec(H, cpad + dpad),      # fused head weights (bf16)
                const_spec(1, cpad + dpad),      # fused head bias (f32)
            ],
            out_specs=[
                row_spec(cpad),                  # logits (lane-dense, padded)
                row_spec(cpad),                  # probs  (lane-dense, padded)
                row_spec(dpad),                  # deltas (lane-dense, padded)
            ],
        ),
        compiler_params=pltpu.CompilerParams(
            dimension_semantics=("parallel",),
            vmem_limit_bytes=48 << 20,
        ),
        cost_estimate=pl.CostEstimate(
            flops=flops,
            transcendentals=m_pad * cpad,
            bytes_accessed=bytes_accessed,
        ),
    )(x_flat, prepared["w1"], prepared["t1"], prepared["w2"], prepared["t2"],
      prepared["wh"], prepared["bh"])

    # strip row/lane padding; torch: bbox_deltas.view(M, -1, 4)
    logits = logits_p[:M, :class_nums]
    probs = probs_p[:M, :class_nums]
    deltas = deltas_p[:M, :4 * class_nums].reshape(M, class_nums, 4)
    return [logits, probs, deltas]


def _reference_forward(x_pooled, params, *, class_nums, eps=1e-3):
    M, C, ph, pw = x_pooled.shape
    x = x_pooled.reshape(M, C * ph * pw)
    h1 = x @ params["conv1_w"].reshape(H, -1).T + params["conv1_b"]
    h1 = (h1 - params["bn1_mean"]) / jnp.sqrt(params["bn1_var"] + eps) \
         * params["bn1_gamma"] + params["bn1_beta"]
    h1 = jnp.maximum(h1, 0.0)
    h2 = h1 @ params["conv2_w"].reshape(H, H).T + params["conv2_b"]
    h2 = (h2 - params["bn2_mean"]) / jnp.sqrt(params["bn2_var"] + eps) \
         * params["bn2_gamma"] + params["bn2_beta"]
    h2 = jnp.maximum(h2, 0.0)
    logits = h2 @ params["cls_w"].T + params["cls_b"]
    probs = jax.nn.softmax(logits, axis=1)
    deltas = (h2 @ params["box_w"].T + params["box_b"]).reshape(M, class_nums, 4)
    return [logits, probs, deltas]


if __name__ == "__main__":
    # Small config consistent with the module:
    batch, N = 2, 8                      # -> M = batch*N = 16 ROIs
    indepth = 4
    pool_size = (4, 4)
    class_nums = 8
    image_shape = (64, 64)               # unused by the head itself
    fmap_stride = (16,)                  # unused (ROI align is external)
    level_nums = 1
    M = batch * N

    key = jax.random.PRNGKey(0)
    ks = jax.random.split(key, 16)

    params = {
        "conv1_w": 0.02 * jax.random.normal(ks[0], (H, indepth, *pool_size), jnp.float32),
        "conv1_b": 0.01 * jax.random.normal(ks[1], (H,), jnp.float32),
        "bn1_gamma": 1.0 + 0.1 * jax.random.normal(ks[2], (H,), jnp.float32),
        "bn1_beta": 0.1 * jax.random.normal(ks[3], (H,), jnp.float32),
        "bn1_mean": 0.05 * jax.random.normal(ks[4], (H,), jnp.float32),
        "bn1_var": jax.random.uniform(ks[5], (H,), jnp.float32, 0.5, 1.5),
        "conv2_w": 0.02 * jax.random.normal(ks[6], (H, H, 1, 1), jnp.float32),
        "conv2_b": 0.01 * jax.random.normal(ks[7], (H,), jnp.float32),
        "bn2_gamma": 1.0 + 0.1 * jax.random.normal(ks[8], (H,), jnp.float32),
        "bn2_beta": 0.1 * jax.random.normal(ks[9], (H,), jnp.float32),
        "bn2_mean": 0.05 * jax.random.normal(ks[10], (H,), jnp.float32),
        "bn2_var": jax.random.uniform(ks[11], (H,), jnp.float32, 0.5, 1.5),
        "cls_w": 0.02 * jax.random.normal(ks[12], (class_nums, H), jnp.float32),
        "cls_b": 0.01 * jax.random.normal(ks[13], (class_nums,), jnp.float32),
        "box_w": 0.02 * jax.random.normal(ks[14], (class_nums * 4, H), jnp.float32),
        "box_b": jnp.zeros((class_nums * 4,), jnp.float32),
    }

    kx, kr = jax.random.split(jax.random.PRNGKey(1))
    # ROI-pooled features entering the head (output of RoIAlign): [M, C, ph, pw]
    x_pooled = jax.random.normal(kx, (M, indepth, *pool_size), jnp.float32)
    # rois kept for interface fidelity; consumed only by the (external) ROI align.
    rois = jax.random.uniform(kr, (batch, N, 4), jnp.float32)  # noqa: F841

    # One-time weight preparation (folded BN, transposed, padded, bf16) -- cached.
    prepared = prepare_class_box_params(params, class_nums=class_nums)
    prepared = jax.block_until_ready(prepared)

    fwd = jax.jit(functools.partial(class_box_net_forward, class_nums=class_nums))
    class_logits, class_probs, bbox_deltas = fwd(x_pooled, prepared)
    jax.block_until_ready((class_logits, class_probs, bbox_deltas))

    ref_logits, ref_probs, ref_deltas = _reference_forward(
        x_pooled, params, class_nums=class_nums)

    assert class_logits.shape == (M, class_nums)
    assert class_probs.shape == (M, class_nums)
    assert bbox_deltas.shape == (M, class_nums, 4)
    # bf16 matmul operands (f32 accumulation) + folded BN scales + approx
    # reciprocal in the softmax vs the pure-f32 reference -> loosened tolerances.
    assert jnp.allclose(class_logits, ref_logits, atol=1e-2, rtol=2e-2)
    assert jnp.allclose(class_probs, ref_probs, atol=1e-2, rtol=2e-2)
    assert jnp.allclose(bbox_deltas, ref_deltas, atol=1e-2, rtol=2e-2)
    assert bool(jnp.all(jnp.isfinite(class_probs)))

    print("KERNEL_OK")
</pallas_src>

<mosaic_0001>
module attributes {stable_mosaic.version = 11 : i64} {
  func.func @_classbox_kernel(%arg0: i32, %arg1: memref<8x64xf32, #tpu.memory_space<vmem>>, %arg2: memref<64x1024xbf16, #tpu.memory_space<vmem>>, %arg3: memref<1x1024xf32, #tpu.memory_space<vmem>>, %arg4: memref<1024x1024xbf16, #tpu.memory_space<vmem>>, %arg5: memref<1x1024xf32, #tpu.memory_space<vmem>>, %arg6: memref<1024x256xbf16, #tpu.memory_space<vmem>>, %arg7: memref<1x256xf32, #tpu.memory_space<vmem>>, %arg8: memref<8x128xf32, #tpu.memory_space<vmem>>, %arg9: memref<8x128xf32, #tpu.memory_space<vmem>>, %arg10: memref<8x128xf32, #tpu.memory_space<vmem>>) attributes {dimension_semantics = [#tpu.dimension_semantics<parallel>], iteration_bounds = array<i64: 2>, scalar_prefetch = 0 : i64, scratch_operands = 0 : i64, tpu.core_type = #tpu.core_type<tc>, window_params = [{transform_indices = @transform_0, window_bounds = array<i64: 8, 64>}, {pipeline_mode = #tpu.pipeline_mode<synchronous>, transform_indices = @transform_1, window_bounds = array<i64: 64, 1024>}, {pipeline_mode = #tpu.pipeline_mode<synchronous>, transform_indices = @transform_2, window_bounds = array<i64: 1, 1024>}, {pipeline_mode = #tpu.pipeline_mode<synchronous>, transform_indices = @transform_3, window_bounds = array<i64: 1024, 1024>}, {pipeline_mode = #tpu.pipeline_mode<synchronous>, transform_indices = @transform_4, window_bounds = array<i64: 1, 1024>}, {pipeline_mode = #tpu.pipeline_mode<synchronous>, transform_indices = @transform_5, window_bounds = array<i64: 1024, 256>}, {pipeline_mode = #tpu.pipeline_mode<synchronous>, transform_indices = @transform_6, window_bounds = array<i64: 1, 256>}, {transform_indices = @transform_7, window_bounds = array<i64: 8, 128>}, {transform_indices = @transform_8, window_bounds = array<i64: 8, 128>}, {transform_indices = @transform_9, window_bounds = array<i64: 8, 128>}]} {
    %c0 = arith.constant 0 : index
    %c0_0 = arith.constant 0 : index
    %0 = vector.load %arg1[%c0, %c0_0] : memref<8x64xf32, #tpu.memory_space<vmem>>, vector<8x64xf32>
    %1 = arith.truncf %0 : vector<8x64xf32> to vector<8x64xbf16>
    %c0_1 = arith.constant 0 : index
    %c0_2 = arith.constant 0 : index
    %2 = vector.load %arg2[%c0_1, %c0_2] : memref<64x1024xbf16, #tpu.memory_space<vmem>>, vector<64x1024xbf16>
    %cst = arith.constant dense<0.000000e+00> : vector<8x1024xf32>
    %3 = tpu.matmul %1, %2, %cst {dimension_numbers = #tpu.dot_dimension_numbers<[1], [0], [0], [1], [0, 0, 1, 1], [], []>} : vector<8x64xbf16>, vector<64x1024xbf16>, vector<8x1024xf32> -> vector<8x1024xf32>
    %c0_3 = arith.constant 0 : index
    %c0_4 = arith.constant 0 : index
    %4 = vector.load %arg3[%c0_3, %c0_4] : memref<1x1024xf32, #tpu.memory_space<vmem>>, vector<1x1024xf32>
    %5 = vector.broadcast %4 : vector<1x1024xf32> to vector<8x1024xf32>
    %6 = arith.addf %3, %5 : vector<8x1024xf32>
    %cst_5 = arith.constant 0.000000e+00 : f32
    %7 = vector.broadcast %cst_5 : f32 to vector<8x1024xf32>
    %8 = arith.maximumf %6, %7 : vector<8x1024xf32>
    %9 = arith.truncf %8 : vector<8x1024xf32> to vector<8x1024xbf16>
    %c0_6 = arith.constant 0 : index
    %c0_7 = arith.constant 0 : index
    %10 = vector.load %arg4[%c0_6, %c0_7] : memref<1024x1024xbf16, #tpu.memory_space<vmem>>, vector<1024x1024xbf16>
    %cst_8 = arith.constant dense<0.000000e+00> : vector<8x1024xf32>
    %11 = tpu.matmul %9, %10, %cst_8 {dimension_numbers = #tpu.dot_dimension_numbers<[1], [0], [0], [1], [0, 0, 1, 1], [], []>} : vector<8x1024xbf16>, vector<1024x1024xbf16>, vector<8x1024xf32> -> vector<8x1024xf32>
    %c0_9 = arith.constant 0 : index
    %c0_10 = arith.constant 0 : index
    %12 = vector.load %arg5[%c0_9, %c0_10] : memref<1x1024xf32, #tpu.memory_space<vmem>>, vector<1x1024xf32>
    %13 = vector.broadcast %12 : vector<1x1024xf32> to vector<8x1024xf32>
    %14 = arith.addf %11, %13 : vector<8x1024xf32>
    %cst_11 = arith.constant 0.000000e+00 : f32
    %15 = vector.broadcast %cst_11 : f32 to vector<8x1024xf32>
    %16 = arith.maximumf %14, %15 : vector<8x1024xf32>
    %17 = arith.truncf %16 : vector<8x1024xf32> to vector<8x1024xbf16>
    %c0_12 = arith.constant 0 : index
    %c0_13 = arith.constant 0 : index
    %18 = vector.load %arg6[%c0_12, %c0_13] : memref<1024x256xbf16, #tpu.memory_space<vmem>>, vector<1024x256xbf16>
    %cst_14 = arith.constant dense<0.000000e+00> : vector<8x256xf32>
    %19 = tpu.matmul %17, %18, %cst_14 {dimension_numbers = #tpu.dot_dimension_numbers<[1], [0], [0], [1], [0, 0, 1, 1], [], []>} : vector<8x1024xbf16>, vector<1024x256xbf16>, vector<8x256xf32> -> vector<8x256xf32>
    %c0_15 = arith.constant 0 : index
    %c0_16 = arith.constant 0 : index
    %20 = vector.load %arg7[%c0_15, %c0_16] : memref<1x256xf32, #tpu.memory_space<vmem>>, vector<1x256xf32>
    %21 = vector.broadcast %20 : vector<1x256xf32> to vector<8x256xf32>
    %22 = arith.addf %19, %21 : vector<8x256xf32>
    %23 = vector.extract_strided_slice %22 {offsets = [0, 0], sizes = [8, 128], strides = [1, 1]} : vector<8x256xf32> to vector<8x128xf32>
    %24 = vector.extract_strided_slice %22 {offsets = [0, 128], sizes = [8, 128], strides = [1, 1]} : vector<8x256xf32> to vector<8x128xf32>
    %c0_17 = arith.constant 0 : index
    %c0_18 = arith.constant 0 : index
    %25 = vector.load %arg8[%c0_17, %c0_18] : memref<8x128xf32, #tpu.memory_space<vmem>>, vector<8x128xf32>
    tpu.vector_store %arg8[%c0_17, %c0_18], %23 {strides = array<i32>} : memref<8x128xf32, #tpu.memory_space<vmem>>, vector<8x128xf32>,
    %c0_19 = arith.constant 0 : index
    %c0_20 = arith.constant 0 : index
    %26 = vector.load %arg10[%c0_19, %c0_20] : memref<8x128xf32, #tpu.memory_space<vmem>>, vector<8x128xf32>
    tpu.vector_store %arg10[%c0_19, %c0_20], %24 {strides = array<i32>} : memref<8x128xf32, #tpu.memory_space<vmem>>, vector<8x128xf32>,
    %cst_21 = arith.constant dense<0xFF800000> : vector<8xf32>
    %27 = vector.multi_reduction <maximumf>, %23, %cst_21 [1] : vector<8x128xf32> to vector<8xf32>
    %28 = vector.shape_cast %27 : vector<8xf32> to vector<8x1xf32>
    %29 = vector.broadcast %28 : vector<8x1xf32> to vector<8x128xf32>
    %30 = arith.subf %23, %29 : vector<8x128xf32>
    %31 = math.exp %30 : vector<8x128xf32>
    %cst_22 = arith.constant dense<0.000000e+00> : vector<8xf32>
    %32 = vector.multi_reduction <add>, %31, %cst_22 [1] : vector<8x128xf32> to vector<8xf32>
    %33 = vector.shape_cast %32 : vector<8xf32> to vector<8x1xf32>
    %34 = tpu.reciprocal %33 {approx = true} : vector<8x1xf32> -> vector<8x1xf32>
    %35 = vector.broadcast %34 : vector<8x1xf32> to vector<8x128xf32>
    %36 = arith.mulf %31, %35 : vector<8x128xf32>
    %c0_23 = arith.constant 0 : index
    %c0_24 = arith.constant 0 : index
    %37 = vector.load %arg9[%c0_23, %c0_24] : memref<8x128xf32, #tpu.memory_space<vmem>>, vector<8x128xf32>
    tpu.vector_store %arg9[%c0_23, %c0_24], %36 {strides = array<i32>} : memref<8x128xf32, #tpu.memory_space<vmem>>, vector<8x128xf32>,
    return
  }
  func.func @transform_0(%arg0: i32) -> (i32, i32) {
    %c0_i32 = arith.constant 0 : i32
    %c0_i32_0 = arith.constant 0 : i32
    return %arg0, %c0_i32 : i32, i32
  }
  func.func @transform_1(%arg0: i32) -> (i32, i32) {
    %c0_i32 = arith.constant 0 : i32
    %c0_i32_0 = arith.constant 0 : i32
    %c0_i32_1 = arith.constant 0 : i32
    return %c0_i32, %c0_i32_0 : i32, i32
  }
  func.func @transform_2(%arg0: i32) -> (i32, i32) {
    %c0_i32 = arith.constant 0 : i32
    %c0_i32_0 = arith.constant 0 : i32
    %c0_i32_1 = arith.constant 0 : i32
    return %c0_i32, %c0_i32_0 : i32, i32
  }
  func.func @transform_3(%arg0: i32) -> (i32, i32) {
    %c0_i32 = arith.constant 0 : i32
    %c0_i32_0 = arith.constant 0 : i32
    %c0_i32_1 = arith.constant 0 : i32
    return %c0_i32, %c0_i32_0 : i32, i32
  }
  func.func @transform_4(%arg0: i32) -> (i32, i32) {
    %c0_i32 = arith.constant 0 : i32
    %c0_i32_0 = arith.constant 0 : i32
    %c0_i32_1 = arith.constant 0 : i32
    return %c0_i32, %c0_i32_0 : i32, i32
  }
  func.func @transform_5(%arg0: i32) -> (i32, i32) {
    %c0_i32 = arith.constant 0 : i32
    %c0_i32_0 = arith.constant 0 : i32
    %c0_i32_1 = arith.constant 0 : i32
    return %c0_i32, %c0_i32_0 : i32, i32
  }
  func.func @transform_6(%arg0: i32) -> (i32, i32) {
    %c0_i32 = arith.constant 0 : i32
    %c0_i32_0 = arith.constant 0 : i32
    %c0_i32_1 = arith.constant 0 : i32
    return %c0_i32, %c0_i32_0 : i32, i32
  }
  func.func @transform_7(%arg0: i32) -> (i32, i32) {
    %c0_i32 = arith.constant 0 : i32
    %c0_i32_0 = arith.constant 0 : i32
    return %arg0, %c0_i32 : i32, i32
  }
  func.func @transform_8(%arg0: i32) -> (i32, i32) {
    %c0_i32 = arith.constant 0 : i32
    %c0_i32_0 = arith.constant 0 : i32
    return %arg0, %c0_i32 : i32, i32
  }
  func.func @transform_9(%arg0: i32) -> (i32, i32) {
    %c0_i32 = arith.constant 0 : i32
    %c0_i32_0 = arith.constant 0 : i32
    return %arg0, %c0_i32 : i32, i32
  }
}

</mosaic_0001>

<bundles_post_ra>
// kernel: class_box_net_forward.1
= control target key start
LH: loop header
LB: loop body
LE: loop exit
PB: predicated region body
PF: predicated region fallthrough
CT: control target
= control target key end

     0   :  { %15 = vsyncpa [#allocation3], 0  ;;  %s7292_s0 = inlined_call_operand.vmem [shape: f32[16,64], index: 0, kind: input, shape index: {}]   ;;  %s7293_s1 = inlined_call_operand.hbm [shape: bf16[64,1024], index: 1, kind: input, shape index: {}]   ;;  %s7294_s2 = inlined_call_operand.hbm [shape: f32[1,1024], index: 2, kind: input, shape index: {}]   ;;  %s7295_s3 = inlined_call_operand.hbm [shape: bf16[1024,1024], index: 3, kind: input, shape index: {}]   ;;  %s7296_s4 = inlined_call_operand.hbm [shape: f32[1,1024], index: 4, kind: input, shape index: {}]   ;;  %s7297_s5 = inlined_call_operand.hbm [shape: bf16[1024,256], index: 5, kind: input, shape index: {}]   ;;  %s7298_s6 = inlined_call_operand.hbm [shape: f32[1,256], index: 6, kind: input, shape index: {}]   ;;  %s7299_s7 = inlined_call_operand.vmem [shape: f32[16,128], index: 7, kind: output, shape index: {0}]   ;;  %s7300_s8 = inlined_call_operand.vmem [shape: f32[16,128], index: 8, kind: output, shape index: {1}]   ;;  %s7301_s9 = inlined_call_operand.vmem [shape: f32[16,128], index: 9, kind: output, shape index: {2}]  }
   0x1   :  { %16 = vsyncpa [#allocation5], 0 }
   0x2   :  { %17 = vsyncpa [#allocation8], 0 }
   0x3   :  { %18 = vsyncpa [#allocation11], 0  ;;  %s6980_s30 = smov 0  }
   0x4 LB: > { %s6919_s10 = smov [#allocation4]   ;;  %s6986_s12 = sadd.s32 4294967295, %s6917_s30   ;;  %s6917_s30 = sphi %s6980_s30, %s24_s30  }
   0x5   : > { %s285_s11 = sshll.u32 %s6919_s10, 4  ;;  %p5771_p0 = scmp.ge.s32.totalorder %s6917_s30, 1  ;;  %s286_s11 = int_to_ptr.vmem [resolvable:$true] %s285_s11 }
   0x6   : > { %p259_p1 = scmp.lt.s32.totalorder %s6917_s30, 3  ;;  %p7302_p2 = scmp.eq.s32.totalorder %s6986_s12, 0 }
   0x7   : > { %s6920_s14 = smov [#allocation7]   ;;  %s6921_s16 = smov [#allocation2]  }
   0x8   : > { %p6991_p3 = pnand %p5771_p0, %p259_p1  ;;  %s309_s15 = sshll.u32 %s6920_s14, 4  ;;  %s310_s15 = int_to_ptr.vmem [resolvable:$true] %s309_s15 }
   0x9   : > { %s271_s17 = sshll.u32 %s6921_s16, 4  ;;  %s6922_s19 = smov [#allocation6]   ;;  %s7003_s17 = int_to_ptr.vmem [resolvable:$true] %s271_s17 }
   0xa   : > { %s7304_s13 = scalar_select %p6991_p3, 1, 0 }
   0xb   : > { %p6492_p4 = pneg %p6991_p3  ;;  %s7005_s20 = sshll.u32 %s6922_s19, 4  ;;  %s296_s20 = int_to_ptr.vmem [resolvable:$true] %s7005_s20 }
   0xc   : > { %s6750_s22 = scalar_lea.vmem %s286_s11, 128  ;;  %p6758_p10 = scmp.lt.s32.totalorder %s286_s11, %s286_s11 }
   0xd   : > { %p6999_p5 = pnand %p7302_p2, %p6492_p4  ;;  %p6751_p7 = scmp.ne.s32.totalorder %s286_s11, %s6750_s22 }
   0xe   : > { %p6759_p11 = scmp.lt.s32.totalorder %s6750_s22, %s6750_s22 }
   0xf   : > { %p7009_p6 = pneg %p6999_p5 }
  0x10   : > { %p6760_p12 = por %p6759_p11, %p6758_p10 }
  0x11   : > { %p6753_p8 = pnand %p6751_p7, %p7009_p6 }
  0x13   : > { %p6754_p9 = pneg %p6753_p8 }
  0x15   : > { %p6761_p13 = pnand %p6760_p12, %p6754_p9 }
  0x17   : > { %6764 = shalt.err (!%p6761_p13)
}
  0x18   : > { %6498 = dma.hbm_to_vmem [thread:$0]  (!%p6999_p5), %s7294_s2, 128, %s286_s11, [#allocation5]  }
  0x19   : > { %s6776_s25 = scalar_lea.vmem %s310_s15, 128  ;;  %p6784_p2 = scmp.lt.s32.totalorder %s310_s15, %s310_s15 }
  0x1a   : > { %p6777_p0 = scmp.ne.s32.totalorder %s310_s15, %s6776_s25  ;;  %p6785_p7 = scmp.lt.s32.totalorder %s6776_s25, %s6776_s25 }
  0x1c   : > { %p6779_p1 = pnand %p6777_p0, %p7009_p6  ;;  %p6786_p8 = por %p6785_p7, %p6784_p2 }
  0x1e   : > { %p6780_p4 = pneg %p6779_p1 }
  0x20   : > { %p6787_p3 = pnand %p6786_p8, %p6780_p4 }
  0x22   : > { %6790 = shalt.err (!%p6787_p3)
}
  0x23   : > { %6504 = dma.hbm_to_vmem [thread:$0]  (!%p6999_p5), %s7296_s4, 128, %s310_s15, [#allocation8]  }
  0x24   : > { %s6802_s28 = scalar_lea.vmem %s7003_s17, 4096  ;;  %p6810_p12 = scmp.lt.s32.totalorder %s7003_s17, %s7003_s17 }
  0x25   : > { %p6803_p9 = scmp.ne.s32.totalorder %s7003_s17, %s6802_s28  ;;  %p6811_p2 = scmp.lt.s32.totalorder %s6802_s28, %s6802_s28 }
  0x27   : > { %p6805_p10 = pnand %p6803_p9, %p7009_p6  ;;  %p6812_p13 = por %p6811_p2, %p6810_p12 }
  0x29   : > { %p6806_p11 = pneg %p6805_p10 }
  0x2b   : > { %p6813_p3 = pnand %p6812_p13, %p6806_p11 }
  0x2d   : > { %6816 = shalt.err (!%p6813_p3)
}
  0x2e   : > { %s6923_s29 = smov 512   ;;  %s6924_s10 = smov 32  }
  0x2f   : > { %6495 = dma.hbm_to_vmem [thread:$0]  (!%p6999_p5), %s7293_s1, 4096, %s7003_s17, [#allocation3], %s6923_s29, %s6923_s29, %s6924_s10  }
  0x30   : > { %s6828_s15 = scalar_lea.vmem %s296_s20, 65536  ;;  %p6836_p7 = scmp.lt.s32.totalorder %s296_s20, %s296_s20 }
  0x31   : > { %p6829_p0 = scmp.ne.s32.totalorder %s296_s20, %s6828_s15  ;;  %p6837_p8 = scmp.lt.s32.totalorder %s6828_s15, %s6828_s15 }
  0x33   : > { %p6831_p1 = pnand %p6829_p0, %p7009_p6  ;;  %p6838_p9 = por %p6837_p8, %p6836_p7 }
  0x35   : > { %p6832_p4 = pneg %p6831_p1 }
  0x37   : > { %p6839_p10 = pnand %p6838_p9, %p6832_p4 }
  0x39   : > { %6842 = shalt.err (!%p6839_p10)
}
  0x3a   : > { %6501 = dma.hbm_to_vmem [thread:$0]  (!%p6999_p5), %s7295_s3, 65536, %s296_s20, [#allocation5], %s6923_s29, %s6923_s29, %s6924_s10  }
  0x3b   : > { %s6925_s22 = smov [#allocation9]  }
  0x3c   : > { %s319_s17 = sshll.u32 %s6925_s22, 4  ;;  %s320_s17 = int_to_ptr.vmem [resolvable:$true] %s319_s17 }
  0x3d   : > { %s6854_s23 = scalar_lea.vmem %s320_s17, 16384  ;;  %p6862_p13 = scmp.lt.s32.totalorder %s320_s17, %s320_s17 }
  0x3e   : > { %p6855_p11 = scmp.ne.s32.totalorder %s320_s17, %s6854_s23  ;;  %p6863_p3 = scmp.lt.s32.totalorder %s6854_s23, %s6854_s23 }
  0x40   : > { %p6857_p12 = pnand %p6855_p11, %p7009_p6  ;;  %p6864_p0 = por %p6863_p3, %p6862_p13 }
  0x42   : > { %p6858_p2 = pneg %p6857_p12 }
  0x44   : > { %p6865_p1 = pnand %p6864_p0, %p6858_p2 }
  0x46   : > { %6868 = shalt.err (!%p6865_p1)
}
  0x47   : > { %s6926_s24 = smov 128   ;;  %s6927_s25 = smov 8  }
  0x48   : > { %6507 = dma.hbm_to_vmem [thread:$0]  (!%p6999_p5), %s7297_s5, 16384, %s320_s17, [#allocation8], %s6926_s24, %s6926_s24, %s6927_s25  }
  0x49   : > { %s6928_s27 = smov [#allocation10]  }
  0x4a   : > { %s333_s28 = sshll.u32 %s6928_s27, 4  ;;  %s334_s28 = int_to_ptr.vmem [resolvable:$true] %s333_s28 }
  0x4b   : > { %s6880_s29 = scalar_lea.vmem %s334_s28, 32  ;;  %p6888_p9 = scmp.lt.s32.totalorder %s334_s28, %s334_s28 }
  0x4c   : > { %p6881_p4 = scmp.ne.s32.totalorder %s334_s28, %s6880_s29  ;;  %p6889_p10 = scmp.lt.s32.totalorder %s6880_s29, %s6880_s29 }
  0x4e   : > { %p6883_p7 = pnand %p6881_p4, %p7009_p6  ;;  %p6890_p11 = por %p6889_p10, %p6888_p9 }
  0x50   : > { %p6884_p8 = pneg %p6883_p7 }
  0x52   : > { %p6891_p12 = pnand %p6890_p11, %p6884_p8 }
  0x54   : > { %6894 = shalt.err (!%p6891_p12)
}
  0x55   : > { %6510 = dma.hbm_to_vmem [thread:$0]  (!%p6999_p5), %s7298_s6, 32, %s334_s28, [#allocation11]  }
  0x56   : > { %p7307_p2 = scmp.ne.s32.totalorder %s7304_s13, 0 }
  0x57   : > { %p7308_p13 = scmp.eq.s32.totalorder (!%p7307_p2), %s6986_s12, 0 }
  0x58   : > { %353 = sbr.rel (%p7307_p2) target bundleno = 1485 (0x5cd), region = 48 }
  0x5d   : > { %6900 = dma.done.wait (%p7308_p13), [#allocation3], 4096   ;;  %p7309_p6 = pmov %p7308_p13 }
  0x5f   : > { %6902 = vsyncadd (%p7309_p6), [#allocation3], 4294963200  ;;  %p7310_p3 = pmov %p7309_p6 }
  0x61   : > { %6904 = dma.done.wait (%p7310_p3), [#allocation5], 65664   ;;  %p7311_p0 = pmov %p7310_p3 }
  0x63   : > { %6906 = vsyncadd (%p7311_p0), [#allocation5], 4294901632  ;;  %p7312_p1 = pmov %p7311_p0 }
  0x64   : > { %p7313_p5 = pmov %p7311_p0 }
  0x65   : > { %6908 = dma.done.wait (%p7312_p1), [#allocation8], 16512  }
  0x66   : > { %6910 = vsyncadd (%p7313_p5), [#allocation8], 4294950784  ;;  %p7314_p4 = pmov %p7311_p0 }
  0x67   : > { %p7315_p7 = pmov %p7311_p0 }
  0x68   : > { %6912 = dma.done.wait (%p7314_p4), [#allocation11], 32  }
  0x69   : > { %6914 = vsyncadd (%p7315_p7), [#allocation11], 4294967264  ;;  %v6929_v0 = vmov 0   ;;  %p415_p8 = scmp.lt.s32.totalorder %s6986_s12, 1  ;;  %v458_v1 = vld [vmem:[#allocation2 + $0xc0] sm:$0xff]  ;;  %v459_v3 = vld [vmem:[#allocation2 + $0xc8] sm:$0xff] }
  0x6a   : > { %704 = vmatprep.mubr.bf16.mxu0 %v6929_v0  ;;  %745 = vmatprep.mubr.bf16.mxu1 %v6929_v0  ;;  %v462_v2 = vld [vmem:[#allocation2 + $0xe0] sm:$0xff]  ;;  %v463_v5 = vld [vmem:[#allocation2 + $0xe8] sm:$0xff]  ;;  %v460_v31 = vld [vmem:[#allocation2 + $0xd0] sm:$0xff]  ;;  %vm668_vm0 = vcmask 523264  }
  0x6b   : > { %v5815_v4 = vcombine.high %v458_v1, %v462_v2  ;;  %v5814_v6 = vcombine.low %v458_v1, %v462_v2  ;;  %v450_v7 = vld [vmem:[#allocation2 + $0x80] sm:$0xff]  ;;  %v5817_v9 = vcombine.high %v459_v3, %v463_v5  ;;  %v5816_v10 = vcombine.low %v459_v3, %v463_v5  ;;  %v451_v12 = vld [vmem:[#allocation2 + $0x88] sm:$0xff]  ;;  %s7317_s12 = smov (!%p415_p8, %s6986_s12), 1  ;;  %v464_v32 = vld [vmem:[#allocation2 + $0xf0] sm:$0xff] }
  0x6c   : > { %v454_v8 = vld [vmem:[#allocation2 + $0xa0] sm:$0xff]  ;;  %v455_v13 = vld [vmem:[#allocation2 + $0xa8] sm:$0xff]  ;;  %s7085_s13 = sshll.u32 %s7317_s12, 3  ;;  %v461_v33 = vld [vmem:[#allocation2 + $0xd8] sm:$0xff]  ;;  %v5819_v38 = vcombine.high %v460_v31, %v464_v32  ;;  %v5818_v45 = vcombine.low %v460_v31, %v464_v32 }
  0x6d   : > { %v5807_v11 = vcombine.high %v450_v7, %v454_v8  ;;  %v442_v14 = vld [vmem:[#allocation2 + $0x40] sm:$0xff]  ;;  %680 = vmatprep.subr.bf16.mxu0 %v5815_v4  ;;  %v5809_v15 = vcombine.high %v451_v12, %v455_v13  ;;  %v443_v17 = vld [vmem:[#allocation2 + $0x48] sm:$0xff]  ;;  %721 = vmatprep.subr.bf16.mxu1 %v5817_v9  ;;  %v5806_v19 = vcombine.low %v450_v7, %v454_v8  ;;  %s418_s14 = scalar_lea.vmem %s7292_s0, %s7085_s13  ;;  %v465_v34 = vld [vmem:[#allocation2 + $0xf8] sm:$0xff]  ;;  %s422_s16 = scalar_lea.vmem %s7299_s7, %s7085_s13 }
  0x6e   : > { %v446_v16 = vld [vmem:[#allocation2 + $0x60] sm:$0xff]  ;;  %v447_v18 = vld [vmem:[#allocation2 + $0x68] sm:$0xff]  ;;  %681 = vmatpush1.bf16.msra.mxu0 %v5814_v6  ;;  %722 = vmatpush1.bf16.msra.mxu1 %v5816_v10  ;;  %v5808_v20 = vcombine.low %v451_v12, %v455_v13  ;;  %v5821_v39 = vcombine.high %v461_v33, %v465_v34  ;;  %v452_v40 = vld [vmem:[#allocation2 + $0x90] sm:$0xff]  ;;  %v5820_v46 = vcombine.low %v461_v33, %v465_v34  ;;  %s430_s17 = scalar_lea.vmem %s7301_s9, %s7085_s13  ;;  %s426_s25 = scalar_lea.vmem %s7300_s8, %s7085_s13 }
  0x6f   : > { %682 = vmatprep.subr.bf16.mxu0 %v5807_v11  ;;  %v5799_v21 = vcombine.high %v442_v14, %v446_v16  ;;  %723 = vmatprep.subr.bf16.mxu1 %v5809_v15  ;;  %v5801_v22 = vcombine.high %v443_v17, %v447_v18  ;;  %v434_v23 = vld [vmem:[#allocation2] sm:$0xff]  ;;  %v435_v25 = vld [vmem:[#allocation2 + $0x8] sm:$0xff]  ;;  %v5798_v27 = vcombine.low %v442_v14, %v446_v16  ;;  %v456_v41 = vld [vmem:[#allocation2 + $0xb0] sm:$0xff] }
  0x70   : > { %v438_v24 = vld [vmem:[#allocation2 + $0x20] sm:$0xff]  ;;  %v439_v26 = vld [vmem:[#allocation2 + $0x28] sm:$0xff]  ;;  %v5800_v28 = vcombine.low %v443_v17, %v447_v18  ;;  %v453_v43 = vld [vmem:[#allocation2 + $0x98] sm:$0xff]  ;;  %v5811_v47 = vcombine.high %v452_v40, %v456_v41  ;;  %v5810_v53 = vcombine.low %v452_v40, %v456_v41 }
  0x71   : > { %v5791_v29 = vcombine.high %v434_v23, %v438_v24  ;;  %v5793_v30 = vcombine.high %v435_v25, %v439_v26  ;;  %v5790_v35 = vcombine.low %v434_v23, %v438_v24  ;;  %v432_v36 = vld [vmem:[%s418_s14] sm:$0xff]  ;;  %v5792_v37 = vcombine.low %v435_v25, %v439_v26  ;;  %v457_v44 = vld [vmem:[#allocation2 + $0xb8] sm:$0xff]  ;;  %v444_v49 = vld [vmem:[#allocation2 + $0x50] sm:$0xff] }
  0x72   : > { %683 = vmatpush1.bf16.msra.mxu0 %v5806_v19  ;;  %724 = vmatpush1.bf16.msra.mxu1 %v5808_v20  ;;  %v7091_v42 = vpack.c.bf16 %v432_v36, %v432_v36  ;;  %v5813_v48 = vcombine.high %v453_v43, %v457_v44  ;;  %v448_v50 = vld [vmem:[#allocation2 + $0x70] sm:$0xff]  ;;  %v445_v51 = vld [vmem:[#allocation2 + $0x58] sm:$0xff]  ;;  %v5812_v54 = vcombine.low %v453_v43, %v457_v44  ;;  %v908_v2 = vld [vmem:[#allocation6 + $0x1c0] sm:$0xff] }
  0x73   : > { %684 = vmatprep.subr.bf16.mxu0 %v5799_v21  ;;  %725 = vmatprep.subr.bf16.mxu1 %v5801_v22  ;;  %v449_v52 = vld [vmem:[#allocation2 + $0x78] sm:$0xff]  ;;  %v5803_v55 = vcombine.high %v444_v49, %v448_v50  ;;  %v436_v57 = vld [vmem:[#allocation2 + $0x10] sm:$0xff]  ;;  %v5802_v61 = vcombine.low %v444_v49, %v448_v50  ;;  %v912_v3 = vld [vmem:[#allocation6 + $0x1e0] sm:$0xff] }
  0x74   : > { %v5805_v56 = vcombine.high %v445_v51, %v449_v52  ;;  %v440_v58 = vld [vmem:[#allocation2 + $0x30] sm:$0xff]  ;;  %v437_v59 = vld [vmem:[#allocation2 + $0x18] sm:$0xff]  ;;  %v5804_v62 = vcombine.low %v445_v51, %v449_v52  ;;  %v1036_v4 = vld [vmem:[#allocation6 + $0x5c0] sm:$0xff]  ;;  %v5883_v9 = vcombine.high %v908_v2, %v912_v3  ;;  %v5882_v13 = vcombine.low %v908_v2, %v912_v3 }
  0x75   : > { %v441_v60 = vld [vmem:[#allocation2 + $0x38] sm:$0xff]  ;;  %v5795_v63 = vcombine.high %v436_v57, %v440_v58  ;;  %v1040_v5 = vld [vmem:[#allocation6 + $0x5e0] sm:$0xff]  ;;  %v5794_v6 = vcombine.low %v436_v57, %v440_v58 }
  0x76   : > { %685 = vmatpush1.bf16.msra.mxu0 %v5798_v27  ;;  %726 = vmatpush1.bf16.msra.mxu1 %v5800_v28  ;;  %v5797_v1 = vcombine.high %v437_v59, %v441_v60  ;;  %v900_v7 = vld [vmem:[#allocation6 + $0x180] sm:$0xff]  ;;  %v5796_v8 = vcombine.low %v437_v59, %v441_v60  ;;  %v6011_v12 = vcombine.high %v1036_v4, %v1040_v5 }
  0x77   : > { %686 = vmatprep.subr.bf16.mxu0 %v5791_v29  ;;  %727 = vmatprep.subr.bf16.mxu1 %v5793_v30  ;;  %v1028_v10 = vld [vmem:[#allocation6 + $0x580] sm:$0xff]  ;;  %v6010_v16 = vcombine.low %v1036_v4, %v1040_v5 }
  0x78   : > { %v1032_v11 = vld [vmem:[#allocation6 + $0x5a0] sm:$0xff] }
  0x79   : > { %v892_v14 = vld [vmem:[#allocation6 + $0x140] sm:$0xff]  ;;  %v6003_v20 = vcombine.high %v1028_v10, %v1032_v11  ;;  %v6002_v24 = vcombine.low %v1028_v10, %v1032_v11 }
  0x7a   : > { %687 = vmatpush1.bf16.msra.mxu0 %v5790_v35  ;;  %728 = vmatpush1.bf16.msra.mxu1 %v5792_v37  ;;  %v896_v15 = vld [vmem:[#allocation6 + $0x160] sm:$0xff] }
  0x7b   : > { %762 = vmatprep.subr.bf16.mxu0 %v5819_v38  ;;  %803 = vmatprep.subr.bf16.mxu1 %v5821_v39  ;;  %v1020_v18 = vld [vmem:[#allocation6 + $0x540] sm:$0xff]  ;;  %v5867_v25 = vcombine.high %v892_v14, %v896_v15  ;;  %v5866_v29 = vcombine.low %v892_v14, %v896_v15 }
  0x7c   : > { %v1024_v19 = vld [vmem:[#allocation6 + $0x560] sm:$0xff] }
  0x7d   : > { %5822 = vmatmul.mubr.msk.bf16.vlgmr.msra.gmra.mxu0 %vm668_vm0, %v7091_v42  ;;  %5823 = vmatmul.mubr.msk.bf16.vlgmr.msra.gmra.mxu1 %vm668_vm0, %v7091_v42  ;;  %v884_v22 = vld [vmem:[#allocation6 + $0x100] sm:$0xff]  ;;  %v5995_v28 = vcombine.high %v1020_v18, %v1024_v19  ;;  %v5994_v32 = vcombine.low %v1020_v18, %v1024_v19 }
  0x7e   : > { %763 = vmatpush1.bf16.msra.mxu0 %v5818_v45  ;;  %804 = vmatpush1.bf16.msra.mxu1 %v5820_v46  ;;  %v888_v23 = vld [vmem:[#allocation6 + $0x120] sm:$0xff] }
  0x7f   : > { %764 = vmatprep.subr.bf16.mxu0 %v5811_v47  ;;  %805 = vmatprep.subr.bf16.mxu1 %v5813_v48  ;;  %v1012_v26 = vld [vmem:[#allocation6 + $0x500] sm:$0xff]  ;;  %v5859_v33 = vcombine.high %v884_v22, %v888_v23  ;;  %v5858_v37 = vcombine.low %v884_v22, %v888_v23 }
  0x80   : > { %786 = vmatprep.mubr.bf16.mxu0 %v6929_v0  ;;  %827 = vmatprep.mubr.bf16.mxu1 %v6929_v0  ;;  %v904_v0 = vld [vmem:[#allocation6 + $0x1a0] sm:$0xff] }
  0x81   : > { %v5875_v17 = vcombine.high %v900_v7, %v904_v0  ;;  %v5874_v21 = vcombine.low %v900_v7, %v904_v0  ;;  %v1016_v27 = vld [vmem:[#allocation6 + $0x520] sm:$0xff] }
  0x82   : > { %765 = vmatpush1.bf16.msra.mxu0 %v5810_v53  ;;  %806 = vmatpush1.bf16.msra.mxu1 %v5812_v54  ;;  %v876_v30 = vld [vmem:[#allocation6 + $0xc0] sm:$0xff]  ;;  %v5987_v36 = vcombine.high %v1012_v26, %v1016_v27  ;;  %v5986_v40 = vcombine.low %v1012_v26, %v1016_v27 }
  0x83   : > { %766 = vmatprep.subr.bf16.mxu0 %v5803_v55  ;;  %807 = vmatprep.subr.bf16.mxu1 %v5805_v56  ;;  %v880_v31 = vld [vmem:[#allocation6 + $0xe0] sm:$0xff] }
  0x84   : > { %v1004_v34 = vld [vmem:[#allocation6 + $0x4c0] sm:$0xff]  ;;  %v5851_v41 = vcombine.high %v876_v30, %v880_v31  ;;  %v5850_v45 = vcombine.low %v876_v30, %v880_v31 }
  0x85   : > { %v1008_v35 = vld [vmem:[#allocation6 + $0x4e0] sm:$0xff] }
  0x86   : > { %767 = vmatpush1.bf16.msra.mxu0 %v5802_v61  ;;  %808 = vmatpush1.bf16.msra.mxu1 %v5804_v62  ;;  %v868_v38 = vld [vmem:[#allocation6 + $0x80] sm:$0xff]  ;;  %v5979_v44 = vcombine.high %v1004_v34, %v1008_v35  ;;  %v5978_v48 = vcombine.low %v1004_v34, %v1008_v35 }
  0x87   : > { %768 = vmatprep.subr.bf16.mxu0 %v5795_v63  ;;  %809 = vmatprep.subr.bf16.mxu1 %v5797_v1  ;;  %v872_v39 = vld [vmem:[#allocation6 + $0xa0] sm:$0xff] }
  0x88   : > { %v1000_v43 = vld [vmem:[#allocation6 + $0x4a0] sm:$0xff]  ;;  %v5843_v49 = vcombine.high %v868_v38, %v872_v39  ;;  %v5842_v53 = vcombine.low %v868_v38, %v872_v39 }
  0x89   : > { %v860_v46 = vld [vmem:[#allocation6 + $0x40] sm:$0xff] }
  0x8a   : > { %769 = vmatpush1.bf16.msra.mxu0 %v5794_v6  ;;  %810 = vmatpush1.bf16.msra.mxu1 %v5796_v8  ;;  %v864_v47 = vld [vmem:[#allocation6 + $0x60] sm:$0xff] }
  0x8b   : > { %3966 = vmatprep.subr.bf16.mxu0 %v5883_v9  ;;  %4007 = vmatprep.subr.bf16.mxu1 %v6011_v12  ;;  %v988_v50 = vld [vmem:[#allocation6 + $0x440] sm:$0xff]  ;;  %v5835_v57 = vcombine.high %v860_v46, %v864_v47  ;;  %v5834_v61 = vcombine.low %v860_v46, %v864_v47 }
  0x8c   : > { %v992_v51 = vld [vmem:[#allocation6 + $0x460] sm:$0xff] }
  0x8d   : > { %5824 = vmatmul.mubr.msk.bf16.vlgmr.msra.gmra.mxu0 %vm668_vm0, %v7091_v42  ;;  %5825 = vmatmul.mubr.msk.bf16.vlgmr.msra.gmra.mxu1 %vm668_vm0, %v7091_v42  ;;  %v996_v42 = vld [vmem:[#allocation6 + $0x480] sm:$0xff]  ;;  %v5963_v60 = vcombine.high %v988_v50, %v992_v51  ;;  %v5962_v1 = vcombine.low %v988_v50, %v992_v51 }
  0x8e   : > { %3967 = vmatpush1.bf16.msra.mxu0 %v5882_v13  ;;  %4008 = vmatpush1.bf16.msra.mxu1 %v6010_v16  ;;  %v5971_v52 = vcombine.high %v996_v42, %v1000_v43  ;;  %v852_v54 = vld [vmem:[#allocation6] sm:$0xff]  ;;  %v5970_v56 = vcombine.low %v996_v42, %v1000_v43 }
  0x8f   : > { %3968 = vmatprep.subr.bf16.mxu0 %v5875_v17  ;;  %4009 = vmatprep.subr.bf16.mxu1 %v6003_v20  ;;  %v856_v55 = vld [vmem:[#allocation6 + $0x20] sm:$0xff] }
  0x90   : > { %v980_v58 = vld [vmem:[#allocation6 + $0x400] sm:$0xff]  ;;  %v5827_v2 = vcombine.high %v852_v54, %v856_v55  ;;  %v5826_v6 = vcombine.low %v852_v54, %v856_v55 }
  0x91   : > { %v984_v59 = vld [vmem:[#allocation6 + $0x420] sm:$0xff] }
  0x92   : > { %3969 = vmatpush1.bf16.msra.mxu0 %v5874_v21  ;;  %4010 = vmatpush1.bf16.msra.mxu1 %v6002_v24  ;;  %v972_v62 = vld [vmem:[#allocation6 + $0x3c0] sm:$0xff]  ;;  %v5955_v5 = vcombine.high %v980_v58, %v984_v59  ;;  %v5954_v9 = vcombine.low %v980_v58, %v984_v59 }
  0x93   : > { %3970 = vmatprep.subr.bf16.mxu0 %v5867_v25  ;;  %4011 = vmatprep.subr.bf16.mxu1 %v5995_v28  ;;  %v976_v63 = vld [vmem:[#allocation6 + $0x3e0] sm:$0xff] }
  0x94   : > { %v1100_v3 = vld [vmem:[#allocation6 + $0x7c0] sm:$0xff]  ;;  %v5947_v0 = vcombine.high %v972_v62, %v976_v63  ;;  %v5946_v13 = vcombine.low %v972_v62, %v976_v63 }
  0x95   : > { %v1104_v4 = vld [vmem:[#allocation6 + $0x7e0] sm:$0xff] }
  0x96   : > { %3971 = vmatpush1.bf16.msra.mxu0 %v5866_v29  ;;  %4012 = vmatpush1.bf16.msra.mxu1 %v5994_v32  ;;  %v964_v7 = vld [vmem:[#allocation6 + $0x380] sm:$0xff]  ;;  %v6075_v12 = vcombine.high %v1100_v3, %v1104_v4  ;;  %v6074_v16 = vcombine.low %v1100_v3, %v1104_v4 }
  0x97   : > { %3972 = vmatprep.subr.bf16.mxu0 %v5859_v33  ;;  %4013 = vmatprep.subr.bf16.mxu1 %v5987_v36  ;;  %v968_v8 = vld [vmem:[#allocation6 + $0x3a0] sm:$0xff] }
  0x98   : > { %v1092_v10 = vld [vmem:[#allocation6 + $0x780] sm:$0xff]  ;;  %v5939_v17 = vcombine.high %v964_v7, %v968_v8  ;;  %v5938_v21 = vcombine.low %v964_v7, %v968_v8 }
  0x99   : > { %v1096_v11 = vld [vmem:[#allocation6 + $0x7a0] sm:$0xff] }
  0x9a   : > { %3973 = vmatpush1.bf16.msra.mxu0 %v5858_v37  ;;  %4014 = vmatpush1.bf16.msra.mxu1 %v5986_v40  ;;  %v956_v14 = vld [vmem:[#allocation6 + $0x340] sm:$0xff]  ;;  %v6067_v20 = vcombine.high %v1092_v10, %v1096_v11  ;;  %v6066_v24 = vcombine.low %v1092_v10, %v1096_v11  ;;  %v468_v11 = vlaneseq }
  0x9b   : > { %3974 = vmatprep.subr.bf16.mxu0 %v5851_v41  ;;  %4015 = vmatprep.subr.bf16.mxu1 %v5979_v44  ;;  %v960_v15 = vld [vmem:[#allocation6 + $0x360] sm:$0xff] }
  0x9c   : > { %v1084_v18 = vld [vmem:[#allocation6 + $0x740] sm:$0xff]  ;;  %v5931_v25 = vcombine.high %v956_v14, %v960_v15  ;;  %v5930_v29 = vcombine.low %v956_v14, %v960_v15  ;;  %v7120_v14 = vld [vmem:[#allocation4] sm:$0xff] }
  0x9d   : > { %v1088_v19 = vld [vmem:[#allocation6 + $0x760] sm:$0xff] }
  0x9e   : > { %3975 = vmatpush1.bf16.msra.mxu0 %v5850_v45  ;;  %4016 = vmatpush1.bf16.msra.mxu1 %v5978_v48  ;;  %v948_v22 = vld [vmem:[#allocation6 + $0x300] sm:$0xff]  ;;  %v6059_v28 = vcombine.high %v1084_v18, %v1088_v19  ;;  %v6058_v30 = vcombine.low %v1084_v18, %v1088_v19 }
  0x9f   : > { %3976 = vmatprep.subr.bf16.mxu0 %v5843_v49  ;;  %4017 = vmatprep.subr.bf16.mxu1 %v5971_v52  ;;  %v952_v23 = vld [vmem:[#allocation6 + $0x320] sm:$0xff] }
  0xa0   : > { %v1076_v26 = vld [vmem:[#allocation6 + $0x700] sm:$0xff]  ;;  %v5923_v31 = vcombine.high %v948_v22, %v952_v23  ;;  %v5922_v37 = vcombine.low %v948_v22, %v952_v23 }
  0xa1   : > { %v1080_v27 = vld [vmem:[#allocation6 + $0x720] sm:$0xff] }
  0xa2   : > { %3977 = vmatpush1.bf16.msra.mxu0 %v5842_v53  ;;  %4018 = vmatpush1.bf16.msra.mxu1 %v5970_v56  ;;  %v6051_v32 = vcombine.high %v1076_v26, %v1080_v27  ;;  %v940_v33 = vld [vmem:[#allocation6 + $0x2c0] sm:$0xff]  ;;  %v6050_v38 = vcombine.low %v1076_v26, %v1080_v27 }
  0xa3   : > { %3978 = vmatprep.subr.bf16.mxu0 %v5835_v57  ;;  %4019 = vmatprep.subr.bf16.mxu1 %v5963_v60  ;;  %v944_v34 = vld [vmem:[#allocation6 + $0x2e0] sm:$0xff] }
  0xa4   : > { %v1068_v35 = vld [vmem:[#allocation6 + $0x6c0] sm:$0xff]  ;;  %v5915_v39 = vcombine.high %v940_v33, %v944_v34  ;;  %v5914_v45 = vcombine.low %v940_v33, %v944_v34 }
  0xa5   : > { %v1072_v36 = vld [vmem:[#allocation6 + $0x6e0] sm:$0xff] }
  0xa6   : > { %3979 = vmatpush1.bf16.msra.mxu0 %v5834_v61  ;;  %4020 = vmatpush1.bf16.msra.mxu1 %v5962_v1  ;;  %v6043_v40 = vcombine.high %v1068_v35, %v1072_v36  ;;  %v932_v41 = vld [vmem:[#allocation6 + $0x280] sm:$0xff]  ;;  %v6042_v46 = vcombine.low %v1068_v35, %v1072_v36 }
  0xa7   : > { %3980 = vmatprep.subr.bf16.mxu0 %v5827_v2  ;;  %4021 = vmatprep.subr.bf16.mxu1 %v5955_v5  ;;  %v936_v42 = vld [vmem:[#allocation6 + $0x2a0] sm:$0xff] }
  0xa8   : > { %v1060_v43 = vld [vmem:[#allocation6 + $0x680] sm:$0xff]  ;;  %v5907_v47 = vcombine.high %v932_v41, %v936_v42  ;;  %v5906_v53 = vcombine.low %v932_v41, %v936_v42 }
  0xa9   : > { %v1064_v44 = vld [vmem:[#allocation6 + $0x6a0] sm:$0xff] }
  0xaa   : > { %3981 = vmatpush1.bf16.msra.mxu0 %v5826_v6  ;;  %4022 = vmatpush1.bf16.msra.mxu1 %v5954_v9  ;;  %v6035_v48 = vcombine.high %v1060_v43, %v1064_v44  ;;  %v924_v49 = vld [vmem:[#allocation6 + $0x240] sm:$0xff]  ;;  %v6034_v54 = vcombine.low %v1060_v43, %v1064_v44 }
  0xab   : > { %3982 = vmatprep.subr.bf16.mxu0 %v5947_v0  ;;  %4023 = vmatprep.subr.bf16.mxu1 %v6075_v12  ;;  %v928_v50 = vld [vmem:[#allocation6 + $0x260] sm:$0xff]  ;;  %v7115_v12 = vshrl.u32 %v468_v11, 7 }
  0xac   : > { %v1052_v51 = vld [vmem:[#allocation6 + $0x640] sm:$0xff]  ;;  %v5899_v55 = vcombine.high %v924_v49, %v928_v50  ;;  %v5898_v61 = vcombine.low %v924_v49, %v928_v50 }
  0xad   : > { %v1056_v52 = vld [vmem:[#allocation6 + $0x660] sm:$0xff]  ;;  %v478_v15 = vsub.s32 2, %v7115_v12 }
  0xae   : > { %3983 = vmatpush2.bf16.msra.mxu0 %v5946_v13  ;;  %4024 = vmatpush2.bf16.msra.mxu1 %v6074_v16  ;;  %v6027_v56 = vcombine.high %v1052_v51, %v1056_v52  ;;  %v916_v57 = vld [vmem:[#allocation6 + $0x200] sm:$0xff]  ;;  %v6026_v62 = vcombine.low %v1052_v51, %v1056_v52  ;;  %v7118_v13 = vsub.s32 0, %v7115_v12  ;;  %v7124_v16 = vsub.s32 1, %v7115_v12 }
  0xaf   : > { %3984 = vmatprep.subr.bf16.mxu0 %v5939_v17  ;;  %4025 = vmatprep.subr.bf16.mxu1 %v6067_v20  ;;  %v920_v58 = vld [vmem:[#allocation6 + $0x220] sm:$0xff]  ;;  %v482_v17 = vsub.s32 3, %v7115_v12  ;;  %v479_v19 = vrot.slane %v7120_v14, %v478_v15 }
  0xb0   : > { %v1044_v59 = vld [vmem:[#allocation6 + $0x600] sm:$0xff]  ;;  %v5891_v63 = vcombine.high %v916_v57, %v920_v58  ;;  %v5890_v6 = vcombine.low %v916_v57, %v920_v58  ;;  %v471_v18 = vrot.slane %v7120_v14, %v7118_v13  ;;  %v475_v20 = vrot.slane %v7120_v14, %v7124_v16 }
  0xb1   : > { %v1048_v60 = vld [vmem:[#allocation6 + $0x620] sm:$0xff]  ;;  %v483_v22 = vrot.slane %v7120_v14, %v482_v17 }
  0xb2   : > { %3985 = vmatpush2.bf16.msra.mxu0 %v5938_v21  ;;  %4026 = vmatpush2.bf16.msra.mxu1 %v6066_v24  ;;  %v6019_v1 = vcombine.high %v1044_v59, %v1048_v60  ;;  %v7103_v2 = vld [vmem:[#allocation6 + $0x9c0] sm:$0xff]  ;;  %v6018_v9 = vcombine.low %v1044_v59, %v1048_v60 }
  0xb3   : > { %3986 = vmatprep.subr.bf16.mxu0 %v5931_v25  ;;  %4027 = vmatprep.subr.bf16.mxu1 %v6059_v28  ;;  %v1168_v3 = vld [vmem:[#allocation6 + $0x9e0] sm:$0xff] }
  0xb4   : > { %v7105_v4 = vld [vmem:[#allocation6 + $0xdc0] sm:$0xff]  ;;  %v6138_v7 = vcombine.low %v7103_v2, %v1168_v3  ;;  %v6139_v0 = vcombine.high %v7103_v2, %v1168_v3 }
  0xb5   : > { %v7107_v5 = vld [vmem:[#allocation6 + $0xde0] sm:$0xff] }
  0xb6   : > { %3987 = vmatpush2.bf16.msra.mxu0 %v5930_v29  ;;  %4028 = vmatpush2.bf16.msra.mxu1 %v6058_v30  ;;  %v6266_v8 = vcombine.low %v7105_v4, %v7107_v5  ;;  %v6267_v10 = vcombine.high %v7105_v4, %v7107_v5  ;;  %v1156_v35 = vld [vmem:[#allocation6 + $0x980] sm:$0xff] }
  0xb7   : > { %3988 = vmatprep.subr.bf16.mxu0 %v5923_v31  ;;  %4029 = vmatprep.subr.bf16.mxu1 %v6051_v32  ;;  %v1160_v36 = vld [vmem:[#allocation6 + $0x9a0] sm:$0xff] }
  0xb8   : > { %v1152_v49 = vld [vmem:[#allocation6 + $0x960] sm:$0xff]  ;;  %v6130_v52 = vcombine.low %v1156_v35, %v1160_v36 }
  0xb9   : > { %v1276_v50 = vld [vmem:[#allocation6 + $0xd40] sm:$0xff] }
  0xba   : > { %3989 = vmatpush2.bf16.msra.mxu0 %v5922_v37  ;;  %4030 = vmatpush2.bf16.msra.mxu1 %v6050_v38  ;;  %v1280_v51 = vld [vmem:[#allocation6 + $0xd60] sm:$0xff] }
  0xbb   : > { %3990 = vmatprep.subr.bf16.mxu0 %v5915_v39  ;;  %4031 = vmatprep.subr.bf16.mxu1 %v6043_v40  ;;  %v1284_v39 = vld [vmem:[#allocation6 + $0xd80] sm:$0xff]  ;;  %v6251_v57 = vcombine.high %v1276_v50, %v1280_v51 }
  0xbc   : > { %v1288_v40 = vld [vmem:[#allocation6 + $0xda0] sm:$0xff] }
  0xbd   : > { %v1140_v58 = vld [vmem:[#allocation6 + $0x900] sm:$0xff] }
  0xbe   : > { %3991 = vmatpush2.bf16.msra.mxu0 %v5914_v45  ;;  %4032 = vmatpush2.bf16.msra.mxu1 %v6042_v46  ;;  %v6131_v46 = vcombine.high %v1156_v35, %v1160_v36  ;;  %v1144_v59 = vld [vmem:[#allocation6 + $0x920] sm:$0xff] }
  0xbf   : > { %3992 = vmatprep.subr.bf16.mxu0 %v5907_v47  ;;  %4033 = vmatprep.subr.bf16.mxu1 %v6035_v48  ;;  %v6259_v47 = vcombine.high %v1284_v39, %v1288_v40  ;;  %v1148_v48 = vld [vmem:[#allocation6 + $0x940] sm:$0xff]  ;;  %v6115_v2 = vcombine.high %v1140_v58, %v1144_v59  ;;  %v6114_v11 = vcombine.low %v1140_v58, %v1144_v59 }
  0xc0   : > { %v1268_v60 = vld [vmem:[#allocation6 + $0xd00] sm:$0xff] }
  0xc2   : > { %3993 = vmatpush2.bf16.msra.mxu0 %v5906_v53  ;;  %4034 = vmatpush2.bf16.msra.mxu1 %v6034_v54  ;;  %v490_v53 = vsub.s32 5, %v7115_v12  ;;  %v6258_v54 = vcombine.low %v1284_v39, %v1288_v40  ;;  %v1116_v40 = vld [vmem:[#allocation6 + $0x840] sm:$0xff] }
  0xc3   : > { %3994 = vmatprep.subr.bf16.mxu0 %v5899_v55  ;;  %4035 = vmatprep.subr.bf16.mxu1 %v6027_v56  ;;  %v6123_v55 = vcombine.high %v1148_v48, %v1152_v49  ;;  %v498_v56 = vsub.s32 7, %v7115_v12 }
  0xc5   : > { %v499_v4 = vrot.slane %v7120_v14, %v498_v56 }
  0xc6   : > { %3995 = vmatpush2.bf16.msra.mxu0 %v5898_v61  ;;  %4036 = vmatpush2.bf16.msra.mxu1 %v6026_v62  ;;  %v1272_v61 = vld [vmem:[#allocation6 + $0xd20] sm:$0xff]  ;;  %v6122_v62 = vcombine.low %v1148_v48, %v1152_v49 }
  0xc7   : > { %3996 = vmatprep.subr.bf16.mxu0 %v5891_v63  ;;  %4037 = vmatprep.subr.bf16.mxu1 %v6019_v1  ;;  %v491_v63 = vrot.slane %v7120_v14, %v490_v53  ;;  %v6250_v1 = vcombine.low %v1276_v50, %v1280_v51  ;;  %v6243_v5 = vcombine.high %v1268_v60, %v1272_v61 }
  0xca   : > { %3997 = vmatpush2.bf16.msra.mxu0 %v5890_v6  ;;  %4038 = vmatpush2.bf16.msra.mxu1 %v6018_v9  ;;  %v1132_v6 = vld [vmem:[#allocation6 + $0x8c0] sm:$0xff] }
  0xcb   : > { %4048 = vmatprep.subr.bf16.mxu0 %v6139_v0  ;;  %4089 = vmatprep.subr.bf16.mxu1 %v6267_v10  ;;  %v1260_v9 = vld [vmem:[#allocation6 + $0xcc0] sm:$0xff] }
  0xcc   : > { %v1264_v0 = vld [vmem:[#allocation6 + $0xce0] sm:$0xff] }
  0xcd   : > { %v6234_v36 = vcombine.low %v1260_v9, %v1264_v0 }
 0x13d   : > { %v706_v21 = vpop.f32.mrf.mxu0  ;;  %v747_v24 = vpop.f32.mrf.mxu1 }
 0x13e   : > { %v707_v23 = vadd.f32 %v706_v21, %v471_v18  ;;  %v748_v25 = vadd.f32 %v747_v24, %v479_v19  ;;  %v6235_v24 = vcombine.high %v1260_v9, %v1264_v0  ;;  %v1220_v9 = vld [vmem:[#allocation6 + $0xb80] sm:$0xff] }
 0x13f   : > { %v708_v26 = vpop.f32.mrf.mxu0  ;;  %v749_v28 = vpop.f32.mrf.mxu1  ;;  %v1224_v0 = vld [vmem:[#allocation6 + $0xba0] sm:$0xff] }
 0x140   : > { %v709_v27 = vadd.f32 %v708_v26, %v475_v20  ;;  %v836_v29 = vmax.f32 %v707_v23, 0.0  ;;  %v838_v30 = vmax.f32 %v748_v25, 0.0  ;;  %v750_v31 = vadd.f32 %v749_v28, %v483_v22  ;;  %v1124_v25 = vld [vmem:[#allocation6 + $0x880] sm:$0xff] }
 0x141   : > { %v710_v32 = vpop.f32.mrf.mxu0  ;;  %v751_v34 = vpop.f32.mrf.mxu1  ;;  %v6242_v20 = vcombine.low %v1268_v60, %v1272_v61  ;;  %v1128_v26 = vld [vmem:[#allocation6 + $0x8a0] sm:$0xff] }
 0x142   : > { %v837_v33 = vmax.f32 %v709_v27, 0.0  ;;  %v839_v37 = vmax.f32 %v750_v31, 0.0  ;;  %v7137_v41 = vpack.c.bf16 %v838_v30, %v838_v30  ;;  %v7141_v44 = vpack.c.bf16 %v836_v29, %v836_v29  ;;  %v1252_v29 = vld [vmem:[#allocation6 + $0xc80] sm:$0xff] }
 0x143   : > { %v711_v38 = vpop.f32.mrf.mxu0  ;;  %v752_v43 = vpop.f32.mrf.mxu1  ;;  %v1256_v30 = vld [vmem:[#allocation6 + $0xca0] sm:$0xff]  ;;  %v6098_v48 = vcombine.low %v1124_v25, %v1128_v26 }
 0x144   : > { %v7139_v42 = vpack.c.bf16 %v837_v33, %v837_v33  ;;  %v7143_v45 = vpack.c.bf16 %v839_v37, %v839_v37  ;;  %v6099_v37 = vcombine.high %v1124_v25, %v1128_v26  ;;  %v6227_v39 = vcombine.high %v1252_v29, %v1256_v30  ;;  %v1120_v43 = vld [vmem:[#allocation6 + $0x860] sm:$0xff] }
 0x145   : > { %v6226_v49 = vcombine.low %v1252_v29, %v1256_v30  ;;  %v6091_v50 = vcombine.high %v1116_v40, %v1120_v43  ;;  %v6090_v58 = vcombine.low %v1116_v40, %v1120_v43  ;;  %v1344_v25 = vld [vmem:[#allocation6 + $0xf60] sm:$0xff]  ;;  %v6194_v26 = vcombine.low %v1220_v9, %v1224_v0 }
 0x146   : > { %3998 = vmatprep.mubr.bf16.mxu0 %v7139_v42  ;;  %4039 = vmatprep.mubr.bf16.mxu1 %v7143_v45  ;;  %v1204_v30 = vld [vmem:[#allocation6 + $0xb00] sm:$0xff] }
 0x147   : > { %3999 = vmatmul.mubr.bf16.vlgmr.msra.gmra.mxu0 %v7141_v44  ;;  %4040 = vmatmul.mubr.bf16.vlgmr.msra.gmra.mxu1 %v7137_v41  ;;  %v1196_v40 = vld [vmem:[#allocation6 + $0xac0] sm:$0xff] }
 0x148   : > { %4049 = vmatpush1.bf16.msra.mxu0 %v6138_v7  ;;  %4090 = vmatpush1.bf16.msra.mxu1 %v6266_v8  ;;  %v1136_v7 = vld [vmem:[#allocation6 + $0x8e0] sm:$0xff] }
 0x149   : > { %4050 = vmatprep.subr.bf16.mxu0 %v6131_v46  ;;  %4091 = vmatprep.subr.bf16.mxu1 %v6259_v47  ;;  %v6107_v21 = vcombine.high %v1132_v6, %v1136_v7  ;;  %v6106_v33 = vcombine.low %v1132_v6, %v1136_v7  ;;  %v1244_v46 = vld [vmem:[#allocation6 + $0xc40] sm:$0xff] }
 0x14a   : > { %v1248_v47 = vld [vmem:[#allocation6 + $0xc60] sm:$0xff] }
 0x14b   : > { %v6219_v51 = vcombine.high %v1244_v46, %v1248_v47  ;;  %v6218_v59 = vcombine.low %v1244_v46, %v1248_v47  ;;  %v1200_v43 = vld [vmem:[#allocation6 + $0xae0] sm:$0xff] }
 0x14c   : > { %4051 = vmatpush1.bf16.msra.mxu0 %v6130_v52  ;;  %4092 = vmatpush1.bf16.msra.mxu1 %v6258_v54  ;;  %v1108_v52 = vld [vmem:[#allocation6 + $0x800] sm:$0xff] }
 0x14d   : > { %4052 = vmatprep.subr.bf16.mxu0 %v6123_v55  ;;  %v7154_v3 = vpop.f32.mrf.mxu0  ;;  %4093 = vmatprep.subr.bf16.mxu1 %v6251_v57  ;;  %v7159_v8 = vpop.f32.mrf.mxu1  ;;  %v1112_v54 = vld [vmem:[#allocation6 + $0x820] sm:$0xff] }
 0x14e   : > { %v1236_v55 = vld [vmem:[#allocation6 + $0xc00] sm:$0xff]  ;;  %v6083_v60 = vcombine.high %v1108_v52, %v1112_v54 }
 0x14f   : > { %v790_v10 = vpop.f32.mrf.mxu0  ;;  %v831_v19 = vpop.f32.mrf.mxu1  ;;  %v1240_v57 = vld [vmem:[#allocation6 + $0xc20] sm:$0xff] }
 0x150   : > { %4053 = vmatpush1.bf16.msra.mxu0 %v6122_v62  ;;  %v791_v18 = vadd.f32 %v790_v10, %v491_v63  ;;  %4094 = vmatpush1.bf16.msra.mxu1 %v6250_v1  ;;  %v832_v23 = vadd.f32 %v831_v19, %v499_v4  ;;  %v6211_v61 = vcombine.high %v1236_v55, %v1240_v57  ;;  %v1228_v62 = vld [vmem:[#allocation6 + $0xbc0] sm:$0xff] }
 0x151   : > { %4054 = vmatprep.subr.bf16.mxu0 %v6115_v2  ;;  %v792_v22 = vpop.f32.mrf.mxu0  ;;  %4095 = vmatprep.subr.bf16.mxu1 %v6243_v5  ;;  %v833_v28 = vpop.f32.mrf.mxu1  ;;  %v1232_v63 = vld [vmem:[#allocation6 + $0xbe0] sm:$0xff]  ;;  %v6082_v4 = vcombine.low %v1108_v52, %v1112_v54  ;;  %v6210_v5 = vcombine.low %v1236_v55, %v1240_v57 }
 0x152   : > { %v841_v27 = vmax.f32 %v791_v18, 0.0  ;;  %v843_v31 = vmax.f32 %v832_v23, 0.0  ;;  %v1356_v1 = vld [vmem:[#allocation6 + $0xfc0] sm:$0xff]  ;;  %v6203_v6 = vcombine.high %v1228_v62, %v1232_v63  ;;  %v6202_v18 = vcombine.low %v1228_v62, %v1232_v63 }
 0x153   : > { %v793_v32 = vpop.f32.mrf.mxu0  ;;  %v834_v35 = vpop.f32.mrf.mxu1  ;;  %v1360_v2 = vld [vmem:[#allocation6 + $0xfe0] sm:$0xff] }
 0x154   : > { %4055 = vmatpush1.bf16.msra.mxu0 %v6114_v11  ;;  %v7161_v34 = vpack.c.bf16 %v841_v27, %v841_v27  ;;  %4096 = vmatpush1.bf16.msra.mxu1 %v6242_v20  ;;  %v7163_v38 = vpack.c.bf16 %v843_v31, %v843_v31  ;;  %v6331_v7 = vcombine.high %v1356_v1, %v1360_v2  ;;  %v1348_v10 = vld [vmem:[#allocation6 + $0xf80] sm:$0xff] }
 0x155   : > { %4056 = vmatprep.subr.bf16.mxu0 %v6107_v21  ;;  %4097 = vmatprep.subr.bf16.mxu1 %v6235_v24  ;;  %v1352_v11 = vld [vmem:[#allocation6 + $0xfa0] sm:$0xff]  ;;  %v6330_v19 = vcombine.low %v1356_v1, %v1360_v2  ;;  %v6195_v20 = vcombine.high %v1220_v9, %v1224_v0 }
 0x156   : > { %4080 = vmatprep.mubr.bf16.mxu0 %v7161_v34  ;;  %4121 = vmatprep.mubr.bf16.mxu1 %v7163_v38  ;;  %v6323_v21 = vcombine.high %v1348_v10, %v1352_v11  ;;  %v1212_v22 = vld [vmem:[#allocation6 + $0xb40] sm:$0xff]  ;;  %v6322_v27 = vcombine.low %v1348_v10, %v1352_v11 }
 0x157   : > { %v1216_v23 = vld [vmem:[#allocation6 + $0xb60] sm:$0xff] }
 0x158   : > { %4057 = vmatpush1.bf16.msra.mxu0 %v6106_v33  ;;  %4098 = vmatpush1.bf16.msra.mxu1 %v6234_v36  ;;  %v1340_v24 = vld [vmem:[#allocation6 + $0xf40] sm:$0xff]  ;;  %v6187_v28 = vcombine.high %v1212_v22, %v1216_v23  ;;  %v6186_v35 = vcombine.low %v1212_v22, %v1216_v23 }
 0x159   : > { %4058 = vmatprep.subr.bf16.mxu0 %v6099_v37  ;;  %4099 = vmatprep.subr.bf16.mxu1 %v6227_v39  ;;  %v6315_v29 = vcombine.high %v1340_v24, %v1344_v25  ;;  %v1208_v31 = vld [vmem:[#allocation6 + $0xb20] sm:$0xff]  ;;  %v6314_v36 = vcombine.low %v1340_v24, %v1344_v25 }
 0x15a   : > { %v1332_v32 = vld [vmem:[#allocation6 + $0xf00] sm:$0xff]  ;;  %v6179_v37 = vcombine.high %v1204_v30, %v1208_v31 }
 0x15b   : > { %v1336_v33 = vld [vmem:[#allocation6 + $0xf20] sm:$0xff] }
 0x15c   : > { %4059 = vmatpush1.bf16.msra.mxu0 %v6098_v48  ;;  %4100 = vmatpush1.bf16.msra.mxu1 %v6226_v49  ;;  %v6307_v39 = vcombine.high %v1332_v32, %v1336_v33  ;;  %v1324_v46 = vld [vmem:[#allocation6 + $0xec0] sm:$0xff]  ;;  %v6178_v48 = vcombine.low %v1204_v30, %v1208_v31  ;;  %v6306_v49 = vcombine.low %v1332_v32, %v1336_v33  ;;  %v1041_v30 = vld [vmem:[#allocation6 + $0x5e8] sm:$0xff] }
 0x15d   : > { %4060 = vmatprep.subr.bf16.mxu0 %v6091_v50  ;;  %4101 = vmatprep.subr.bf16.mxu1 %v6219_v51  ;;  %v1328_v47 = vld [vmem:[#allocation6 + $0xee0] sm:$0xff]  ;;  %v6171_v50 = vcombine.high %v1196_v40, %v1200_v43 }
 0x15e   : > { %v6299_v51 = vcombine.high %v1324_v46, %v1328_v47  ;;  %v1188_v52 = vld [vmem:[#allocation6 + $0xa80] sm:$0xff] }
 0x15f   : > { %v1192_v54 = vld [vmem:[#allocation6 + $0xaa0] sm:$0xff] }
 0x160   : > { %4061 = vmatpush1.bf16.msra.mxu0 %v6090_v58  ;;  %4102 = vmatpush1.bf16.msra.mxu1 %v6218_v59  ;;  %v1316_v55 = vld [vmem:[#allocation6 + $0xe80] sm:$0xff]  ;;  %v6170_v58 = vcombine.low %v1196_v40, %v1200_v43  ;;  %v494_v59 = vsub.s32 6, %v7115_v12  ;;  %v6163_v62 = vcombine.high %v1188_v52, %v1192_v54  ;;  %v1029_v43 = vld [vmem:[#allocation6 + $0x588] sm:$0xff] }
 0x161   : > { %4062 = vmatprep.subr.bf16.mxu0 %v6083_v60  ;;  %4103 = vmatprep.subr.bf16.mxu1 %v6211_v61  ;;  %v1320_v57 = vld [vmem:[#allocation6 + $0xea0] sm:$0xff]  ;;  %v6298_v60 = vcombine.low %v1324_v46, %v1328_v47  ;;  %v486_v61 = vsub.s32 4, %v7115_v12  ;;  %v1033_v46 = vld [vmem:[#allocation6 + $0x5a8] sm:$0xff] }
 0x162   : > { %v6291_v63 = vcombine.high %v1316_v55, %v1320_v57  ;;  %v1180_v1 = vld [vmem:[#allocation6 + $0xa40] sm:$0xff]  ;;  %v6290_v0 = vcombine.low %v1316_v55, %v1320_v57  ;;  %v1025_v55 = vld [vmem:[#allocation6 + $0x568] sm:$0xff] }
 0x163   : > { %v1184_v2 = vld [vmem:[#allocation6 + $0xa60] sm:$0xff]  ;;  %v487_v9 = vrot.slane %v7120_v14, %v486_v61 }
 0x164   : > { %4063 = vmatpush1.bf16.msra.mxu0 %v6082_v4  ;;  %4104 = vmatpush1.bf16.msra.mxu1 %v6210_v5  ;;  %v1308_v4 = vld [vmem:[#allocation6 + $0xe40] sm:$0xff]  ;;  %v6155_v10 = vcombine.high %v1180_v1, %v1184_v2  ;;  %v6154_v23 = vcombine.low %v1180_v1, %v1184_v2  ;;  %v889_v1 = vld [vmem:[#allocation6 + $0x128] sm:$0xff] }
 0x165   : > { %4064 = vmatprep.subr.bf16.mxu0 %v6203_v6  ;;  %4105 = vmatprep.subr.bf16.mxu1 %v6331_v7  ;;  %v1312_v5 = vld [vmem:[#allocation6 + $0xe60] sm:$0xff]  ;;  %v495_v6 = vrot.slane %v7120_v14, %v494_v59  ;;  %v6162_v7 = vcombine.low %v1188_v52, %v1192_v54  ;;  %v789_v24 = vadd.f32 %v7154_v3, %v487_v9  ;;  %v1021_v54 = vld [vmem:[#allocation6 + $0x548] sm:$0xff] }
 0x166   : > { %v6283_v11 = vcombine.high %v1308_v4, %v1312_v5  ;;  %v6282_v25 = vcombine.low %v1308_v4, %v1312_v5  ;;  %v6005_v52 = vcombine.high %v1029_v43, %v1033_v46  ;;  %v1013_v2 = vld [vmem:[#allocation6 + $0x508] sm:$0xff] }
 0x167   : > { %v830_v22 = vadd.f32 %v7159_v8, %v495_v6  ;;  %v840_v33 = vmax.f32 %v789_v24, 0.0  ;;  %v1017_v4 = vld [vmem:[#allocation6 + $0x528] sm:$0xff]  ;;  %v5996_v6 = vcombine.low %v1021_v54, %v1025_v55 }
 0x168   : > { %4065 = vmatpush2.bf16.msra.mxu0 %v6202_v18  ;;  %4106 = vmatpush2.bf16.msra.mxu1 %v6330_v19  ;;  %v1172_v18 = vld [vmem:[#allocation6 + $0xa00] sm:$0xff]  ;;  %v5989_v9 = vcombine.high %v1013_v2, %v1017_v4  ;;  %v873_v24 = vld [vmem:[#allocation6 + $0xa8] sm:$0xff] }
 0x169   : > { %4066 = vmatprep.subr.bf16.mxu0 %v6195_v20  ;;  %4107 = vmatprep.subr.bf16.mxu1 %v6323_v21  ;;  %v1176_v19 = vld [vmem:[#allocation6 + $0xa20] sm:$0xff]  ;;  %v842_v31 = vmax.f32 %v830_v22, 0.0  ;;  %v7179_v47 = vpack.c.bf16 %v840_v33, %v840_v33  ;;  %v993_v33 = vld [vmem:[#allocation6 + $0x468] sm:$0xff] }
 0x16a   : > { %v1300_v20 = vld [vmem:[#allocation6 + $0xe00] sm:$0xff]  ;;  %v6147_v14 = vcombine.high %v1172_v18, %v1176_v19  ;;  %v6146_v32 = vcombine.low %v1172_v18, %v1176_v19  ;;  %v1009_v18 = vld [vmem:[#allocation6 + $0x4e8] sm:$0xff] }
 0x16b   : > { %v1304_v21 = vld [vmem:[#allocation6 + $0xe20] sm:$0xff] }
 0x16c   : > { %4067 = vmatpush2.bf16.msra.mxu0 %v6194_v26  ;;  %4108 = vmatpush2.bf16.msra.mxu1 %v6322_v27  ;;  %v6275_v26 = vcombine.high %v1300_v20, %v1304_v21  ;;  %v909_v27 = vld [vmem:[#allocation6 + $0x1c8] sm:$0xff]  ;;  %v6274_v8 = vcombine.low %v1300_v20, %v1304_v21  ;;  %v5988_v20 = vcombine.low %v1013_v2, %v1017_v4 }
 0x16d   : > { %4068 = vmatprep.subr.bf16.mxu0 %v6187_v28  ;;  %4109 = vmatprep.subr.bf16.mxu1 %v6315_v29  ;;  %v913_v28 = vld [vmem:[#allocation6 + $0x1e8] sm:$0xff] }
 0x16e   : > { %v1037_v29 = vld [vmem:[#allocation6 + $0x5c8] sm:$0xff]  ;;  %v5884_v40 = vcombine.low %v909_v27, %v913_v28 }
 0x16f   : > { %v6013_v3 = vcombine.high %v1037_v29, %v1041_v30  ;;  %v969_v2 = vld [vmem:[#allocation6 + $0x3a8] sm:$0xff] }
 0x170   : > { %4069 = vmatpush2.bf16.msra.mxu0 %v6186_v35  ;;  %4110 = vmatpush2.bf16.msra.mxu1 %v6314_v36  ;;  %v5885_v35 = vcombine.high %v909_v27, %v913_v28  ;;  %v901_v36 = vld [vmem:[#allocation6 + $0x188] sm:$0xff] }
 0x171   : > { %4070 = vmatprep.subr.bf16.mxu0 %v6179_v37  ;;  %4111 = vmatprep.subr.bf16.mxu1 %v6307_v39  ;;  %v905_v37 = vld [vmem:[#allocation6 + $0x1a8] sm:$0xff]  ;;  %v7177_v39 = vpack.c.bf16 %v842_v31, %v842_v31 }
 0x172   : > { %v5876_v57 = vcombine.low %v901_v36, %v905_v37  ;;  %v865_v31 = vld [vmem:[#allocation6 + $0x68] sm:$0xff] }
 0x173   : > { %v1093_v4 = vld [vmem:[#allocation6 + $0x788] sm:$0xff] }
 0x174   : > { %4071 = vmatpush2.bf16.msra.mxu0 %v6178_v48  ;;  %4112 = vmatpush2.bf16.msra.mxu1 %v6306_v49  ;;  %v6012_v48 = vcombine.low %v1037_v29, %v1041_v30  ;;  %v5877_v49 = vcombine.high %v901_v36, %v905_v37  ;;  %v861_v30 = vld [vmem:[#allocation6 + $0x48] sm:$0xff] }
 0x175   : > { %4072 = vmatprep.subr.bf16.mxu0 %v6171_v50  ;;  %4113 = vmatprep.subr.bf16.mxu1 %v6299_v51  ;;  %v893_v50 = vld [vmem:[#allocation6 + $0x148] sm:$0xff] }
 0x176   : > { %v897_v51 = vld [vmem:[#allocation6 + $0x168] sm:$0xff] }
 0x177   : > { %v5868_v5 = vcombine.low %v893_v50, %v897_v51  ;;  %v853_v37 = vld [vmem:[#allocation6 + $0x8] sm:$0xff] }
 0x178   : > { %4073 = vmatpush2.bf16.msra.mxu0 %v6170_v58  ;;  %4114 = vmatpush2.bf16.msra.mxu1 %v6298_v60  ;;  %v6004_v58 = vcombine.low %v1029_v43, %v1033_v46  ;;  %v5869_v60 = vcombine.high %v893_v50, %v897_v51  ;;  %v981_v43 = vld [vmem:[#allocation6 + $0x408] sm:$0xff] }
 0x179   : > { %4074 = vmatprep.subr.bf16.mxu0 %v6163_v62  ;;  %4115 = vmatprep.subr.bf16.mxu1 %v6291_v63  ;;  %v5997_v62 = vcombine.high %v1021_v54, %v1025_v55  ;;  %v885_v63 = vld [vmem:[#allocation6 + $0x108] sm:$0xff] }
 0x17a   : > { %v5860_v19 = vcombine.low %v885_v63, %v889_v1  ;;  %v985_v46 = vld [vmem:[#allocation6 + $0x428] sm:$0xff] }
 0x17b   : > { %v5957_v51 = vcombine.high %v981_v43, %v985_v46  ;;  %v977_v54 = vld [vmem:[#allocation6 + $0x3e8] sm:$0xff] }
 0x17c   : > { %4075 = vmatpush2.bf16.msra.mxu0 %v6162_v7  ;;  %4116 = vmatpush2.bf16.msra.mxu1 %v6290_v0  ;;  %v5861_v7 = vcombine.high %v885_v63, %v889_v1  ;;  %v877_v0 = vld [vmem:[#allocation6 + $0xc8] sm:$0xff] }
 0x17d   : > { %4076 = vmatprep.subr.bf16.mxu0 %v6155_v10  ;;  %4117 = vmatprep.subr.bf16.mxu1 %v6283_v11  ;;  %v881_v10 = vld [vmem:[#allocation6 + $0xe8] sm:$0xff] }
 0x17e   : > { %v1005_v11 = vld [vmem:[#allocation6 + $0x4c8] sm:$0xff]  ;;  %v5853_v21 = vcombine.high %v877_v0, %v881_v10 }
 0x17f   : > { %v5981_v22 = vcombine.high %v1005_v11, %v1009_v18  ;;  %v5980_v27 = vcombine.low %v1005_v11, %v1009_v18  ;;  %v1101_v55 = vld [vmem:[#allocation6 + $0x7c8] sm:$0xff] }
 0x180   : > { %4077 = vmatpush2.bf16.msra.mxu0 %v6154_v23  ;;  %4118 = vmatpush2.bf16.msra.mxu1 %v6282_v25  ;;  %v869_v23 = vld [vmem:[#allocation6 + $0x88] sm:$0xff] }
 0x181   : > { %4078 = vmatprep.subr.bf16.mxu0 %v6147_v14  ;;  %4119 = vmatprep.subr.bf16.mxu1 %v6275_v26  ;;  %v997_v25 = vld [vmem:[#allocation6 + $0x488] sm:$0xff]  ;;  %v5852_v26 = vcombine.low %v877_v0, %v881_v10  ;;  %v5845_v28 = vcombine.high %v869_v23, %v873_v24 }
 0x182   : > { %v1001_v14 = vld [vmem:[#allocation6 + $0x4a8] sm:$0xff] }
 0x183   : > { %v5973_v29 = vcombine.high %v997_v25, %v1001_v14  ;;  %v965_v1 = vld [vmem:[#allocation6 + $0x388] sm:$0xff] }
 0x184   : > { %4079 = vmatpush2.bf16.msra.mxu0 %v6146_v32  ;;  %4120 = vmatpush2.bf16.msra.mxu1 %v6274_v8  ;;  %v989_v32 = vld [vmem:[#allocation6 + $0x448] sm:$0xff]  ;;  %v5844_v8 = vcombine.low %v869_v23, %v873_v24 }
 0x185   : > { %4130 = vmatprep.subr.bf16.mxu0 %v5885_v35  ;;  %4171 = vmatprep.subr.bf16.mxu1 %v6013_v3  ;;  %v5972_v35 = vcombine.low %v997_v25, %v1001_v14  ;;  %v5837_v3 = vcombine.high %v861_v30, %v865_v31  ;;  %v5965_v36 = vcombine.high %v989_v32, %v993_v33  ;;  %v957_v10 = vld [vmem:[#allocation6 + $0x348] sm:$0xff] }
 0x186   : > { %v961_v11 = vld [vmem:[#allocation6 + $0x368] sm:$0xff] }
 0x187   : > { %4081 = vmatmul.mubr.bf16.vlgmr.msra.gmra.mxu0 %v7179_v47  ;;  %4122 = vmatmul.mubr.bf16.vlgmr.msra.gmra.mxu1 %v7177_v39  ;;  %v1085_v18 = vld [vmem:[#allocation6 + $0x748] sm:$0xff] }
 0x188   : > { %4131 = vmatpush1.bf16.msra.mxu0 %v5884_v40  ;;  %4162 = vmatprep.mubr.bf16.mxu0 %v7139_v42  ;;  %v857_v40 = vld [vmem:[#allocation6 + $0x28] sm:$0xff] }
 0x189   : > { %4172 = vmatpush1.bf16.msra.mxu1 %v6012_v48  ;;  %4203 = vmatprep.mubr.bf16.mxu1 %v7143_v45  ;;  %v5836_v48 = vcombine.low %v861_v30, %v865_v31  ;;  %v5829_v50 = vcombine.high %v853_v37, %v857_v40  ;;  %v949_v24 = vld [vmem:[#allocation6 + $0x308] sm:$0xff] }
 0x18a   : > { %4132 = vmatprep.subr.bf16.mxu0 %v5877_v49  ;;  %4173 = vmatprep.subr.bf16.mxu1 %v6005_v52  ;;  %v5964_v49 = vcombine.low %v989_v32, %v993_v33  ;;  %v973_v52 = vld [vmem:[#allocation6 + $0x3c8] sm:$0xff] }
 0x18b   : > { %v953_v25 = vld [vmem:[#allocation6 + $0x328] sm:$0xff] }
 0x18c   : > { %4133 = vmatpush1.bf16.msra.mxu0 %v5876_v57  ;;  %v1105_v57 = vld [vmem:[#allocation6 + $0x7e8] sm:$0xff] }
 0x18d   : > { %4174 = vmatpush1.bf16.msra.mxu1 %v6004_v58  ;;  %4134 = vmatprep.subr.bf16.mxu0 %v5869_v60  ;;  %v5828_v58 = vcombine.low %v853_v37, %v857_v40  ;;  %v5956_v60 = vcombine.low %v981_v43, %v985_v46  ;;  %v6077_v63 = vcombine.high %v1101_v55, %v1105_v57  ;;  %v1077_v14 = vld [vmem:[#allocation6 + $0x708] sm:$0xff] }
 0x18e   : > { %4175 = vmatprep.subr.bf16.mxu1 %v5997_v62  ;;  %v5949_v62 = vcombine.high %v973_v52, %v977_v54  ;;  %v941_v31 = vld [vmem:[#allocation6 + $0x2c8] sm:$0xff] }
 0x18f   : > { %v945_v32 = vld [vmem:[#allocation6 + $0x2e8] sm:$0xff] }
 0x190   : > { %4135 = vmatpush1.bf16.msra.mxu0 %v5868_v5  ;;  %v1097_v5 = vld [vmem:[#allocation6 + $0x7a8] sm:$0xff] }
 0x191   : > { %4176 = vmatpush1.bf16.msra.mxu1 %v5996_v6  ;;  %4136 = vmatprep.subr.bf16.mxu0 %v5861_v7  ;;  %v5948_v6 = vcombine.low %v973_v52, %v977_v54  ;;  %v6076_v7 = vcombine.low %v1101_v55, %v1105_v57  ;;  %v6069_v0 = vcombine.high %v1093_v4, %v1097_v5  ;;  %v1069_v33 = vld [vmem:[#allocation6 + $0x6c8] sm:$0xff] }
 0x192   : > { %4177 = vmatprep.subr.bf16.mxu1 %v5989_v9  ;;  %v5941_v9 = vcombine.high %v965_v1, %v969_v2  ;;  %v933_v40 = vld [vmem:[#allocation6 + $0x288] sm:$0xff] }
 0x193   : > { %v937_v43 = vld [vmem:[#allocation6 + $0x2a8] sm:$0xff] }
 0x194   : > { %4137 = vmatpush1.bf16.msra.mxu0 %v5860_v19  ;;  %v1089_v19 = vld [vmem:[#allocation6 + $0x768] sm:$0xff] }
 0x195   : > { %4178 = vmatpush1.bf16.msra.mxu1 %v5988_v20  ;;  %4138 = vmatprep.subr.bf16.mxu0 %v5853_v21  ;;  %v5940_v20 = vcombine.low %v965_v1, %v969_v2  ;;  %v6068_v21 = vcombine.low %v1093_v4, %v1097_v5  ;;  %v6061_v23 = vcombine.high %v1085_v18, %v1089_v19  ;;  %v1061_v46 = vld [vmem:[#allocation6 + $0x688] sm:$0xff] }
 0x196   : > { %4179 = vmatprep.subr.bf16.mxu1 %v5981_v22  ;;  %v5933_v22 = vcombine.high %v957_v10, %v961_v11  ;;  %v925_v54 = vld [vmem:[#allocation6 + $0x248] sm:$0xff] }
 0x197   : > { %v929_v55 = vld [vmem:[#allocation6 + $0x268] sm:$0xff] }
 0x198   : > { %4139 = vmatpush1.bf16.msra.mxu0 %v5852_v26  ;;  %v1081_v26 = vld [vmem:[#allocation6 + $0x728] sm:$0xff] }
 0x199   : > { %4180 = vmatpush1.bf16.msra.mxu1 %v5980_v27  ;;  %4140 = vmatprep.subr.bf16.mxu0 %v5845_v28  ;;  %v5932_v27 = vcombine.low %v957_v10, %v961_v11  ;;  %v6060_v28 = vcombine.low %v1085_v18, %v1089_v19  ;;  %v6053_v30 = vcombine.high %v1077_v14, %v1081_v26  ;;  %v1053_v57 = vld [vmem:[#allocation6 + $0x648] sm:$0xff] }
 0x19a   : > { %4181 = vmatprep.subr.bf16.mxu1 %v5973_v29  ;;  %v5925_v29 = vcombine.high %v949_v24, %v953_v25  ;;  %v917_v2 = vld [vmem:[#allocation6 + $0x208] sm:$0xff] }
 0x19b   : > { %v921_v4 = vld [vmem:[#allocation6 + $0x228] sm:$0xff] }
 0x19c   : > { %4141 = vmatpush1.bf16.msra.mxu0 %v5844_v8  ;;  %v1073_v8 = vld [vmem:[#allocation6 + $0x6e8] sm:$0xff] }
 0x19d   : > { %4182 = vmatpush1.bf16.msra.mxu1 %v5972_v35  ;;  %4142 = vmatprep.subr.bf16.mxu0 %v5837_v3  ;;  %v5924_v35 = vcombine.low %v949_v24, %v953_v25  ;;  %v6052_v3 = vcombine.low %v1077_v14, %v1081_v26  ;;  %v6045_v37 = vcombine.high %v1069_v33, %v1073_v8  ;;  %v1045_v5 = vld [vmem:[#allocation6 + $0x608] sm:$0xff] }
 0x19e   : > { %4183 = vmatprep.subr.bf16.mxu1 %v5965_v36  ;;  %v5917_v36 = vcombine.high %v941_v31, %v945_v32  ;;  %v1165_v11 = vld [vmem:[#allocation6 + $0x9c8] sm:$0xff] }
 0x19f   : > { %v1169_v18 = vld [vmem:[#allocation6 + $0x9e8] sm:$0xff] }
 0x1a0   : > { %4143 = vmatpush1.bf16.msra.mxu0 %v5836_v48  ;;  %v1065_v48 = vld [vmem:[#allocation6 + $0x6a8] sm:$0xff]  ;;  %v6140_v26 = vcombine.low %v1165_v11, %v1169_v18 }
 0x1a1   : > { %4184 = vmatpush1.bf16.msra.mxu1 %v5964_v49  ;;  %4144 = vmatprep.subr.bf16.mxu0 %v5829_v50  ;;  %v5916_v49 = vcombine.low %v941_v31, %v945_v32  ;;  %v6044_v50 = vcombine.low %v1069_v33, %v1073_v8  ;;  %v6037_v52 = vcombine.high %v1061_v46, %v1065_v48  ;;  %v1293_v19 = vld [vmem:[#allocation6 + $0xdc8] sm:$0xff] }
 0x1a2   : > { %4185 = vmatprep.subr.bf16.mxu1 %v5957_v51  ;;  %v5909_v51 = vcombine.high %v933_v40, %v937_v43  ;;  %v1157_v25 = vld [vmem:[#allocation6 + $0x988] sm:$0xff] }
 0x1a3   : > { %v1161_v14 = vld [vmem:[#allocation6 + $0x9a8] sm:$0xff] }
 0x1a4   : > { %4145 = vmatpush1.bf16.msra.mxu0 %v5828_v58  ;;  %v1057_v58 = vld [vmem:[#allocation6 + $0x668] sm:$0xff] }
 0x1a5   : > { %4186 = vmatpush1.bf16.msra.mxu1 %v5956_v60  ;;  %4146 = vmatprep.subr.bf16.mxu0 %v5949_v62  ;;  %v5908_v60 = vcombine.low %v933_v40, %v937_v43  ;;  %v6036_v62 = vcombine.low %v1061_v46, %v1065_v48  ;;  %v6029_v1 = vcombine.high %v1053_v57, %v1057_v58  ;;  %v1149_v31 = vld [vmem:[#allocation6 + $0x948] sm:$0xff] }
 0x1a6   : > { %4187 = vmatprep.subr.bf16.mxu1 %v6077_v63  ;;  %v5901_v63 = vcombine.high %v925_v54, %v929_v55  ;;  %v1153_v32 = vld [vmem:[#allocation6 + $0x968] sm:$0xff] }
 0x1a7   : > { %v1277_v8 = vld [vmem:[#allocation6 + $0xd48] sm:$0xff] }
 0x1a8   : > { %4147 = vmatpush2.bf16.msra.mxu0 %v5948_v6  ;;  %v1049_v6 = vld [vmem:[#allocation6 + $0x628] sm:$0xff] }
 0x1a9   : > { %4188 = vmatpush2.bf16.msra.mxu1 %v6076_v7  ;;  %4148 = vmatprep.subr.bf16.mxu0 %v5941_v9  ;;  %v5900_v7 = vcombine.low %v925_v54, %v929_v55  ;;  %v6028_v9 = vcombine.low %v1053_v57, %v1057_v58  ;;  %v6021_v10 = vcombine.high %v1045_v5, %v1049_v6  ;;  %v1141_v43 = vld [vmem:[#allocation6 + $0x908] sm:$0xff] }
 0x1aa   : > { %4189 = vmatprep.subr.bf16.mxu1 %v6069_v0  ;;  %v5893_v0 = vcombine.high %v917_v2, %v921_v4  ;;  %v1145_v46 = vld [vmem:[#allocation6 + $0x928] sm:$0xff] }
 0x1ab   : > { %v1269_v48 = vld [vmem:[#allocation6 + $0xd08] sm:$0xff] }
 0x1ac   : > { %4149 = vmatpush2.bf16.msra.mxu0 %v5940_v20  ;;  %v1297_v20 = vld [vmem:[#allocation6 + $0xde8] sm:$0xff] }
 0x1ad   : > { %4190 = vmatpush2.bf16.msra.mxu1 %v6068_v21  ;;  %4150 = vmatprep.subr.bf16.mxu0 %v5933_v22  ;;  %v5892_v21 = vcombine.low %v917_v2, %v921_v4  ;;  %v6020_v22 = vcombine.low %v1045_v5, %v1049_v6  ;;  %v6269_v24 = vcombine.high %v1293_v19, %v1297_v20  ;;  %v1133_v55 = vld [vmem:[#allocation6 + $0x8c8] sm:$0xff] }
 0x1ae   : > { %4191 = vmatprep.subr.bf16.mxu1 %v6061_v23  ;;  %v6141_v23 = vcombine.high %v1165_v11, %v1169_v18  ;;  %v1137_v57 = vld [vmem:[#allocation6 + $0x8e8] sm:$0xff] }
 0x1af   : > { %v1261_v58 = vld [vmem:[#allocation6 + $0xcc8] sm:$0xff] }
 0x1b0   : > { %4151 = vmatpush2.bf16.msra.mxu0 %v5932_v27  ;;  %v1285_v27 = vld [vmem:[#allocation6 + $0xd88] sm:$0xff] }
 0x1b1   : > { %4192 = vmatpush2.bf16.msra.mxu1 %v6060_v28  ;;  %4152 = vmatprep.subr.bf16.mxu0 %v5925_v29  ;;  %v1289_v28 = vld [vmem:[#allocation6 + $0xda8] sm:$0xff]  ;;  %v6268_v29 = vcombine.low %v1293_v19, %v1297_v20 }
 0x1b2   : > { %4193 = vmatprep.subr.bf16.mxu1 %v6053_v30  ;;  %v6133_v30 = vcombine.high %v1157_v25, %v1161_v14  ;;  %v6261_v33 = vcombine.high %v1285_v27, %v1289_v28  ;;  %v1125_v4 = vld [vmem:[#allocation6 + $0x888] sm:$0xff] }
 0x1b3   : > { %v1129_v5 = vld [vmem:[#allocation6 + $0x8a8] sm:$0xff] }
 0x1b4   : > { %4153 = vmatpush2.bf16.msra.mxu0 %v5924_v35  ;;  %v1281_v35 = vld [vmem:[#allocation6 + $0xd68] sm:$0xff] }
 0x1b5   : > { %4194 = vmatpush2.bf16.msra.mxu1 %v6052_v3  ;;  %4154 = vmatprep.subr.bf16.mxu0 %v5917_v36  ;;  %v6132_v3 = vcombine.low %v1157_v25, %v1161_v14  ;;  %v6260_v36 = vcombine.low %v1285_v27, %v1289_v28  ;;  %v6253_v40 = vcombine.high %v1277_v8, %v1281_v35  ;;  %v1253_v6 = vld [vmem:[#allocation6 + $0xc88] sm:$0xff] }
 0x1b6   : > { %4195 = vmatprep.subr.bf16.mxu1 %v6045_v37  ;;  %v6125_v37 = vcombine.high %v1149_v31, %v1153_v32  ;;  %v1117_v18 = vld [vmem:[#allocation6 + $0x848] sm:$0xff] }
 0x1b7   : > { %v1121_v19 = vld [vmem:[#allocation6 + $0x868] sm:$0xff] }
 0x1b8   : > { %4155 = vmatpush2.bf16.msra.mxu0 %v5916_v49  ;;  %v1273_v49 = vld [vmem:[#allocation6 + $0xd28] sm:$0xff] }
 0x1b9   : > { %4196 = vmatpush2.bf16.msra.mxu1 %v6044_v50  ;;  %4156 = vmatprep.subr.bf16.mxu0 %v5909_v51  ;;  %v6124_v50 = vcombine.low %v1149_v31, %v1153_v32  ;;  %v6252_v51 = vcombine.low %v1277_v8, %v1281_v35  ;;  %v6245_v54 = vcombine.high %v1269_v48, %v1273_v49  ;;  %v1245_v20 = vld [vmem:[#allocation6 + $0xc48] sm:$0xff] }
 0x1ba   : > { %4197 = vmatprep.subr.bf16.mxu1 %v6037_v52  ;;  %v6117_v52 = vcombine.high %v1141_v43, %v1145_v46  ;;  %v1109_v14 = vld [vmem:[#allocation6 + $0x808] sm:$0xff] }
 0x1bb   : > { %v1237_v27 = vld [vmem:[#allocation6 + $0xc08] sm:$0xff] }
 0x1bc   : > { %4157 = vmatpush2.bf16.msra.mxu0 %v5908_v60  ;;  %v1265_v60 = vld [vmem:[#allocation6 + $0xce8] sm:$0xff] }
 0x1bd   : > { %4198 = vmatpush2.bf16.msra.mxu1 %v6036_v62  ;;  %4158 = vmatprep.subr.bf16.mxu0 %v5901_v63  ;;  %v6116_v62 = vcombine.low %v1141_v43, %v1145_v46  ;;  %v6244_v63 = vcombine.low %v1269_v48, %v1273_v49  ;;  %v6237_v2 = vcombine.high %v1261_v58, %v1265_v60  ;;  %v1241_v28 = vld [vmem:[#allocation6 + $0xc28] sm:$0xff] }
 0x1be   : > { %4199 = vmatprep.subr.bf16.mxu1 %v6029_v1  ;;  %v6109_v1 = vcombine.high %v1133_v55, %v1137_v57  ;;  %v6213_v32 = vcombine.high %v1237_v27, %v1241_v28  ;;  %v1233_v8 = vld [vmem:[#allocation6 + $0xbe8] sm:$0xff] }
 0x1bf   : > { %v1357_v35 = vld [vmem:[#allocation6 + $0xfc8] sm:$0xff] }
 0x1c0   : > { %4159 = vmatpush2.bf16.msra.mxu0 %v5900_v7  ;;  %v1257_v7 = vld [vmem:[#allocation6 + $0xca8] sm:$0xff] }
 0x1c1   : > { %4200 = vmatpush2.bf16.msra.mxu1 %v6028_v9  ;;  %4160 = vmatprep.subr.bf16.mxu0 %v5893_v0  ;;  %v6108_v9 = vcombine.low %v1133_v55, %v1137_v57  ;;  %v6236_v0 = vcombine.low %v1261_v58, %v1265_v60  ;;  %v6229_v11 = vcombine.high %v1253_v6, %v1257_v7  ;;  %v1221_v46 = vld [vmem:[#allocation6 + $0xb88] sm:$0xff] }
 0x1c2   : > { %4201 = vmatprep.subr.bf16.mxu1 %v6021_v10  ;;  %v6101_v10 = vcombine.high %v1125_v4, %v1129_v5  ;;  %v1225_v48 = vld [vmem:[#allocation6 + $0xba8] sm:$0xff] }
 0x1c3   : > { %v1349_v49 = vld [vmem:[#allocation6 + $0xf88] sm:$0xff] }
 0x1c4   : > { %4161 = vmatpush2.bf16.msra.mxu0 %v5892_v21  ;;  %v1249_v21 = vld [vmem:[#allocation6 + $0xc68] sm:$0xff] }
 0x1c5   : > { %4202 = vmatpush2.bf16.msra.mxu1 %v6020_v22  ;;  %4212 = vmatprep.subr.bf16.mxu0 %v6141_v23  ;;  %v6100_v22 = vcombine.low %v1125_v4, %v1129_v5  ;;  %v6228_v23 = vcombine.low %v1253_v6, %v1257_v7  ;;  %v6221_v25 = vcombine.high %v1245_v20, %v1249_v21  ;;  %v1213_v57 = vld [vmem:[#allocation6 + $0xb48] sm:$0xff] }
 0x1c6   : > { %4253 = vmatprep.subr.bf16.mxu1 %v6269_v24  ;;  %v6093_v24 = vcombine.high %v1117_v18, %v1121_v19  ;;  %v1217_v58 = vld [vmem:[#allocation6 + $0xb68] sm:$0xff] }
 0x1c7   : > { %4163 = vmatmul.mubr.bf16.vlgmr.msra.gmra.mxu0 %v7141_v44  ;;  %v1341_v60 = vld [vmem:[#allocation6 + $0xf48] sm:$0xff] }
 0x1c8   : > { %4204 = vmatmul.mubr.bf16.vlgmr.msra.gmra.mxu1 %v7137_v41  ;;  %4213 = vmatpush1.bf16.msra.mxu0 %v6140_v26  ;;  %v1113_v26 = vld [vmem:[#allocation6 + $0x828] sm:$0xff] }
 0x1c9   : > { %4244 = vmatprep.mubr.bf16.mxu0 %v7161_v34  ;;  %4254 = vmatpush1.bf16.msra.mxu1 %v6268_v29  ;;  %v6092_v29 = vcombine.low %v1117_v18, %v1121_v19  ;;  %v6085_v31 = vcombine.high %v1109_v14, %v1113_v26  ;;  %v1205_v5 = vld [vmem:[#allocation6 + $0xb08] sm:$0xff] }
 0x1ca   : > { %4285 = vmatprep.mubr.bf16.mxu1 %v7163_v38  ;;  %4214 = vmatprep.subr.bf16.mxu0 %v6133_v30  ;;  %v6220_v30 = vcombine.low %v1245_v20, %v1249_v21  ;;  %v1209_v6 = vld [vmem:[#allocation6 + $0xb28] sm:$0xff] }
 0x1cb   : > { %4255 = vmatprep.subr.bf16.mxu1 %v6261_v33  ;;  %v1229_v33 = vld [vmem:[#allocation6 + $0xbc8] sm:$0xff] }
 0x1cc   : > { %4215 = vmatpush1.bf16.msra.mxu0 %v6132_v3  ;;  %v1361_v3 = vld [vmem:[#allocation6 + $0xfe8] sm:$0xff] }
 0x1cd   : > { %4256 = vmatpush1.bf16.msra.mxu1 %v6260_v36  ;;  %4216 = vmatprep.subr.bf16.mxu0 %v6125_v37  ;;  %v6084_v36 = vcombine.low %v1109_v14, %v1113_v26  ;;  %v6212_v37 = vcombine.low %v1237_v27, %v1241_v28  ;;  %v6333_v43 = vcombine.high %v1357_v35, %v1361_v3  ;;  %v1333_v7 = vld [vmem:[#allocation6 + $0xf08] sm:$0xff] }
 0x1ce   : > { %4257 = vmatprep.subr.bf16.mxu1 %v6253_v40  ;;  %v6205_v40 = vcombine.high %v1229_v33, %v1233_v8  ;;  %v1197_v19 = vld [vmem:[#allocation6 + $0xac8] sm:$0xff] }
 0x1cf   : > { %v1201_v20 = vld [vmem:[#allocation6 + $0xae8] sm:$0xff] }
 0x1d0   : > { %4217 = vmatpush1.bf16.msra.mxu0 %v6124_v50  ;;  %v1353_v50 = vld [vmem:[#allocation6 + $0xfa8] sm:$0xff] }
 0x1d1   : > { %4258 = vmatpush1.bf16.msra.mxu1 %v6252_v51  ;;  %4218 = vmatprep.subr.bf16.mxu0 %v6117_v52  ;;  %v6204_v51 = vcombine.low %v1229_v33, %v1233_v8  ;;  %v6332_v52 = vcombine.low %v1357_v35, %v1361_v3  ;;  %v6325_v55 = vcombine.high %v1349_v49, %v1353_v50  ;;  %v1325_v21 = vld [vmem:[#allocation6 + $0xec8] sm:$0xff] }
 0x1d2   : > { %4259 = vmatprep.subr.bf16.mxu1 %v6245_v54  ;;  %v6197_v54 = vcombine.high %v1221_v46, %v1225_v48  ;;  %v1189_v26 = vld [vmem:[#allocation6 + $0xa88] sm:$0xff] }
 0x1d3   : > { %v1193_v27 = vld [vmem:[#allocation6 + $0xaa8] sm:$0xff] }
 0x1d4   : > { %4219 = vmatpush1.bf16.msra.mxu0 %v6116_v62  ;;  %v1345_v62 = vld [vmem:[#allocation6 + $0xf68] sm:$0xff] }
 0x1d5   : > { %4260 = vmatpush1.bf16.msra.mxu1 %v6244_v63  ;;  %4220 = vmatprep.subr.bf16.mxu0 %v6109_v1  ;;  %v6196_v63 = vcombine.low %v1221_v46, %v1225_v48  ;;  %v6324_v1 = vcombine.low %v1349_v49, %v1353_v50  ;;  %v6317_v4 = vcombine.high %v1341_v60, %v1345_v62  ;;  %v1317_v28 = vld [vmem:[#allocation6 + $0xe88] sm:$0xff] }
 0x1d6   : > { %4261 = vmatprep.subr.bf16.mxu1 %v6237_v2  ;;  %v6189_v2 = vcombine.high %v1213_v57, %v1217_v58  ;;  %v1181_v8 = vld [vmem:[#allocation6 + $0xa48] sm:$0xff] }
 0x1d7   : > { %v1185_v35 = vld [vmem:[#allocation6 + $0xa68] sm:$0xff] }
 0x1d8   : > { %4221 = vmatpush1.bf16.msra.mxu0 %v6108_v9  ;;  %v1337_v9 = vld [vmem:[#allocation6 + $0xf28] sm:$0xff] }
 0x1d9   : > { %4262 = vmatpush1.bf16.msra.mxu1 %v6236_v0  ;;  %4222 = vmatprep.subr.bf16.mxu0 %v6101_v10  ;;  %v6188_v0 = vcombine.low %v1213_v57, %v1217_v58  ;;  %v6316_v10 = vcombine.low %v1341_v60, %v1345_v62  ;;  %v6309_v18 = vcombine.high %v1333_v7, %v1337_v9  ;;  %v1309_v3 = vld [vmem:[#allocation6 + $0xe48] sm:$0xff]  ;;  %v910_v58 = vld [vmem:[#allocation6 + $0x1d0] sm:$0xff] }
 0x1da   : > { %4263 = vmatprep.subr.bf16.mxu1 %v6229_v11  ;;  %v6181_v11 = vcombine.high %v1205_v5, %v1209_v6  ;;  %v1173_v48 = vld [vmem:[#allocation6 + $0xa08] sm:$0xff]  ;;  %v914_v60 = vld [vmem:[#allocation6 + $0x1f0] sm:$0xff] }
 0x1db   : > { %v1177_v49 = vld [vmem:[#allocation6 + $0xa28] sm:$0xff]  ;;  %v1038_v62 = vld [vmem:[#allocation6 + $0x5d0] sm:$0xff] }
 0x1dc   : > { %4223 = vmatpush1.bf16.msra.mxu0 %v6100_v22  ;;  %v1329_v22 = vld [vmem:[#allocation6 + $0xee8] sm:$0xff] }
 0x1dd   : > { %4264 = vmatpush1.bf16.msra.mxu1 %v6228_v23  ;;  %4224 = vmatprep.subr.bf16.mxu0 %v6093_v24  ;;  %v6180_v23 = vcombine.low %v1205_v5, %v1209_v6  ;;  %v6308_v24 = vcombine.low %v1333_v7, %v1337_v9  ;;  %v6301_v14 = vcombine.high %v1325_v21, %v1329_v22  ;;  %v1301_v50 = vld [vmem:[#allocation6 + $0xe08] sm:$0xff]  ;;  %v7189_v5 = vld [vmem:[#allocation7] sm:$0xff]  ;;  %v902_v7 = vld [vmem:[#allocation6 + $0x190] sm:$0xff] }
 0x1de   : > { %4265 = vmatprep.subr.bf16.mxu1 %v6221_v25  ;;  %v6173_v25 = vcombine.high %v1197_v19, %v1201_v20  ;;  %v906_v9 = vld [vmem:[#allocation6 + $0x1b0] sm:$0xff] }
 0x1e0   : > { %4225 = vmatpush1.bf16.msra.mxu0 %v6092_v29  ;;  %v1321_v29 = vld [vmem:[#allocation6 + $0xea8] sm:$0xff] }
 0x1e1   : > { %4266 = vmatpush1.bf16.msra.mxu1 %v6220_v30  ;;  %4226 = vmatprep.subr.bf16.mxu0 %v6085_v31  ;;  %v6172_v30 = vcombine.low %v1197_v19, %v1201_v20  ;;  %v6300_v31 = vcombine.low %v1325_v21, %v1329_v22  ;;  %v6293_v33 = vcombine.high %v1317_v28, %v1321_v29  ;;  %v894_v22 = vld [vmem:[#allocation6 + $0x150] sm:$0xff] }
 0x1e2   : > { %4267 = vmatprep.subr.bf16.mxu1 %v6213_v32  ;;  %v6165_v32 = vcombine.high %v1189_v26, %v1193_v27  ;;  %v1373_v20 = vrot.slane %v7189_v5, %v7124_v16  ;;  %v5879_v21 = vcombine.high %v902_v7, %v906_v9 }
 0x1e4   : > { %4227 = vmatpush1.bf16.msra.mxu0 %v6084_v36  ;;  %v1313_v36 = vld [vmem:[#allocation6 + $0xe68] sm:$0xff] }
 0x1e5   : > { %4268 = vmatpush1.bf16.msra.mxu1 %v6212_v37  ;;  %4228 = vmatprep.subr.bf16.mxu0 %v6205_v40  ;;  %v6164_v37 = vcombine.low %v1189_v26, %v1193_v27  ;;  %v6292_v40 = vcombine.low %v1317_v28, %v1321_v29  ;;  %v6285_v46 = vcombine.high %v1309_v3, %v1313_v36  ;;  %v1026_v26 = vld [vmem:[#allocation6 + $0x570] sm:$0xff] }
 0x1e6   : > { %4269 = vmatprep.subr.bf16.mxu1 %v6333_v43  ;;  %v6157_v43 = vcombine.high %v1181_v8, %v1185_v35  ;;  %v5878_v29 = vcombine.low %v902_v7, %v906_v9  ;;  %v870_v7 = vld [vmem:[#allocation6 + $0x90] sm:$0xff] }
 0x1e7   : > { %v874_v9 = vld [vmem:[#allocation6 + $0xb0] sm:$0xff] }
 0x1e8   : > { %4229 = vmatpush2.bf16.msra.mxu0 %v6204_v51  ;;  %v1305_v51 = vld [vmem:[#allocation6 + $0xe28] sm:$0xff] }
 0x1e9   : > { %4270 = vmatpush2.bf16.msra.mxu1 %v6332_v52  ;;  %4230 = vmatprep.subr.bf16.mxu0 %v6197_v54  ;;  %v6156_v52 = vcombine.low %v1181_v8, %v1185_v35  ;;  %v6284_v54 = vcombine.low %v1309_v3, %v1313_v36  ;;  %v6277_v57 = vcombine.high %v1301_v50, %v1305_v51  ;;  %v886_v36 = vld [vmem:[#allocation6 + $0x110] sm:$0xff] }
 0x1ea   : > { %4271 = vmatprep.subr.bf16.mxu1 %v6325_v55  ;;  %v6149_v55 = vcombine.high %v1173_v48, %v1177_v49 }
 0x1ec   : > { %4231 = vmatpush2.bf16.msra.mxu0 %v6196_v63  ;;  %v1042_v63 = vld [vmem:[#allocation6 + $0x5f0] sm:$0xff] }
 0x1ed   : > { %4272 = vmatpush2.bf16.msra.mxu1 %v6324_v1  ;;  %4232 = vmatprep.subr.bf16.mxu0 %v6189_v2  ;;  %v6148_v1 = vcombine.low %v1173_v48, %v1177_v49  ;;  %v6276_v2 = vcombine.low %v1301_v50, %v1305_v51  ;;  %v6015_v6 = vcombine.high %v1038_v62, %v1042_v63 }
 0x1ee   : > { %4273 = vmatprep.subr.bf16.mxu1 %v6317_v4  ;;  %v5887_v4 = vcombine.high %v910_v58, %v914_v60  ;;  %v6014_v19 = vcombine.low %v1038_v62, %v1042_v63  ;;  %v1006_v62 = vld [vmem:[#allocation6 + $0x4d0] sm:$0xff] }
 0x1ef   : > { %v1010_v63 = vld [vmem:[#allocation6 + $0x4f0] sm:$0xff] }
 0x1f0   : > { %4233 = vmatpush2.bf16.msra.mxu0 %v6188_v0  ;;  %v5886_v0 = vcombine.low %v910_v58, %v914_v60  ;;  %v878_v58 = vld [vmem:[#allocation6 + $0xd0] sm:$0xff] }
 0x1f1   : > { %4274 = vmatpush2.bf16.msra.mxu1 %v6316_v10  ;;  %4234 = vmatprep.subr.bf16.mxu0 %v6181_v11  ;;  %v1369_v10 = vrot.slane %v7189_v5, %v7118_v13  ;;  %v1030_v11 = vld [vmem:[#allocation6 + $0x590] sm:$0xff] }
 0x1f2   : > { %4275 = vmatprep.subr.bf16.mxu1 %v6309_v18  ;;  %v1034_v18 = vld [vmem:[#allocation6 + $0x5b0] sm:$0xff] }
 0x1f3   : > { %v882_v60 = vld [vmem:[#allocation6 + $0xf0] sm:$0xff] }
 0x1f4   : > { %4235 = vmatpush2.bf16.msra.mxu0 %v6180_v23  ;;  %v898_v23 = vld [vmem:[#allocation6 + $0x170] sm:$0xff] }
 0x1f5   : > { %4276 = vmatpush2.bf16.msra.mxu1 %v6308_v24  ;;  %4236 = vmatprep.subr.bf16.mxu0 %v6173_v25  ;;  %v6007_v25 = vcombine.high %v1030_v11, %v1034_v18  ;;  %v5870_v50 = vcombine.low %v894_v22, %v898_v23 }
 0x1f6   : > { %4277 = vmatprep.subr.bf16.mxu1 %v6301_v14  ;;  %v1022_v14 = vld [vmem:[#allocation6 + $0x550] sm:$0xff] }
 0x1f7   : > { %v5999_v3 = vcombine.high %v1022_v14, %v1026_v26 }
 0x1f8   : > { %4237 = vmatpush2.bf16.msra.mxu0 %v6172_v30 }
 0x1f9   : > { %4278 = vmatpush2.bf16.msra.mxu1 %v6300_v31  ;;  %4238 = vmatprep.subr.bf16.mxu0 %v6165_v32  ;;  %v6006_v31 = vcombine.low %v1030_v11, %v1034_v18  ;;  %v5871_v32 = vcombine.high %v894_v22, %v898_v23  ;;  %v5854_v11 = vcombine.low %v878_v58, %v882_v60  ;;  %v866_v22 = vld [vmem:[#allocation6 + $0x70] sm:$0xff] }
 0x1fa   : > { %4279 = vmatprep.subr.bf16.mxu1 %v6293_v33  ;;  %v5982_v18 = vcombine.low %v1006_v62, %v1010_v63  ;;  %v990_v23 = vld [vmem:[#allocation6 + $0x450] sm:$0xff] }
 0x1fc   : > { %4239 = vmatpush2.bf16.msra.mxu0 %v6164_v37  ;;  %v890_v37 = vld [vmem:[#allocation6 + $0x130] sm:$0xff] }
 0x1fd   : > { %4280 = vmatpush2.bf16.msra.mxu1 %v6292_v40  ;;  %4240 = vmatprep.subr.bf16.mxu0 %v6157_v43  ;;  %v1014_v43 = vld [vmem:[#allocation6 + $0x510] sm:$0xff] }
 0x1fe   : > { %4281 = vmatprep.subr.bf16.mxu1 %v6285_v46  ;;  %v1018_v46 = vld [vmem:[#allocation6 + $0x530] sm:$0xff] }
 0x200   : > { %4241 = vmatpush2.bf16.msra.mxu0 %v6156_v52  ;;  %v5998_v52 = vcombine.low %v1022_v14, %v1026_v26 }
 0x201   : > { %4282 = vmatpush2.bf16.msra.mxu1 %v6284_v54  ;;  %4242 = vmatprep.subr.bf16.mxu0 %v6149_v55  ;;  %v5863_v54 = vcombine.high %v886_v36, %v890_v37 }
 0x202   : > { %4283 = vmatprep.subr.bf16.mxu1 %v6277_v57  ;;  %v5991_v57 = vcombine.high %v1014_v43, %v1018_v46 }
 0x204   : > { %4243 = vmatpush2.bf16.msra.mxu0 %v6148_v1  ;;  %v5862_v1 = vcombine.low %v886_v36, %v890_v37  ;;  %v974_v36 = vld [vmem:[#allocation6 + $0x3d0] sm:$0xff] }
 0x205   : > { %4284 = vmatpush2.bf16.msra.mxu1 %v6276_v2  ;;  %4294 = vmatprep.subr.bf16.mxu0 %v5887_v4  ;;  %v5990_v2 = vcombine.low %v1014_v43, %v1018_v46  ;;  %v5855_v4 = vcombine.high %v878_v58, %v882_v60  ;;  %v978_v37 = vld [vmem:[#allocation6 + $0x3f0] sm:$0xff] }
 0x206   : > { %4335 = vmatprep.subr.bf16.mxu1 %v6015_v6  ;;  %v5983_v6 = vcombine.high %v1006_v62, %v1010_v63  ;;  %v1106_v43 = vld [vmem:[#allocation6 + $0x7f0] sm:$0xff]  ;;  %v5950_v58 = vcombine.low %v974_v36, %v978_v37 }
 0x207   : > { %4245 = vmatmul.mubr.bf16.vlgmr.msra.gmra.mxu0 %v7179_v47  ;;  %v4000_v24 = vpop.f32.mrf.mxu0  ;;  %v4041_v28 = vpop.f32.mrf.mxu1 }
 0x208   : > { %4286 = vmatmul.mubr.bf16.vlgmr.msra.gmra.mxu1 %v7177_v39  ;;  %v4001_v27 = vadd.f32 %v4000_v24, %v1369_v10  ;;  %4295 = vmatpush1.bf16.msra.mxu0 %v5886_v0  ;;  %v998_v0 = vld [vmem:[#allocation6 + $0x490] sm:$0xff] }
 0x209   : > { %4326 = vmatprep.mubr.bf16.mxu0 %v7139_v42  ;;  %4336 = vmatpush1.bf16.msra.mxu1 %v6014_v19  ;;  %v4002_v30 = vpop.f32.mrf.mxu0  ;;  %v4043_v35 = vpop.f32.mrf.mxu1  ;;  %v1002_v10 = vld [vmem:[#allocation6 + $0x4b0] sm:$0xff]  ;;  %v5847_v19 = vcombine.high %v870_v7, %v874_v9 }
 0x20a   : > { %v7198_v33 = vadd.f32 %v4041_v28, %v4001_v27  ;;  %4367 = vmatprep.mubr.bf16.mxu1 %v7143_v45  ;;  %v4003_v8 = vadd.f32 %v4002_v30, %v1373_v20  ;;  %4296 = vmatprep.subr.bf16.mxu0 %v5879_v21  ;;  %v5975_v20 = vcombine.high %v998_v0, %v1002_v10  ;;  %v862_v21 = vld [vmem:[#allocation6 + $0x50] sm:$0xff] }
 0x20b   : > { %4337 = vmatprep.subr.bf16.mxu1 %v6007_v25  ;;  %v4004_v40 = vpop.f32.mrf.mxu0  ;;  %v4045_v49 = vpop.f32.mrf.mxu1  ;;  %v994_v24 = vld [vmem:[#allocation6 + $0x470] sm:$0xff]  ;;  %v5846_v25 = vcombine.low %v870_v7, %v874_v9  ;;  %v5974_v14 = vcombine.low %v998_v0, %v1002_v10  ;;  %v5839_v26 = vcombine.high %v862_v21, %v866_v22 }
 0x20c   : > { %v7201_v48 = vadd.f32 %v4043_v35, %v4003_v8  ;;  %4297 = vmatpush1.bf16.msra.mxu0 %v5878_v29  ;;  %v5967_v27 = vcombine.high %v990_v23, %v994_v24  ;;  %v854_v28 = vld [vmem:[#allocation6 + $0x10] sm:$0xff]  ;;  %v5966_v8 = vcombine.low %v990_v23, %v994_v24 }
 0x20d   : > { %4338 = vmatpush1.bf16.msra.mxu1 %v6006_v31  ;;  %v4005_v51 = vpop.f32.mrf.mxu0  ;;  %4298 = vmatprep.subr.bf16.mxu0 %v5871_v32  ;;  %v4046_v55 = vpop.f32.mrf.mxu1  ;;  %v858_v29 = vld [vmem:[#allocation6 + $0x30] sm:$0xff]  ;;  %v5838_v32 = vcombine.low %v862_v21, %v866_v22 }
 0x20e   : > { %4339 = vmatprep.subr.bf16.mxu1 %v5999_v3  ;;  %v982_v30 = vld [vmem:[#allocation6 + $0x410] sm:$0xff]  ;;  %v5831_v35 = vcombine.high %v854_v28, %v858_v29  ;;  %v5830_v46 = vcombine.low %v854_v28, %v858_v29 }
 0x20f   : > { %v986_v31 = vld [vmem:[#allocation6 + $0x430] sm:$0xff] }
 0x210   : > { %4299 = vmatpush1.bf16.msra.mxu0 %v5870_v50  ;;  %v5959_v3 = vcombine.high %v982_v30, %v986_v31  ;;  %v1102_v40 = vld [vmem:[#allocation6 + $0x7d0] sm:$0xff]  ;;  %v5958_v49 = vcombine.low %v982_v30, %v986_v31  ;;  %v5951_v50 = vcombine.high %v974_v36, %v978_v37 }
 0x211   : > { %4340 = vmatpush1.bf16.msra.mxu1 %v5998_v52  ;;  %4300 = vmatprep.subr.bf16.mxu0 %v5863_v54  ;;  %v6079_v51 = vcombine.high %v1102_v40, %v1106_v43  ;;  %v966_v52 = vld [vmem:[#allocation6 + $0x390] sm:$0xff]  ;;  %v6078_v60 = vcombine.low %v1102_v40, %v1106_v43 }
 0x212   : > { %4341 = vmatprep.subr.bf16.mxu1 %v5991_v57  ;;  %v970_v54 = vld [vmem:[#allocation6 + $0x3b0] sm:$0xff] }
 0x213   : > { %v1094_v55 = vld [vmem:[#allocation6 + $0x790] sm:$0xff]  ;;  %v5943_v62 = vcombine.high %v966_v52, %v970_v54  ;;  %v5942_v7 = vcombine.low %v966_v52, %v970_v54 }
 0x214   : > { %4301 = vmatpush1.bf16.msra.mxu0 %v5862_v1  ;;  %v1098_v57 = vld [vmem:[#allocation6 + $0x7b0] sm:$0xff] }
 0x215   : > { %4342 = vmatpush1.bf16.msra.mxu1 %v5990_v2  ;;  %4302 = vmatprep.subr.bf16.mxu0 %v5855_v4  ;;  %v6071_v63 = vcombine.high %v1094_v55, %v1098_v57  ;;  %v958_v1 = vld [vmem:[#allocation6 + $0x350] sm:$0xff]  ;;  %v6070_v9 = vcombine.low %v1094_v55, %v1098_v57 }
 0x216   : > { %4343 = vmatprep.subr.bf16.mxu1 %v5983_v6  ;;  %v962_v2 = vld [vmem:[#allocation6 + $0x370] sm:$0xff] }
 0x217   : > { %v1086_v4 = vld [vmem:[#allocation6 + $0x750] sm:$0xff]  ;;  %v5935_v0 = vcombine.high %v958_v1, %v962_v2  ;;  %v5934_v21 = vcombine.low %v958_v1, %v962_v2 }
 0x218   : > { %4303 = vmatpush1.bf16.msra.mxu0 %v5854_v11  ;;  %v1090_v6 = vld [vmem:[#allocation6 + $0x770] sm:$0xff] }
 0x219   : > { %4344 = vmatpush1.bf16.msra.mxu1 %v5982_v18  ;;  %4304 = vmatprep.subr.bf16.mxu0 %v5847_v19  ;;  %v6063_v10 = vcombine.high %v1086_v4, %v1090_v6  ;;  %v950_v11 = vld [vmem:[#allocation6 + $0x310] sm:$0xff]  ;;  %v6062_v22 = vcombine.low %v1086_v4, %v1090_v6 }
 0x21a   : > { %4345 = vmatprep.subr.bf16.mxu1 %v5975_v20  ;;  %v954_v18 = vld [vmem:[#allocation6 + $0x330] sm:$0xff] }
 0x21b   : > { %v1078_v19 = vld [vmem:[#allocation6 + $0x710] sm:$0xff]  ;;  %v5927_v23 = vcombine.high %v950_v11, %v954_v18  ;;  %v5926_v28 = vcombine.low %v950_v11, %v954_v18 }
 0x21c   : > { %4305 = vmatpush1.bf16.msra.mxu0 %v5846_v25  ;;  %v1082_v20 = vld [vmem:[#allocation6 + $0x730] sm:$0xff] }
 0x21d   : > { %4346 = vmatpush1.bf16.msra.mxu1 %v5974_v14  ;;  %4306 = vmatprep.subr.bf16.mxu0 %v5839_v26  ;;  %v6055_v24 = vcombine.high %v1078_v19, %v1082_v20  ;;  %v942_v25 = vld [vmem:[#allocation6 + $0x2d0] sm:$0xff]  ;;  %v6054_v29 = vcombine.low %v1078_v19, %v1082_v20 }
 0x21e   : > { %4347 = vmatprep.subr.bf16.mxu1 %v5967_v27  ;;  %v946_v14 = vld [vmem:[#allocation6 + $0x2f0] sm:$0xff] }
 0x21f   : > { %v1070_v26 = vld [vmem:[#allocation6 + $0x6d0] sm:$0xff]  ;;  %v5919_v30 = vcombine.high %v942_v25, %v946_v14  ;;  %v5918_v36 = vcombine.low %v942_v25, %v946_v14 }
 0x220   : > { %4307 = vmatpush1.bf16.msra.mxu0 %v5838_v32  ;;  %v1074_v27 = vld [vmem:[#allocation6 + $0x6f0] sm:$0xff] }
 0x221   : > { %4348 = vmatpush1.bf16.msra.mxu1 %v5966_v8  ;;  %4308 = vmatprep.subr.bf16.mxu0 %v5831_v35  ;;  %v6047_v31 = vcombine.high %v1070_v26, %v1074_v27  ;;  %v934_v32 = vld [vmem:[#allocation6 + $0x290] sm:$0xff]  ;;  %v6046_v37 = vcombine.low %v1070_v26, %v1074_v27 }
 0x222   : > { %4349 = vmatprep.subr.bf16.mxu1 %v5959_v3  ;;  %v938_v8 = vld [vmem:[#allocation6 + $0x2b0] sm:$0xff] }
 0x223   : > { %v1062_v35 = vld [vmem:[#allocation6 + $0x690] sm:$0xff]  ;;  %v5911_v40 = vcombine.high %v934_v32, %v938_v8  ;;  %v5910_v52 = vcombine.low %v934_v32, %v938_v8 }
 0x224   : > { %4309 = vmatpush1.bf16.msra.mxu0 %v5830_v46  ;;  %v1066_v3 = vld [vmem:[#allocation6 + $0x6b0] sm:$0xff] }
 0x225   : > { %4350 = vmatpush1.bf16.msra.mxu1 %v5958_v49  ;;  %4310 = vmatprep.subr.bf16.mxu0 %v5951_v50  ;;  %v6039_v43 = vcombine.high %v1062_v35, %v1066_v3  ;;  %v926_v46 = vld [vmem:[#allocation6 + $0x250] sm:$0xff]  ;;  %v6038_v54 = vcombine.low %v1062_v35, %v1066_v3 }
 0x226   : > { %4351 = vmatprep.subr.bf16.mxu1 %v6079_v51  ;;  %v930_v49 = vld [vmem:[#allocation6 + $0x270] sm:$0xff] }
 0x227   : > { %v1054_v50 = vld [vmem:[#allocation6 + $0x650] sm:$0xff]  ;;  %v5903_v55 = vcombine.high %v926_v46, %v930_v49  ;;  %v5902_v1 = vcombine.low %v926_v46, %v930_v49 }
 0x228   : > { %4311 = vmatpush2.bf16.msra.mxu0 %v5950_v58  ;;  %v1058_v51 = vld [vmem:[#allocation6 + $0x670] sm:$0xff] }
 0x229   : > { %4352 = vmatpush2.bf16.msra.mxu1 %v6078_v60  ;;  %4312 = vmatprep.subr.bf16.mxu0 %v5943_v62  ;;  %v6031_v57 = vcombine.high %v1054_v50, %v1058_v51  ;;  %v918_v58 = vld [vmem:[#allocation6 + $0x210] sm:$0xff]  ;;  %v6030_v2 = vcombine.low %v1054_v50, %v1058_v51 }
 0x22a   : > { %4353 = vmatprep.subr.bf16.mxu1 %v6071_v63  ;;  %v922_v60 = vld [vmem:[#allocation6 + $0x230] sm:$0xff] }
 0x22b   : > { %v1046_v62 = vld [vmem:[#allocation6 + $0x610] sm:$0xff]  ;;  %v5895_v4 = vcombine.high %v918_v58, %v922_v60  ;;  %v5894_v11 = vcombine.low %v918_v58, %v922_v60 }
 0x22c   : > { %4313 = vmatpush2.bf16.msra.mxu0 %v5942_v7  ;;  %v1050_v63 = vld [vmem:[#allocation6 + $0x630] sm:$0xff] }
 0x22d   : > { %4354 = vmatpush2.bf16.msra.mxu1 %v6070_v9  ;;  %4314 = vmatprep.subr.bf16.mxu0 %v5935_v0  ;;  %v6023_v6 = vcombine.high %v1046_v62, %v1050_v63  ;;  %v1166_v7 = vld [vmem:[#allocation6 + $0x9d0] sm:$0xff]  ;;  %v6022_v18 = vcombine.low %v1046_v62, %v1050_v63 }
 0x22e   : > { %4355 = vmatprep.subr.bf16.mxu1 %v6063_v10  ;;  %v1170_v9 = vld [vmem:[#allocation6 + $0x9f0] sm:$0xff] }
 0x22f   : > { %v1294_v0 = vld [vmem:[#allocation6 + $0xdd0] sm:$0xff]  ;;  %v6143_v19 = vcombine.high %v1166_v7, %v1170_v9 }
 0x230   : > { %4315 = vmatpush2.bf16.msra.mxu0 %v5934_v21  ;;  %v1298_v10 = vld [vmem:[#allocation6 + $0xdf0] sm:$0xff] }
 0x231   : > { %4356 = vmatpush2.bf16.msra.mxu1 %v6062_v22  ;;  %4316 = vmatprep.subr.bf16.mxu0 %v5927_v23  ;;  %v6271_v20 = vcombine.high %v1294_v0, %v1298_v10  ;;  %v1158_v21 = vld [vmem:[#allocation6 + $0x990] sm:$0xff]  ;;  %v6142_v23 = vcombine.low %v1166_v7, %v1170_v9  ;;  %v6270_v14 = vcombine.low %v1294_v0, %v1298_v10 }
 0x232   : > { %4357 = vmatprep.subr.bf16.mxu1 %v6055_v24  ;;  %v1162_v22 = vld [vmem:[#allocation6 + $0x9b0] sm:$0xff] }
 0x233   : > { %v1286_v24 = vld [vmem:[#allocation6 + $0xd90] sm:$0xff]  ;;  %v6135_v26 = vcombine.high %v1158_v21, %v1162_v22  ;;  %v6134_v3 = vcombine.low %v1158_v21, %v1162_v22 }
 0x234   : > { %4317 = vmatpush2.bf16.msra.mxu0 %v5926_v28  ;;  %v1290_v25 = vld [vmem:[#allocation6 + $0xdb0] sm:$0xff] }
 0x235   : > { %4358 = vmatpush2.bf16.msra.mxu1 %v6054_v29  ;;  %4318 = vmatprep.subr.bf16.mxu0 %v5919_v30  ;;  %v1150_v27 = vld [vmem:[#allocation6 + $0x950] sm:$0xff]  ;;  %v6263_v30 = vcombine.high %v1286_v24, %v1290_v25 }
 0x236   : > { %4359 = vmatprep.subr.bf16.mxu1 %v6047_v31  ;;  %v1154_v28 = vld [vmem:[#allocation6 + $0x970] sm:$0xff] }
 0x237   : > { %v1278_v31 = vld [vmem:[#allocation6 + $0xd50] sm:$0xff]  ;;  %v6126_v60 = vcombine.low %v1150_v27, %v1154_v28 }
 0x238   : > { %4319 = vmatpush2.bf16.msra.mxu0 %v5918_v36  ;;  %v1282_v32 = vld [vmem:[#allocation6 + $0xd70] sm:$0xff] }
 0x239   : > { %4360 = vmatpush2.bf16.msra.mxu1 %v6046_v37  ;;  %4320 = vmatprep.subr.bf16.mxu0 %v5911_v40  ;;  %v6262_v37 = vcombine.low %v1286_v24, %v1290_v25  ;;  %v6127_v40 = vcombine.high %v1150_v27, %v1154_v28  ;;  %v1142_v50 = vld [vmem:[#allocation6 + $0x910] sm:$0xff]  ;;  %v6254_v63 = vcombine.low %v1278_v31, %v1282_v32 }
 0x23a   : > { %4361 = vmatprep.subr.bf16.mxu1 %v6039_v43  ;;  %v1146_v51 = vld [vmem:[#allocation6 + $0x930] sm:$0xff] }
 0x23b   : > { %v1262_v7 = vld [vmem:[#allocation6 + $0xcd0] sm:$0xff]  ;;  %v6118_v0 = vcombine.low %v1142_v50, %v1146_v51 }
 0x23c   : > { %4321 = vmatpush2.bf16.msra.mxu0 %v5910_v52  ;;  %v1266_v9 = vld [vmem:[#allocation6 + $0xcf0] sm:$0xff] }
 0x23d   : > { %4362 = vmatpush2.bf16.msra.mxu1 %v6038_v54  ;;  %4322 = vmatprep.subr.bf16.mxu0 %v5903_v55  ;;  %v1270_v54 = vld [vmem:[#allocation6 + $0xd10] sm:$0xff]  ;;  %v6238_v24 = vcombine.low %v1262_v7, %v1266_v9 }
 0x23e   : > { %4363 = vmatprep.subr.bf16.mxu1 %v6031_v57  ;;  %v1274_v55 = vld [vmem:[#allocation6 + $0xd30] sm:$0xff] }
 0x23f   : > { %v6246_v10 = vcombine.low %v1270_v54, %v1274_v55  ;;  %v1254_v21 = vld [vmem:[#allocation6 + $0xc90] sm:$0xff] }
 0x240   : > { %4323 = vmatpush2.bf16.msra.mxu0 %v5902_v1  ;;  %v6119_v1 = vcombine.high %v1142_v50, %v1146_v51  ;;  %v1258_v22 = vld [vmem:[#allocation6 + $0xcb0] sm:$0xff] }
 0x241   : > { %4364 = vmatpush2.bf16.msra.mxu1 %v6030_v2  ;;  %4324 = vmatprep.subr.bf16.mxu0 %v5895_v4  ;;  %v6247_v2 = vcombine.high %v1270_v54, %v1274_v55  ;;  %v1134_v4 = vld [vmem:[#allocation6 + $0x8d0] sm:$0xff] }
 0x242   : > { %4365 = vmatprep.subr.bf16.mxu1 %v6023_v6  ;;  %v1138_v6 = vld [vmem:[#allocation6 + $0x8f0] sm:$0xff] }
 0x243   : > { %v1122_v27 = vld [vmem:[#allocation6 + $0x870] sm:$0xff] }
 0x244   : > { %4325 = vmatpush2.bf16.msra.mxu0 %v5894_v11  ;;  %v6111_v11 = vcombine.high %v1134_v4, %v1138_v6  ;;  %v1246_v28 = vld [vmem:[#allocation6 + $0xc50] sm:$0xff] }
 0x245   : > { %4366 = vmatpush2.bf16.msra.mxu1 %v6022_v18  ;;  %4376 = vmatprep.subr.bf16.mxu0 %v6143_v19  ;;  %v6239_v18 = vcombine.high %v1262_v7, %v1266_v9  ;;  %v1126_v19 = vld [vmem:[#allocation6 + $0x890] sm:$0xff] }
 0x246   : > { %4417 = vmatprep.subr.bf16.mxu1 %v6271_v20  ;;  %v1130_v20 = vld [vmem:[#allocation6 + $0x8b0] sm:$0xff] }
 0x247   : > { %v4082_v29 = vpop.f32.mrf.mxu0  ;;  %4327 = vmatmul.mubr.bf16.vlgmr.msra.gmra.mxu0 %v7141_v44  ;;  %v4123_v35 = vpop.f32.mrf.mxu1  ;;  %v6103_v25 = vcombine.high %v1126_v19, %v1130_v20  ;;  %v1230_v50 = vld [vmem:[#allocation6 + $0xbd0] sm:$0xff] }
 0x248   : > { %v4083_v8 = vadd.f32 %v4082_v29, %v7198_v33  ;;  %4368 = vmatmul.mubr.bf16.vlgmr.msra.gmra.mxu1 %v7137_v41  ;;  %4377 = vmatpush1.bf16.msra.mxu0 %v6142_v23  ;;  %v6255_v33 = vcombine.high %v1278_v31, %v1282_v32  ;;  %v6110_v23 = vcombine.low %v1134_v4, %v1138_v6  ;;  %v1250_v29 = vld [vmem:[#allocation6 + $0xc70] sm:$0xff] }
 0x249   : > { %4408 = vmatprep.mubr.bf16.mxu0 %v7161_v34  ;;  %4418 = vmatpush1.bf16.msra.mxu1 %v6270_v14  ;;  %v4084_v36 = vpop.f32.mrf.mxu0  ;;  %v4125_v49 = vpop.f32.mrf.mxu1  ;;  %v6231_v14 = vcombine.high %v1254_v21, %v1258_v22  ;;  %v6230_v31 = vcombine.low %v1254_v21, %v1258_v22  ;;  %v1234_v51 = vld [vmem:[#allocation6 + $0xbf0] sm:$0xff] }
 0x24a   : > { %v7207_v43 = vadd.f32 %v4123_v35, %v4083_v8  ;;  %4449 = vmatprep.mubr.bf16.mxu1 %v7163_v38  ;;  %v4085_v46 = vadd.f32 %v4084_v36, %v7201_v48  ;;  %4378 = vmatprep.subr.bf16.mxu0 %v6135_v26  ;;  %v1118_v26 = vld [vmem:[#allocation6 + $0x850] sm:$0xff]  ;;  %v6223_v8 = vcombine.high %v1246_v28, %v1250_v29 }
 0x24b   : > { %v4086_v52 = vpop.f32.mrf.mxu0  ;;  %4419 = vmatprep.subr.bf16.mxu1 %v6263_v30  ;;  %v4127_v58 = vpop.f32.mrf.mxu1  ;;  %v6102_v30 = vcombine.low %v1126_v19, %v1130_v20  ;;  %v6095_v32 = vcombine.high %v1118_v26, %v1122_v27  ;;  %v1110_v35 = vld [vmem:[#allocation6 + $0x810] sm:$0xff]  ;;  %v6206_v4 = vcombine.low %v1230_v50, %v1234_v51 }
 0x24c   : > { %v7211_v57 = vadd.f32 %v4125_v49, %v4085_v46  ;;  %4379 = vmatpush1.bf16.msra.mxu0 %v6134_v3  ;;  %v1114_v3 = vld [vmem:[#allocation6 + $0x830] sm:$0xff]  ;;  %v6222_v46 = vcombine.low %v1246_v28, %v1250_v29 }
 0x24d   : > { %4420 = vmatpush1.bf16.msra.mxu1 %v6262_v37  ;;  %v4087_v62 = vpop.f32.mrf.mxu0  ;;  %4380 = vmatprep.subr.bf16.mxu0 %v6127_v40  ;;  %v4128_v48 = vpop.f32.mrf.mxu1  ;;  %v1238_v36 = vld [vmem:[#allocation6 + $0xc10] sm:$0xff]  ;;  %v6094_v40 = vcombine.low %v1118_v26, %v1122_v27  ;;  %v6087_v49 = vcombine.high %v1110_v35, %v1114_v3  ;;  %v6086_v55 = vcombine.low %v1110_v35, %v1114_v3 }
 0x24e   : > { %4421 = vmatprep.subr.bf16.mxu1 %v6255_v33  ;;  %v1242_v37 = vld [vmem:[#allocation6 + $0xc30] sm:$0xff] }
 0x24f   : > { %v6215_v33 = vcombine.high %v1238_v36, %v1242_v37  ;;  %v1358_v52 = vld [vmem:[#allocation6 + $0xfd0] sm:$0xff]  ;;  %v6214_v58 = vcombine.low %v1238_v36, %v1242_v37 }
 0x250   : > { %4381 = vmatpush1.bf16.msra.mxu0 %v6126_v60  ;;  %v1362_v54 = vld [vmem:[#allocation6 + $0xff0] sm:$0xff]  ;;  %v6207_v60 = vcombine.high %v1230_v50, %v1234_v51 }
 0x251   : > { %4422 = vmatpush1.bf16.msra.mxu1 %v6254_v63  ;;  %4382 = vmatprep.subr.bf16.mxu0 %v6119_v1  ;;  %v6335_v62 = vcombine.high %v1358_v52, %v1362_v54  ;;  %v1222_v63 = vld [vmem:[#allocation6 + $0xb90] sm:$0xff]  ;;  %v6334_v6 = vcombine.low %v1358_v52, %v1362_v54 }
 0x252   : > { %4423 = vmatprep.subr.bf16.mxu1 %v6247_v2  ;;  %v1226_v1 = vld [vmem:[#allocation6 + $0xbb0] sm:$0xff] }
 0x253   : > { %v1350_v48 = vld [vmem:[#allocation6 + $0xf90] sm:$0xff]  ;;  %v6199_v7 = vcombine.high %v1222_v63, %v1226_v1  ;;  %v6198_v19 = vcombine.low %v1222_v63, %v1226_v1 }
 0x254   : > { %4383 = vmatpush1.bf16.msra.mxu0 %v6118_v0  ;;  %v1354_v2 = vld [vmem:[#allocation6 + $0xfb0] sm:$0xff] }
 0x255   : > { %4424 = vmatpush1.bf16.msra.mxu1 %v6246_v10  ;;  %4384 = vmatprep.subr.bf16.mxu0 %v6111_v11  ;;  %v6327_v9 = vcombine.high %v1350_v48, %v1354_v2  ;;  %v1214_v0 = vld [vmem:[#allocation6 + $0xb50] sm:$0xff]  ;;  %v6326_v20 = vcombine.low %v1350_v48, %v1354_v2 }
 0x256   : > { %4425 = vmatprep.subr.bf16.mxu1 %v6239_v18  ;;  %v1218_v10 = vld [vmem:[#allocation6 + $0xb70] sm:$0xff] }
 0x257   : > { %v1342_v11 = vld [vmem:[#allocation6 + $0xf50] sm:$0xff]  ;;  %v6191_v21 = vcombine.high %v1214_v0, %v1218_v10  ;;  %v6190_v26 = vcombine.low %v1214_v0, %v1218_v10 }
 0x258   : > { %4385 = vmatpush1.bf16.msra.mxu0 %v6110_v23  ;;  %v1346_v18 = vld [vmem:[#allocation6 + $0xf70] sm:$0xff] }
 0x259   : > { %4426 = vmatpush1.bf16.msra.mxu1 %v6238_v24  ;;  %4386 = vmatprep.subr.bf16.mxu0 %v6103_v25  ;;  %v6319_v22 = vcombine.high %v1342_v11, %v1346_v18  ;;  %v1206_v23 = vld [vmem:[#allocation6 + $0xb10] sm:$0xff]  ;;  %v6318_v27 = vcombine.low %v1342_v11, %v1346_v18 }
 0x25a   : > { %4427 = vmatprep.subr.bf16.mxu1 %v6231_v14  ;;  %v1210_v24 = vld [vmem:[#allocation6 + $0xb30] sm:$0xff] }
 0x25b   : > { %v1334_v25 = vld [vmem:[#allocation6 + $0xf10] sm:$0xff]  ;;  %v6183_v28 = vcombine.high %v1206_v23, %v1210_v24  ;;  %v6182_v35 = vcombine.low %v1206_v23, %v1210_v24 }
 0x25c   : > { %4387 = vmatpush1.bf16.msra.mxu0 %v6102_v30  ;;  %v1338_v14 = vld [vmem:[#allocation6 + $0xf30] sm:$0xff] }
 0x25d   : > { %4428 = vmatpush1.bf16.msra.mxu1 %v6230_v31  ;;  %4388 = vmatprep.subr.bf16.mxu0 %v6095_v32  ;;  %v6311_v29 = vcombine.high %v1334_v25, %v1338_v14  ;;  %v1198_v30 = vld [vmem:[#allocation6 + $0xad0] sm:$0xff]  ;;  %v6310_v3 = vcombine.low %v1334_v25, %v1338_v14 }
 0x25e   : > { %4429 = vmatprep.subr.bf16.mxu1 %v6223_v8  ;;  %v1202_v31 = vld [vmem:[#allocation6 + $0xaf0] sm:$0xff] }
 0x25f   : > { %v1326_v32 = vld [vmem:[#allocation6 + $0xed0] sm:$0xff]  ;;  %v6175_v36 = vcombine.high %v1198_v30, %v1202_v31  ;;  %v6174_v50 = vcombine.low %v1198_v30, %v1202_v31  ;;  %v1031_v30 = vld [vmem:[#allocation6 + $0x598] sm:$0xff] }
 0x260   : > { %4389 = vmatpush1.bf16.msra.mxu0 %v6094_v40  ;;  %v1330_v8 = vld [vmem:[#allocation6 + $0xef0] sm:$0xff]  ;;  %v1035_v31 = vld [vmem:[#allocation6 + $0x5b8] sm:$0xff] }
 0x261   : > { %4430 = vmatpush1.bf16.msra.mxu1 %v6222_v46  ;;  %4390 = vmatprep.subr.bf16.mxu0 %v6087_v49  ;;  %v6303_v37 = vcombine.high %v1326_v32, %v1330_v8  ;;  %v1190_v40 = vld [vmem:[#allocation6 + $0xa90] sm:$0xff]  ;;  %v6302_v51 = vcombine.low %v1326_v32, %v1330_v8  ;;  %v1381_v8 = vrot.slane %v7189_v5, %v482_v17 }
 0x262   : > { %4431 = vmatprep.subr.bf16.mxu1 %v6215_v33  ;;  %v1194_v46 = vld [vmem:[#allocation6 + $0xab0] sm:$0xff]  ;;  %v6008_v17 = vcombine.low %v1031_v30, %v1035_v31 }
 0x263   : > { %v1318_v49 = vld [vmem:[#allocation6 + $0xe90] sm:$0xff]  ;;  %v6167_v52 = vcombine.high %v1190_v40, %v1194_v46  ;;  %v6166_v63 = vcombine.low %v1190_v40, %v1194_v46  ;;  %v6009_v40 = vcombine.high %v1031_v30, %v1035_v31  ;;  %v1023_v46 = vld [vmem:[#allocation6 + $0x558] sm:$0xff] }
 0x264   : > { %4391 = vmatpush1.bf16.msra.mxu0 %v6086_v55  ;;  %v1322_v33 = vld [vmem:[#allocation6 + $0xeb0] sm:$0xff]  ;;  %v863_v31 = vld [vmem:[#allocation6 + $0x58] sm:$0xff] }
 0x265   : > { %4432 = vmatpush1.bf16.msra.mxu1 %v6214_v58  ;;  %4392 = vmatprep.subr.bf16.mxu0 %v6207_v60  ;;  %v6295_v54 = vcombine.high %v1318_v49, %v1322_v33  ;;  %v1182_v55 = vld [vmem:[#allocation6 + $0xa50] sm:$0xff]  ;;  %v6294_v1 = vcombine.low %v1318_v49, %v1322_v33 }
 0x266   : > { %4433 = vmatprep.subr.bf16.mxu1 %v6335_v62  ;;  %v1186_v58 = vld [vmem:[#allocation6 + $0xa70] sm:$0xff] }
 0x267   : > { %v1310_v60 = vld [vmem:[#allocation6 + $0xe50] sm:$0xff]  ;;  %v6159_v48 = vcombine.high %v1182_v55, %v1186_v58  ;;  %v6158_v0 = vcombine.low %v1182_v55, %v1186_v58 }
 0x268   : > { %4393 = vmatpush2.bf16.msra.mxu0 %v6206_v4  ;;  %v1314_v62 = vld [vmem:[#allocation6 + $0xe70] sm:$0xff] }
 0x269   : > { %4434 = vmatpush2.bf16.msra.mxu1 %v6334_v6  ;;  %4394 = vmatprep.subr.bf16.mxu0 %v6199_v7  ;;  %v6287_v2 = vcombine.high %v1310_v60, %v1314_v62  ;;  %v1174_v4 = vld [vmem:[#allocation6 + $0xa10] sm:$0xff]  ;;  %v6286_v10 = vcombine.low %v1310_v60, %v1314_v62  ;;  %v887_v60 = vld [vmem:[#allocation6 + $0x118] sm:$0xff] }
 0x26a   : > { %4435 = vmatprep.subr.bf16.mxu1 %v6327_v9  ;;  %v1178_v6 = vld [vmem:[#allocation6 + $0xa30] sm:$0xff]  ;;  %v891_v62 = vld [vmem:[#allocation6 + $0x138] sm:$0xff] }
 0x26b   : > { %v1302_v7 = vld [vmem:[#allocation6 + $0xe10] sm:$0xff]  ;;  %v6151_v11 = vcombine.high %v1174_v4, %v1178_v6  ;;  %v6150_v23 = vcombine.low %v1174_v4, %v1178_v6 }
 0x26c   : > { %4395 = vmatpush2.bf16.msra.mxu0 %v6198_v19  ;;  %v1306_v9 = vld [vmem:[#allocation6 + $0xe30] sm:$0xff]  ;;  %v911_v19 = vld [vmem:[#allocation6 + $0x1d8] sm:$0xff] }
 0x26d   : > { %4436 = vmatpush2.bf16.msra.mxu1 %v6326_v20  ;;  %4396 = vmatprep.subr.bf16.mxu0 %v6191_v21  ;;  %v6279_v18 = vcombine.high %v1302_v7, %v1306_v9  ;;  %v915_v20 = vld [vmem:[#allocation6 + $0x1f8] sm:$0xff]  ;;  %v6278_v24 = vcombine.low %v1302_v7, %v1306_v9 }
 0x26e   : > { %4437 = vmatprep.subr.bf16.mxu1 %v6319_v22  ;;  %v1039_v21 = vld [vmem:[#allocation6 + $0x5d8] sm:$0xff]  ;;  %v5889_v25 = vcombine.high %v911_v19, %v915_v20 }
 0x26f   : > { %v1043_v22 = vld [vmem:[#allocation6 + $0x5f8] sm:$0xff] }
 0x270   : > { %4397 = vmatpush2.bf16.msra.mxu0 %v6190_v26  ;;  %v6017_v14 = vcombine.high %v1039_v21, %v1043_v22  ;;  %v903_v26 = vld [vmem:[#allocation6 + $0x198] sm:$0xff]  ;;  %v6016_v32 = vcombine.low %v1039_v21, %v1043_v22 }
 0x271   : > { %4438 = vmatpush2.bf16.msra.mxu1 %v6318_v27  ;;  %4398 = vmatprep.subr.bf16.mxu0 %v6183_v28  ;;  %v907_v27 = vld [vmem:[#allocation6 + $0x1b8] sm:$0xff]  ;;  %v1377_v28 = vrot.slane %v7189_v5, %v478_v15 }
 0x272   : > { %4439 = vmatprep.subr.bf16.mxu1 %v6311_v29  ;;  %v5888_v29 = vcombine.low %v911_v19, %v915_v20  ;;  %v1027_v15 = vld [vmem:[#allocation6 + $0x578] sm:$0xff]  ;;  %v5864_v20 = vcombine.low %v887_v60, %v891_v62 }
 0x273   : > { %v6001_v58 = vcombine.high %v1023_v46, %v1027_v15  ;;  %v6000_v7 = vcombine.low %v1023_v46, %v1027_v15  ;;  %v1011_v19 = vld [vmem:[#allocation6 + $0x4f8] sm:$0xff] }
 0x274   : > { %4399 = vmatpush2.bf16.msra.mxu0 %v6182_v35  ;;  %v5881_v35 = vcombine.high %v903_v26, %v907_v27  ;;  %v855_v46 = vld [vmem:[#allocation6 + $0x18] sm:$0xff] }
 0x275   : > { %4440 = vmatpush2.bf16.msra.mxu1 %v6310_v3  ;;  %4400 = vmatprep.subr.bf16.mxu0 %v6175_v36  ;;  %v895_v3 = vld [vmem:[#allocation6 + $0x158] sm:$0xff] }
 0x276   : > { %4441 = vmatprep.subr.bf16.mxu1 %v6303_v37  ;;  %v899_v36 = vld [vmem:[#allocation6 + $0x178] sm:$0xff] }
 0x277   : > { %v5873_v5 = vcombine.high %v895_v3, %v899_v36  ;;  %v5872_v4 = vcombine.low %v895_v3, %v899_v36  ;;  %v859_v15 = vld [vmem:[#allocation6 + $0x38] sm:$0xff] }
 0x278   : > { %4401 = vmatpush2.bf16.msra.mxu0 %v6174_v50  ;;  %v5880_v50 = vcombine.low %v903_v26, %v907_v27  ;;  %v1003_v26 = vld [vmem:[#allocation6 + $0x4b8] sm:$0xff] }
 0x279   : > { %4442 = vmatpush2.bf16.msra.mxu1 %v6302_v51  ;;  %4402 = vmatprep.subr.bf16.mxu0 %v6167_v52 }
 0x27a   : > { %4443 = vmatprep.subr.bf16.mxu1 %v6295_v54 }
 0x27c   : > { %4403 = vmatpush2.bf16.msra.mxu0 %v6166_v63 }
 0x27d   : > { %4444 = vmatpush2.bf16.msra.mxu1 %v6294_v1  ;;  %4404 = vmatprep.subr.bf16.mxu0 %v6159_v48  ;;  %v1015_v1 = vld [vmem:[#allocation6 + $0x518] sm:$0xff] }
 0x27e   : > { %4445 = vmatprep.subr.bf16.mxu1 %v6287_v2  ;;  %v1019_v48 = vld [vmem:[#allocation6 + $0x538] sm:$0xff] }
 0x27f   : > { %v5992_v21 = vcombine.low %v1015_v1, %v1019_v48 }
 0x280   : > { %4405 = vmatpush2.bf16.msra.mxu0 %v6158_v0  ;;  %v5993_v0 = vcombine.high %v1015_v1, %v1019_v48 }
 0x281   : > { %4446 = vmatpush2.bf16.msra.mxu1 %v6286_v10  ;;  %4406 = vmatprep.subr.bf16.mxu0 %v6151_v11  ;;  %v879_v10 = vld [vmem:[#allocation6 + $0xd8] sm:$0xff] }
 0x282   : > { %4447 = vmatprep.subr.bf16.mxu1 %v6279_v18  ;;  %v883_v11 = vld [vmem:[#allocation6 + $0xf8] sm:$0xff] }
 0x283   : > { %v1007_v18 = vld [vmem:[#allocation6 + $0x4d8] sm:$0xff]  ;;  %v5857_v22 = vcombine.high %v879_v10, %v883_v11  ;;  %v5856_v27 = vcombine.low %v879_v10, %v883_v11 }
 0x284   : > { %4407 = vmatpush2.bf16.msra.mxu0 %v6150_v23  ;;  %v5985_v23 = vcombine.high %v1007_v18, %v1011_v19  ;;  %v959_v11 = vld [vmem:[#allocation6 + $0x358] sm:$0xff] }
 0x285   : > { %4448 = vmatpush2.bf16.msra.mxu1 %v6278_v24  ;;  %4458 = vmatprep.subr.bf16.mxu0 %v5889_v25  ;;  %v871_v24 = vld [vmem:[#allocation6 + $0x98] sm:$0xff] }
 0x286   : > { %4499 = vmatprep.subr.bf16.mxu1 %v6017_v14  ;;  %v875_v25 = vld [vmem:[#allocation6 + $0xb8] sm:$0xff] }
 0x287   : > { %v4164_v37 = vpop.f32.mrf.mxu0  ;;  %4409 = vmatmul.mubr.bf16.vlgmr.msra.gmra.mxu0 %v7179_v47  ;;  %v999_v14 = vld [vmem:[#allocation6 + $0x498] sm:$0xff]  ;;  %v5848_v3 = vcombine.low %v871_v24, %v875_v25 }
 0x288   : > { %v4165_v49 = vadd.f32 %v4164_v37, %v1377_v28  ;;  %v4205_v33 = vpop.f32.mrf.mxu1  ;;  %4450 = vmatmul.mubr.bf16.vlgmr.msra.gmra.mxu1 %v7177_v39  ;;  %4459 = vmatpush1.bf16.msra.mxu0 %v5888_v29  ;;  %v5984_v28 = vcombine.low %v1007_v18, %v1011_v19  ;;  %v5849_v29 = vcombine.high %v871_v24, %v875_v25  ;;  %v963_v18 = vld [vmem:[#allocation6 + $0x378] sm:$0xff] }
 0x289   : > { %4490 = vmatprep.mubr.bf16.mxu0 %v7139_v42  ;;  %4500 = vmatpush1.bf16.msra.mxu1 %v6016_v32  ;;  %v4166_v51 = vpop.f32.mrf.mxu0  ;;  %v5977_v30 = vcombine.high %v999_v14, %v1003_v26  ;;  %v867_v32 = vld [vmem:[#allocation6 + $0x78] sm:$0xff]  ;;  %v5976_v36 = vcombine.low %v999_v14, %v1003_v26 }
 0x28a   : > { %v7222_v52 = vadd.f32 %v4205_v33, %v4165_v49  ;;  %4531 = vmatprep.mubr.bf16.mxu1 %v7143_v45  ;;  %v4167_v54 = vadd.f32 %v4166_v51, %v1381_v8  ;;  %v4207_v55 = vpop.f32.mrf.mxu1  ;;  %4460 = vmatprep.subr.bf16.mxu0 %v5881_v35  ;;  %v5865_v45 = vcombine.high %v887_v60, %v891_v62  ;;  %v991_v8 = vld [vmem:[#allocation6 + $0x458] sm:$0xff] }
 0x28b   : > { %v4168_v63 = vpop.f32.mrf.mxu0  ;;  %4501 = vmatprep.subr.bf16.mxu1 %v6009_v40  ;;  %v995_v35 = vld [vmem:[#allocation6 + $0x478] sm:$0xff]  ;;  %v5841_v37 = vcombine.high %v863_v31, %v867_v32  ;;  %v5832_v62 = vcombine.low %v855_v46, %v859_v15 }
 0x28c   : > { %v7225_v2 = vadd.f32 %v4207_v55, %v4167_v54  ;;  %v4209_v42 = vpop.f32.mrf.mxu1  ;;  %4461 = vmatpush1.bf16.msra.mxu0 %v5880_v50  ;;  %v5969_v40 = vcombine.high %v991_v8, %v995_v35  ;;  %v983_v49 = vld [vmem:[#allocation6 + $0x418] sm:$0xff]  ;;  %v5840_v50 = vcombine.low %v863_v31, %v867_v32  ;;  %v5968_v51 = vcombine.low %v991_v8, %v995_v35 }
 0x28d   : > { %4502 = vmatpush1.bf16.msra.mxu1 %v6008_v17  ;;  %v4169_v6 = vpop.f32.mrf.mxu0  ;;  %4462 = vmatprep.subr.bf16.mxu0 %v5873_v5  ;;  %v987_v33 = vld [vmem:[#allocation6 + $0x438] sm:$0xff]  ;;  %v5833_v17 = vcombine.high %v855_v46, %v859_v15 }
 0x28e   : > { %v4210_v9 = vpop.f32.mrf.mxu1  ;;  %4503 = vmatprep.subr.bf16.mxu1 %v6001_v58  ;;  %v5961_v5 = vcombine.high %v983_v49, %v987_v33  ;;  %v975_v54 = vld [vmem:[#allocation6 + $0x3d8] sm:$0xff]  ;;  %v5960_v63 = vcombine.low %v983_v49, %v987_v33 }
 0x28f   : > { %v979_v55 = vld [vmem:[#allocation6 + $0x3f8] sm:$0xff] }
 0x290   : > { %4463 = vmatpush1.bf16.msra.mxu0 %v5872_v4  ;;  %v1103_v58 = vld [vmem:[#allocation6 + $0x7d8] sm:$0xff]  ;;  %v5953_v1 = vcombine.high %v975_v54, %v979_v55 }
 0x291   : > { %4504 = vmatpush1.bf16.msra.mxu1 %v6000_v7  ;;  %4464 = vmatprep.subr.bf16.mxu0 %v5865_v45  ;;  %v1107_v60 = vld [vmem:[#allocation6 + $0x7f8] sm:$0xff]  ;;  %v5952_v45 = vcombine.low %v975_v54, %v979_v55 }
 0x292   : > { %4505 = vmatprep.subr.bf16.mxu1 %v5993_v0  ;;  %v6081_v48 = vcombine.high %v1103_v58, %v1107_v60  ;;  %v967_v42 = vld [vmem:[#allocation6 + $0x398] sm:$0xff]  ;;  %v6080_v9 = vcombine.low %v1103_v58, %v1107_v60 }
 0x293   : > { %v971_v4 = vld [vmem:[#allocation6 + $0x3b8] sm:$0xff] }
 0x294   : > { %4465 = vmatpush1.bf16.msra.mxu0 %v5864_v20  ;;  %v1095_v6 = vld [vmem:[#allocation6 + $0x798] sm:$0xff]  ;;  %v5945_v0 = vcombine.high %v967_v42, %v971_v4 }
 0x295   : > { %4506 = vmatpush1.bf16.msra.mxu1 %v5992_v21  ;;  %4466 = vmatprep.subr.bf16.mxu0 %v5857_v22  ;;  %v1099_v7 = vld [vmem:[#allocation6 + $0x7b8] sm:$0xff]  ;;  %v5944_v21 = vcombine.low %v967_v42, %v971_v4 }
 0x296   : > { %4507 = vmatprep.subr.bf16.mxu1 %v5985_v23  ;;  %v6073_v10 = vcombine.high %v1095_v6, %v1099_v7  ;;  %v1087_v19 = vld [vmem:[#allocation6 + $0x758] sm:$0xff]  ;;  %v6072_v22 = vcombine.low %v1095_v6, %v1099_v7  ;;  %v5937_v23 = vcombine.high %v959_v11, %v963_v18 }
 0x297   : > { %v1091_v20 = vld [vmem:[#allocation6 + $0x778] sm:$0xff] }
 0x298   : > { %4467 = vmatpush1.bf16.msra.mxu0 %v5856_v27  ;;  %v6065_v24 = vcombine.high %v1087_v19, %v1091_v20  ;;  %v951_v25 = vld [vmem:[#allocation6 + $0x318] sm:$0xff] }
 0x299   : > { %4508 = vmatpush1.bf16.msra.mxu1 %v5984_v28  ;;  %4468 = vmatprep.subr.bf16.mxu0 %v5849_v29  ;;  %v955_v14 = vld [vmem:[#allocation6 + $0x338] sm:$0xff]  ;;  %v5936_v28 = vcombine.low %v959_v11, %v963_v18  ;;  %v6064_v29 = vcombine.low %v1087_v19, %v1091_v20 }
 0x29a   : > { %4509 = vmatprep.subr.bf16.mxu1 %v5977_v30  ;;  %v1079_v26 = vld [vmem:[#allocation6 + $0x718] sm:$0xff]  ;;  %v5929_v30 = vcombine.high %v951_v25, %v955_v14 }
 0x29b   : > { %v1083_v27 = vld [vmem:[#allocation6 + $0x738] sm:$0xff] }
 0x29c   : > { %4469 = vmatpush1.bf16.msra.mxu0 %v5848_v3  ;;  %v6057_v31 = vcombine.high %v1079_v26, %v1083_v27  ;;  %v943_v32 = vld [vmem:[#allocation6 + $0x2d8] sm:$0xff] }
 0x29d   : > { %4510 = vmatpush1.bf16.msra.mxu1 %v5976_v36  ;;  %4470 = vmatprep.subr.bf16.mxu0 %v5841_v37  ;;  %v947_v8 = vld [vmem:[#allocation6 + $0x2f8] sm:$0xff]  ;;  %v5928_v36 = vcombine.low %v951_v25, %v955_v14  ;;  %v6056_v37 = vcombine.low %v1079_v26, %v1083_v27 }
 0x29e   : > { %4511 = vmatprep.subr.bf16.mxu1 %v5969_v40  ;;  %v1071_v35 = vld [vmem:[#allocation6 + $0x6d8] sm:$0xff]  ;;  %v5921_v40 = vcombine.high %v943_v32, %v947_v8 }
 0x29f   : > { %v1075_v3 = vld [vmem:[#allocation6 + $0x6f8] sm:$0xff] }
 0x2a0   : > { %4471 = vmatpush1.bf16.msra.mxu0 %v5840_v50  ;;  %v6049_v46 = vcombine.high %v1071_v35, %v1075_v3  ;;  %v935_v15 = vld [vmem:[#allocation6 + $0x298] sm:$0xff] }
 0x2a1   : > { %4512 = vmatpush1.bf16.msra.mxu1 %v5968_v51  ;;  %4472 = vmatprep.subr.bf16.mxu0 %v5833_v17  ;;  %v939_v49 = vld [vmem:[#allocation6 + $0x2b8] sm:$0xff]  ;;  %v5920_v51 = vcombine.low %v943_v32, %v947_v8  ;;  %v6048_v17 = vcombine.low %v1071_v35, %v1075_v3 }
 0x2a2   : > { %4513 = vmatprep.subr.bf16.mxu1 %v5961_v5  ;;  %v1063_v33 = vld [vmem:[#allocation6 + $0x698] sm:$0xff]  ;;  %v5913_v5 = vcombine.high %v935_v15, %v939_v49 }
 0x2a3   : > { %v1067_v50 = vld [vmem:[#allocation6 + $0x6b8] sm:$0xff] }
 0x2a4   : > { %4473 = vmatpush1.bf16.msra.mxu0 %v5832_v62  ;;  %v6041_v54 = vcombine.high %v1063_v33, %v1067_v50  ;;  %v927_v55 = vld [vmem:[#allocation6 + $0x258] sm:$0xff] }
 0x2a5   : > { %4514 = vmatpush1.bf16.msra.mxu1 %v5960_v63  ;;  %4474 = vmatprep.subr.bf16.mxu0 %v5953_v1  ;;  %v931_v58 = vld [vmem:[#allocation6 + $0x278] sm:$0xff]  ;;  %v5912_v63 = vcombine.low %v935_v15, %v939_v49  ;;  %v6040_v1 = vcombine.low %v1063_v33, %v1067_v50 }
 0x2a6   : > { %4515 = vmatprep.subr.bf16.mxu1 %v6081_v48  ;;  %v1055_v60 = vld [vmem:[#allocation6 + $0x658] sm:$0xff]  ;;  %v5905_v48 = vcombine.high %v927_v55, %v931_v58 }
 0x2a7   : > { %v1059_v62 = vld [vmem:[#allocation6 + $0x678] sm:$0xff] }
 0x2a8   : > { %4475 = vmatpush2.bf16.msra.mxu0 %v5952_v45  ;;  %v6033_v42 = vcombine.high %v1055_v60, %v1059_v62  ;;  %v919_v4 = vld [vmem:[#allocation6 + $0x218] sm:$0xff] }
 0x2a9   : > { %4516 = vmatpush2.bf16.msra.mxu1 %v6080_v9  ;;  %4476 = vmatprep.subr.bf16.mxu0 %v5945_v0  ;;  %v923_v6 = vld [vmem:[#allocation6 + $0x238] sm:$0xff]  ;;  %v5904_v9 = vcombine.low %v927_v55, %v931_v58  ;;  %v6032_v0 = vcombine.low %v1055_v60, %v1059_v62 }
 0x2aa   : > { %4517 = vmatprep.subr.bf16.mxu1 %v6073_v10  ;;  %v1047_v7 = vld [vmem:[#allocation6 + $0x618] sm:$0xff]  ;;  %v5897_v10 = vcombine.high %v919_v4, %v923_v6 }
 0x2ab   : > { %v1051_v45 = vld [vmem:[#allocation6 + $0x638] sm:$0xff] }
 0x2ac   : > { %4477 = vmatpush2.bf16.msra.mxu0 %v5944_v21  ;;  %v6025_v11 = vcombine.high %v1047_v7, %v1051_v45  ;;  %v1167_v18 = vld [vmem:[#allocation6 + $0x9d8] sm:$0xff] }
 0x2ad   : > { %4518 = vmatpush2.bf16.msra.mxu1 %v6072_v22  ;;  %4478 = vmatprep.subr.bf16.mxu0 %v5937_v23  ;;  %v1171_v19 = vld [vmem:[#allocation6 + $0x9f8] sm:$0xff]  ;;  %v5896_v22 = vcombine.low %v919_v4, %v923_v6  ;;  %v6024_v23 = vcombine.low %v1047_v7, %v1051_v45 }
 0x2ae   : > { %4519 = vmatprep.subr.bf16.mxu1 %v6065_v24  ;;  %v1295_v20 = vld [vmem:[#allocation6 + $0xdd8] sm:$0xff]  ;;  %v6145_v24 = vcombine.high %v1167_v18, %v1171_v19  ;;  %v6144_v27 = vcombine.low %v1167_v18, %v1171_v19 }
 0x2af   : > { %v1299_v21 = vld [vmem:[#allocation6 + $0xdf8] sm:$0xff] }
 0x2b0   : > { %4479 = vmatpush2.bf16.msra.mxu0 %v5936_v28  ;;  %v6273_v25 = vcombine.high %v1295_v20, %v1299_v21  ;;  %v1159_v14 = vld [vmem:[#allocation6 + $0x998] sm:$0xff] }
 0x2b1   : > { %4520 = vmatpush2.bf16.msra.mxu1 %v6064_v29  ;;  %4480 = vmatprep.subr.bf16.mxu0 %v5929_v30  ;;  %v1163_v26 = vld [vmem:[#allocation6 + $0x9b8] sm:$0xff]  ;;  %v6272_v30 = vcombine.low %v1295_v20, %v1299_v21 }
 0x2b2   : > { %4521 = vmatprep.subr.bf16.mxu1 %v6057_v31  ;;  %v1287_v28 = vld [vmem:[#allocation6 + $0xd98] sm:$0xff]  ;;  %v6137_v31 = vcombine.high %v1159_v14, %v1163_v26  ;;  %v6136_v15 = vcombine.low %v1159_v14, %v1163_v26 }
 0x2b3   : > { %v1291_v29 = vld [vmem:[#allocation6 + $0xdb8] sm:$0xff] }
 0x2b4   : > { %4481 = vmatpush2.bf16.msra.mxu0 %v5928_v36  ;;  %v1151_v32 = vld [vmem:[#allocation6 + $0x958] sm:$0xff]  ;;  %v6265_v3 = vcombine.high %v1287_v28, %v1291_v29  ;;  %v6264_v33 = vcombine.low %v1287_v28, %v1291_v29 }
 0x2b5   : > { %4522 = vmatpush2.bf16.msra.mxu1 %v6056_v37  ;;  %4482 = vmatprep.subr.bf16.mxu0 %v5921_v40  ;;  %v1155_v8 = vld [vmem:[#allocation6 + $0x978] sm:$0xff] }
 0x2b6   : > { %4523 = vmatprep.subr.bf16.mxu1 %v6049_v46  ;;  %v1279_v36 = vld [vmem:[#allocation6 + $0xd58] sm:$0xff]  ;;  %v6129_v50 = vcombine.high %v1151_v32, %v1155_v8  ;;  %v6128_v58 = vcombine.low %v1151_v32, %v1155_v8 }
 0x2b7   : > { %v1283_v37 = vld [vmem:[#allocation6 + $0xd78] sm:$0xff] }
 0x2b8   : > { %4483 = vmatpush2.bf16.msra.mxu0 %v5920_v51  ;;  %v1275_v55 = vld [vmem:[#allocation6 + $0xd38] sm:$0xff]  ;;  %v6256_v62 = vcombine.low %v1279_v36, %v1283_v37 }
 0x2b9   : > { %4524 = vmatpush2.bf16.msra.mxu1 %v6048_v17  ;;  %4484 = vmatprep.subr.bf16.mxu0 %v5913_v5  ;;  %v1143_v17 = vld [vmem:[#allocation6 + $0x918] sm:$0xff] }
 0x2ba   : > { %4525 = vmatprep.subr.bf16.mxu1 %v6041_v54  ;;  %v1147_v5 = vld [vmem:[#allocation6 + $0x938] sm:$0xff] }
 0x2bb   : > { %v1271_v54 = vld [vmem:[#allocation6 + $0xd18] sm:$0xff]  ;;  %v6120_v7 = vcombine.low %v1143_v17, %v1147_v5 }
 0x2bc   : > { %4485 = vmatpush2.bf16.msra.mxu0 %v5912_v63  ;;  %v6121_v63 = vcombine.high %v1143_v17, %v1147_v5  ;;  %v1263_v4 = vld [vmem:[#allocation6 + $0xcd8] sm:$0xff]  ;;  %v6248_v45 = vcombine.low %v1271_v54, %v1275_v55 }
 0x2bd   : > { %4526 = vmatpush2.bf16.msra.mxu1 %v6040_v1  ;;  %4486 = vmatprep.subr.bf16.mxu0 %v5905_v48  ;;  %v1135_v48 = vld [vmem:[#allocation6 + $0x8d8] sm:$0xff] }
 0x2be   : > { %4527 = vmatprep.subr.bf16.mxu1 %v6033_v42  ;;  %v1139_v42 = vld [vmem:[#allocation6 + $0x8f8] sm:$0xff] }
 0x2bf   : > { %v1267_v6 = vld [vmem:[#allocation6 + $0xcf8] sm:$0xff]  ;;  %v6112_v20 = vcombine.low %v1135_v48, %v1139_v42 }
 0x2c0   : > { %4487 = vmatpush2.bf16.msra.mxu0 %v5904_v9  ;;  %v6113_v9 = vcombine.high %v1135_v48, %v1139_v42  ;;  %v1255_v18 = vld [vmem:[#allocation6 + $0xc98] sm:$0xff]  ;;  %v6240_v21 = vcombine.low %v1263_v4, %v1267_v6 }
 0x2c1   : > { %4528 = vmatpush2.bf16.msra.mxu1 %v6032_v0  ;;  %4488 = vmatprep.subr.bf16.mxu0 %v5897_v10  ;;  %v6241_v0 = vcombine.high %v1263_v4, %v1267_v6  ;;  %v1127_v10 = vld [vmem:[#allocation6 + $0x898] sm:$0xff] }
 0x2c2   : > { %4529 = vmatprep.subr.bf16.mxu1 %v6025_v11  ;;  %v1131_v11 = vld [vmem:[#allocation6 + $0x8b8] sm:$0xff] }
 0x2c3   : > { %v1259_v19 = vld [vmem:[#allocation6 + $0xcb8] sm:$0xff] }
 0x2c4   : > { %4489 = vmatpush2.bf16.msra.mxu0 %v5896_v22  ;;  %v6105_v22 = vcombine.high %v1127_v10, %v1131_v11  ;;  %v1247_v14 = vld [vmem:[#allocation6 + $0xc58] sm:$0xff]  ;;  %v6232_v28 = vcombine.low %v1255_v18, %v1259_v19 }
 0x2c5   : > { %4530 = vmatpush2.bf16.msra.mxu1 %v6024_v23  ;;  %4540 = vmatprep.subr.bf16.mxu0 %v6145_v24  ;;  %v6233_v23 = vcombine.high %v1255_v18, %v1259_v19  ;;  %v1119_v24 = vld [vmem:[#allocation6 + $0x858] sm:$0xff] }
 0x2c6   : > { %4581 = vmatprep.subr.bf16.mxu1 %v6273_v25  ;;  %v1123_v25 = vld [vmem:[#allocation6 + $0x878] sm:$0xff] }
 0x2c7   : > { %v4246_v35 = vpop.f32.mrf.mxu0  ;;  %4491 = vmatmul.mubr.bf16.vlgmr.msra.gmra.mxu0 %v7141_v44  ;;  %v1251_v26 = vld [vmem:[#allocation6 + $0xc78] sm:$0xff]  ;;  %v6097_v29 = vcombine.high %v1119_v24, %v1123_v25 }
 0x2c8   : > { %v4247_v40 = vadd.f32 %v4246_v35, %v7222_v52  ;;  %v4287_v46 = vpop.f32.mrf.mxu1  ;;  %4532 = vmatmul.mubr.bf16.vlgmr.msra.gmra.mxu1 %v7137_v41  ;;  %4541 = vmatpush1.bf16.msra.mxu0 %v6144_v27  ;;  %v6257_v52 = vcombine.high %v1279_v36, %v1283_v37  ;;  %v6104_v27 = vcombine.low %v1127_v10, %v1131_v11  ;;  %v1115_v32 = vld [vmem:[#allocation6 + $0x838] sm:$0xff] }
 0x2c9   : > { %4572 = vmatprep.mubr.bf16.mxu0 %v7161_v34  ;;  %4582 = vmatpush1.bf16.msra.mxu1 %v6272_v30  ;;  %v7231_v49 = vpop.f32.mrf.mxu0  ;;  %v6225_v30 = vcombine.high %v1247_v14, %v1251_v26  ;;  %v1239_v8 = vld [vmem:[#allocation6 + $0xc18] sm:$0xff]  ;;  %v6224_v36 = vcombine.low %v1247_v14, %v1251_v26 }
 0x2ca   : > { %v7233_v51 = vadd.f32 %v4287_v46, %v4247_v40  ;;  %4613 = vmatprep.mubr.bf16.mxu1 %v7163_v38  ;;  %v7236_v44 = vpop.f32.mrf.mxu1  ;;  %4542 = vmatprep.subr.bf16.mxu0 %v6137_v31  ;;  %v6249_v38 = vcombine.high %v1271_v54, %v1275_v55  ;;  %v1111_v31 = vld [vmem:[#allocation6 + $0x818] sm:$0xff] }
 0x2cb   : > { %v4250_v41 = vpop.f32.mrf.mxu0  ;;  %4583 = vmatprep.subr.bf16.mxu1 %v6265_v3  ;;  %v1243_v35 = vld [vmem:[#allocation6 + $0xc38] sm:$0xff]  ;;  %v6096_v3 = vcombine.low %v1119_v24, %v1123_v25  ;;  %v6089_v37 = vcombine.high %v1111_v31, %v1115_v32 }
 0x2cc   : > { %v4291_v34 = vpop.f32.mrf.mxu1  ;;  %4543 = vmatpush1.bf16.msra.mxu0 %v6136_v15  ;;  %v6217_v40 = vcombine.high %v1239_v8, %v1243_v35  ;;  %v1231_v46 = vld [vmem:[#allocation6 + $0xbd8] sm:$0xff]  ;;  %v6216_v17 = vcombine.low %v1239_v8, %v1243_v35 }
 0x2cd   : > { %4584 = vmatpush1.bf16.msra.mxu1 %v6264_v33  ;;  %v4251_v60 = vpop.f32.mrf.mxu0  ;;  %4544 = vmatprep.subr.bf16.mxu0 %v6129_v50  ;;  %v1235_v15 = vld [vmem:[#allocation6 + $0xbf8] sm:$0xff] }
 0x2ce   : > { %v4292_v1 = vpop.f32.mrf.mxu1  ;;  %4585 = vmatprep.subr.bf16.mxu1 %v6257_v52  ;;  %v1359_v33 = vld [vmem:[#allocation6 + $0xfd8] sm:$0xff]  ;;  %v6088_v52 = vcombine.low %v1111_v31, %v1115_v32  ;;  %v6209_v5 = vcombine.high %v1231_v46, %v1235_v15  ;;  %v6208_v60 = vcombine.low %v1231_v46, %v1235_v15 }
 0x2cf   : > { %v1363_v50 = vld [vmem:[#allocation6 + $0xff8] sm:$0xff] }
 0x2d0   : > { %4545 = vmatpush1.bf16.msra.mxu0 %v6128_v58  ;;  %v6337_v41 = vcombine.high %v1359_v33, %v1363_v50  ;;  %v1223_v54 = vld [vmem:[#allocation6 + $0xb98] sm:$0xff] }
 0x2d1   : > { %4586 = vmatpush1.bf16.msra.mxu1 %v6256_v62  ;;  %4546 = vmatprep.subr.bf16.mxu0 %v6121_v63  ;;  %v1227_v55 = vld [vmem:[#allocation6 + $0xbb8] sm:$0xff]  ;;  %v6336_v62 = vcombine.low %v1359_v33, %v1363_v50 }
 0x2d2   : > { %4587 = vmatprep.subr.bf16.mxu1 %v6249_v38  ;;  %v1351_v34 = vld [vmem:[#allocation6 + $0xf98] sm:$0xff]  ;;  %v6201_v63 = vcombine.high %v1223_v54, %v1227_v55  ;;  %v6200_v6 = vcombine.low %v1223_v54, %v1227_v55 }
 0x2d3   : > { %v1355_v58 = vld [vmem:[#allocation6 + $0xfb8] sm:$0xff] }
 0x2d4   : > { %4547 = vmatpush1.bf16.msra.mxu0 %v6120_v7  ;;  %v6329_v1 = vcombine.high %v1351_v34, %v1355_v58  ;;  %v1215_v38 = vld [vmem:[#allocation6 + $0xb58] sm:$0xff]  ;;  %v6328_v7 = vcombine.low %v1351_v34, %v1355_v58  ;;  %v4249_v58 = vadd.f32 %v7231_v49, %v7225_v2  ;;  %v4623_v2 = vmax.f32 %v7211_v57, 0.0 }
 0x2d5   : > { %4588 = vmatpush1.bf16.msra.mxu1 %v6248_v45  ;;  %4548 = vmatprep.subr.bf16.mxu0 %v6113_v9  ;;  %v1219_v48 = vld [vmem:[#allocation6 + $0xb78] sm:$0xff] }
 0x2d6   : > { %4589 = vmatprep.subr.bf16.mxu1 %v6241_v0  ;;  %v1343_v42 = vld [vmem:[#allocation6 + $0xf58] sm:$0xff]  ;;  %v6193_v45 = vcombine.high %v1215_v38, %v1219_v48  ;;  %v6192_v19 = vcombine.low %v1215_v38, %v1219_v48  ;;  %v4290_v38 = vadd.f32 %v7236_v44, %v4249_v58 }
 0x2d7   : > { %v1347_v4 = vld [vmem:[#allocation6 + $0xf78] sm:$0xff] }
 0x2d8   : > { %4549 = vmatpush1.bf16.msra.mxu0 %v6112_v20  ;;  %v6321_v9 = vcombine.high %v1343_v42, %v1347_v4  ;;  %v1207_v0 = vld [vmem:[#allocation6 + $0xb18] sm:$0xff]  ;;  %v6320_v20 = vcombine.low %v1343_v42, %v1347_v4  ;;  %v4625_v49 = vmax.f32 %v4290_v38, 0.0  ;;  %v6601_v38 = vld [vmem:[#allocation9 + $0x1e4] ss:$8 sps:$4 sm:$0xff]  }
 0x2d9   : > { %4590 = vmatpush1.bf16.msra.mxu1 %v6240_v21  ;;  %4550 = vmatprep.subr.bf16.mxu0 %v6105_v22  ;;  %v1211_v10 = vld [vmem:[#allocation6 + $0xb38] sm:$0xff] }
 0x2da   : > { %4591 = vmatprep.subr.bf16.mxu1 %v6233_v23  ;;  %v1335_v11 = vld [vmem:[#allocation6 + $0xf18] sm:$0xff]  ;;  %v6185_v21 = vcombine.high %v1207_v0, %v1211_v10  ;;  %v6184_v26 = vcombine.low %v1207_v0, %v1211_v10  ;;  %v6550_v0 = vld [vmem:[#allocation9 + $0x64] ss:$8 sps:$4 sm:$0xff]   ;;  %v4631_v10 = vpack.c.bf16 %v4623_v2, %v4623_v2  ;;  %v4633_v57 = vpack.c.bf16 %v4625_v49, %v4625_v49 }
 0x2db   : > { %v1339_v18 = vld [vmem:[#allocation6 + $0xf38] sm:$0xff] }
 0x2dc   : > { %4551 = vmatpush1.bf16.msra.mxu0 %v6104_v27  ;;  %v6313_v22 = vcombine.high %v1335_v11, %v1339_v18  ;;  %v1199_v23 = vld [vmem:[#allocation6 + $0xad8] sm:$0xff]  ;;  %v6312_v27 = vcombine.low %v1335_v11, %v1339_v18  ;;  %v6553_v18 = vld [vmem:[#allocation9 + $0x164] ss:$8 sps:$4 sm:$0xff]  }
 0x2dd   : > { %4592 = vmatpush1.bf16.msra.mxu1 %v6232_v28  ;;  %4552 = vmatprep.subr.bf16.mxu0 %v6097_v29  ;;  %v1203_v24 = vld [vmem:[#allocation6 + $0xaf8] sm:$0xff] }
 0x2de   : > { %4593 = vmatprep.subr.bf16.mxu1 %v6225_v30  ;;  %v1327_v25 = vld [vmem:[#allocation6 + $0xed8] sm:$0xff]  ;;  %v6177_v28 = vcombine.high %v1199_v23, %v1203_v24  ;;  %v6176_v35 = vcombine.low %v1199_v23, %v1203_v24 }
 0x2df   : > { %v1331_v14 = vld [vmem:[#allocation6 + $0xef8] sm:$0xff] }
 0x2e0   : > { %4553 = vmatpush1.bf16.msra.mxu0 %v6096_v3  ;;  %v6305_v29 = vcombine.high %v1327_v25, %v1331_v14  ;;  %v1191_v30 = vld [vmem:[#allocation6 + $0xa98] sm:$0xff]  ;;  %v6304_v3 = vcombine.low %v1327_v25, %v1331_v14 }
 0x2e1   : > { %4594 = vmatpush1.bf16.msra.mxu1 %v6224_v36  ;;  %4554 = vmatprep.subr.bf16.mxu0 %v6089_v37  ;;  %v1195_v31 = vld [vmem:[#allocation6 + $0xab8] sm:$0xff] }
 0x2e2   : > { %4595 = vmatprep.subr.bf16.mxu1 %v6217_v40  ;;  %v1319_v32 = vld [vmem:[#allocation6 + $0xe98] sm:$0xff]  ;;  %v6169_v36 = vcombine.high %v1191_v30, %v1195_v31  ;;  %v6168_v50 = vcombine.low %v1191_v30, %v1195_v31  ;;  %v6565_v31 = vld [vmem:[#allocation9 + $0x144] ss:$8 sps:$4 sm:$0xff]  }
 0x2e3   : > { %v1323_v8 = vld [vmem:[#allocation6 + $0xeb8] sm:$0xff] }
 0x2e4   : > { %4555 = vmatpush1.bf16.msra.mxu0 %v6088_v52  ;;  %v6297_v37 = vcombine.high %v1319_v32, %v1323_v8  ;;  %v1183_v40 = vld [vmem:[#allocation6 + $0xa58] sm:$0xff]  ;;  %v6296_v52 = vcombine.low %v1319_v32, %v1323_v8  ;;  %v6560_v32 = vld [vmem:[#allocation9 + $0x40] ss:$8 sps:$4 sm:$0xff]  }
 0x2e5   : > { %4596 = vmatpush1.bf16.msra.mxu1 %v6216_v17  ;;  %4556 = vmatprep.subr.bf16.mxu0 %v6209_v5  ;;  %v1187_v46 = vld [vmem:[#allocation6 + $0xa78] sm:$0xff]  ;;  %v6563_v8 = vld [vmem:[#allocation9 + $0x140] ss:$8 sps:$4 sm:$0xff]  }
 0x2e6   : > { %4597 = vmatprep.subr.bf16.mxu1 %v6337_v41  ;;  %v1311_v15 = vld [vmem:[#allocation6 + $0xe58] sm:$0xff]  ;;  %v6161_v17 = vcombine.high %v1183_v40, %v1187_v46 }
 0x2e7   : > { %v1315_v33 = vld [vmem:[#allocation6 + $0xe78] sm:$0xff] }
 0x2e8   : > { %4557 = vmatpush2.bf16.msra.mxu0 %v6208_v60  ;;  %v6289_v5 = vcombine.high %v1311_v15, %v1315_v33  ;;  %v1175_v41 = vld [vmem:[#allocation6 + $0xa18] sm:$0xff]  ;;  %v6160_v60 = vcombine.low %v1183_v40, %v1187_v46  ;;  %v6574_v40 = vld [vmem:[#allocation9 + $0x24] ss:$8 sps:$4 sm:$0xff]  }
 0x2e9   : > { %4598 = vmatpush2.bf16.msra.mxu1 %v6336_v62  ;;  %4558 = vmatprep.subr.bf16.mxu0 %v6201_v63  ;;  %v1179_v54 = vld [vmem:[#allocation6 + $0xa38] sm:$0xff]  ;;  %v6288_v62 = vcombine.low %v1311_v15, %v1315_v33  ;;  %v6577_v46 = vld [vmem:[#allocation9 + $0x124] ss:$8 sps:$4 sm:$0xff]   ;;  %v6572_v15 = vld [vmem:[#allocation9 + $0x20] ss:$8 sps:$4 sm:$0xff]  }
 0x2ea   : > { %4599 = vmatprep.subr.bf16.mxu1 %v6329_v1  ;;  %v1303_v55 = vld [vmem:[#allocation6 + $0xe18] sm:$0xff]  ;;  %v6153_v63 = vcombine.high %v1175_v41, %v1179_v54  ;;  %v6152_v48 = vcombine.low %v1175_v41, %v1179_v54  ;;  %v6575_v33 = vld [vmem:[#allocation9 + $0x120] ss:$8 sps:$4 sm:$0xff]   ;;  %v6586_v41 = vld [vmem:[#allocation9 + $0x4] ss:$8 sps:$4 sm:$0xff]  }
 0x2eb   : > { %v1307_v34 = vld [vmem:[#allocation6 + $0xe38] sm:$0xff]  ;;  %v6589_v54 = vld [vmem:[#allocation9 + $0x104] ss:$8 sps:$4 sm:$0xff]  }
 0x2ec   : > { %4559 = vmatpush2.bf16.msra.mxu0 %v6200_v6  ;;  %v6281_v1 = vcombine.high %v1303_v55, %v1307_v34  ;;  %v6280_v42 = vcombine.low %v1303_v55, %v1307_v34  ;;  %v6544_v4 = vld [vmem:[#allocation9 + $0x74] ss:$8 sps:$4 sm:$0xff]   ;;  %v6545_v44 = vld [vmem:[#allocation9 + $0x170] ss:$8 sps:$4 sm:$0xff]   ;;  %v6584_v55 = vld [vmem:[#allocation9] ss:$8 sps:$4 sm:$0xff]  }
 0x2ed   : > { %4600 = vmatpush2.bf16.msra.mxu1 %v6328_v7  ;;  %4560 = vmatprep.subr.bf16.mxu0 %v6193_v45  ;;  %v6547_v6 = vld [vmem:[#allocation9 + $0x174] ss:$8 sps:$4 sm:$0xff]   ;;  %v6587_v34 = vld [vmem:[#allocation9 + $0x100] ss:$8 sps:$4 sm:$0xff]   ;;  %v6602_v2 = vld [vmem:[#allocation9 + $0xd0] ss:$8 sps:$4 sm:$0xff]  }
 0x2ee   : > { %4601 = vmatprep.subr.bf16.mxu1 %v6321_v9  ;;  %v7242_v7 = vld [vmem:[#allocation7] sm:$0xff] }
 0x2ef   : > { %v1385_v45 = vrot.slane %v7242_v7, %v486_v61  ;;  %v6542_v9 = vld [vmem:[#allocation9 + $0x70] ss:$8 sps:$4 sm:$0xff]   ;;  %v6556_v23 = vld [vmem:[#allocation9 + $0x54] ss:$8 sps:$4 sm:$0xff]  }
 0x2f0   : > { %4561 = vmatpush2.bf16.msra.mxu0 %v6192_v19  ;;  %v6592_v58 = vld [vmem:[#allocation9 + $0xf4] ss:$8 sps:$4 sm:$0xff]   ;;  %v6605_v49 = vld [vmem:[#allocation9 + $0x1d0] ss:$8 sps:$4 sm:$0xff]  }
 0x2f1   : > { %4602 = vmatpush2.bf16.msra.mxu1 %v6320_v20  ;;  %4562 = vmatprep.subr.bf16.mxu0 %v6185_v21  ;;  %v6548_v21 = vld [vmem:[#allocation9 + $0x60] ss:$8 sps:$4 sm:$0xff]  }
 0x2f2   : > { %4603 = vmatprep.subr.bf16.mxu1 %v6313_v22  ;;  %v6551_v22 = vld [vmem:[#allocation9 + $0x160] ss:$8 sps:$4 sm:$0xff]  }
 0x2f4   : > { %4563 = vmatpush2.bf16.msra.mxu0 %v6184_v26 }
 0x2f5   : > { %4604 = vmatpush2.bf16.msra.mxu1 %v6312_v27  ;;  %4564 = vmatprep.subr.bf16.mxu0 %v6177_v28  ;;  %v6557_v28 = vld [vmem:[#allocation9 + $0x150] ss:$8 sps:$4 sm:$0xff]  }
 0x2f6   : > { %4605 = vmatprep.subr.bf16.mxu1 %v6305_v29  ;;  %v6562_v29 = vld [vmem:[#allocation9 + $0x44] ss:$8 sps:$4 sm:$0xff]  }
 0x2f8   : > { %4565 = vmatpush2.bf16.msra.mxu0 %v6176_v35  ;;  %v6568_v35 = vld [vmem:[#allocation9 + $0x34] ss:$8 sps:$4 sm:$0xff]  }
 0x2f9   : > { %4606 = vmatpush2.bf16.msra.mxu1 %v6304_v3  ;;  %4566 = vmatprep.subr.bf16.mxu0 %v6169_v36  ;;  %v6571_v3 = vld [vmem:[#allocation9 + $0x134] ss:$8 sps:$4 sm:$0xff]   ;;  %v6566_v36 = vld [vmem:[#allocation9 + $0x30] ss:$8 sps:$4 sm:$0xff]  }
 0x2fa   : > { %4607 = vmatprep.subr.bf16.mxu1 %v6297_v37  ;;  %v6569_v37 = vld [vmem:[#allocation9 + $0x130] ss:$8 sps:$4 sm:$0xff]  }
 0x2fc   : > { %4567 = vmatpush2.bf16.msra.mxu0 %v6168_v50  ;;  %v6580_v50 = vld [vmem:[#allocation9 + $0x14] ss:$8 sps:$4 sm:$0xff]  }
 0x2fd   : > { %4608 = vmatpush2.bf16.msra.mxu1 %v6296_v52  ;;  %4568 = vmatprep.subr.bf16.mxu0 %v6161_v17  ;;  %v6583_v52 = vld [vmem:[#allocation9 + $0x114] ss:$8 sps:$4 sm:$0xff]   ;;  %v6578_v17 = vld [vmem:[#allocation9 + $0x10] ss:$8 sps:$4 sm:$0xff]  }
 0x2fe   : > { %4609 = vmatprep.subr.bf16.mxu1 %v6289_v5  ;;  %v6581_v5 = vld [vmem:[#allocation9 + $0x110] ss:$8 sps:$4 sm:$0xff]  }
 0x300   : > { %4569 = vmatpush2.bf16.msra.mxu0 %v6160_v60  ;;  %v6595_v60 = vld [vmem:[#allocation9 + $0x1f4] ss:$8 sps:$4 sm:$0xff]  }
 0x301   : > { %4610 = vmatpush2.bf16.msra.mxu1 %v6288_v62  ;;  %4570 = vmatprep.subr.bf16.mxu0 %v6153_v63  ;;  %v6590_v62 = vld [vmem:[#allocation9 + $0xf0] ss:$8 sps:$4 sm:$0xff]  }
 0x302   : > { %4611 = vmatprep.subr.bf16.mxu1 %v6281_v1  ;;  %v6593_v63 = vld [vmem:[#allocation9 + $0x1f0] ss:$8 sps:$4 sm:$0xff]   ;;  %v6598_v1 = vld [vmem:[#allocation9 + $0xe4] ss:$8 sps:$4 sm:$0xff]  }
 0x304   : > { %4571 = vmatpush2.bf16.msra.mxu0 %v6152_v48  ;;  %v6596_v48 = vld [vmem:[#allocation9 + $0xe0] ss:$8 sps:$4 sm:$0xff]  }
 0x305   : > { %4612 = vmatpush2.bf16.msra.mxu1 %v6280_v42  ;;  %5418 = vmatprep.subr.bf16.mxu0 %v6544_v4  ;;  %v6599_v42 = vld [vmem:[#allocation9 + $0x1e0] ss:$8 sps:$4 sm:$0xff]   ;;  %v6604_v4 = vld [vmem:[#allocation9 + $0xd4] ss:$8 sps:$4 sm:$0xff]  }
 0x306   : > { %5459 = vmatprep.subr.bf16.mxu1 %v6547_v6  ;;  %v6607_v6 = vld [vmem:[#allocation9 + $0x1d4] ss:$8 sps:$4 sm:$0xff]  }
 0x307   : > { %v4328_v11 = vpop.f32.mrf.mxu0  ;;  %4573 = vmatmul.mubr.bf16.vlgmr.msra.gmra.mxu0 %v7179_v47  ;;  %v6559_v47 = vld [vmem:[#allocation9 + $0x154] ss:$8 sps:$4 sm:$0xff]  }
 0x308   : > { %v4329_v19 = vadd.f32 %v4328_v11, %v1385_v45  ;;  %v4369_v20 = vpop.f32.mrf.mxu1  ;;  %4614 = vmatmul.mubr.bf16.vlgmr.msra.gmra.mxu1 %v7177_v39  ;;  %5419 = vmatpush1.bf16.msra.mxu0 %v6542_v9  ;;  %v6554_v39 = vld [vmem:[#allocation9 + $0x50] ss:$8 sps:$4 sm:$0xff]   ;;  %v6610_v45 = vld [vmem:[#allocation9 + $0xc4] ss:$8 sps:$4 sm:$0xff]   ;;  %v6619_v11 = vld [vmem:[#allocation9 + $0x1b4] ss:$8 sps:$4 sm:$0xff]  }
 0x309   : > { %5450 = vmatprep.mubr.bf16.mxu0 %v4631_v10  ;;  %5460 = vmatpush1.bf16.msra.mxu1 %v6545_v44  ;;  %v7249_v61 = vpop.f32.mrf.mxu0  ;;  %v6613_v9 = vld [vmem:[#allocation9 + $0x1c4] ss:$8 sps:$4 sm:$0xff]   ;;  %v6608_v44 = vld [vmem:[#allocation9 + $0xc0] ss:$8 sps:$4 sm:$0xff]   ;;  %v6616_v10 = vld [vmem:[#allocation9 + $0xb4] ss:$8 sps:$4 sm:$0xff]  }
 0x30a   : > { %v7251_v24 = vadd.f32 %v4369_v20, %v4329_v19  ;;  %5491 = vmatprep.mubr.bf16.mxu1 %v4633_v57  ;;  %v7253_v25 = vpop.f32.mrf.mxu1  ;;  %5420 = vmatprep.subr.bf16.mxu0 %v6550_v0  ;;  %v6611_v0 = vld [vmem:[#allocation9 + $0x1c0] ss:$8 sps:$4 sm:$0xff]   ;;  %v6617_v57 = vld [vmem:[#allocation9 + $0x1b0] ss:$8 sps:$4 sm:$0xff]   ;;  %v6622_v19 = vld [vmem:[#allocation9 + $0xa4] ss:$8 sps:$4 sm:$0xff]  }
 0x30b   : > { %v4332_v14 = vpop.f32.mrf.mxu0  ;;  %5461 = vmatprep.subr.bf16.mxu1 %v6553_v18  ;;  %v6614_v18 = vld [vmem:[#allocation9 + $0xb0] ss:$8 sps:$4 sm:$0xff]   ;;  %v6625_v20 = vld [vmem:[#allocation9 + $0x1a4] ss:$8 sps:$4 sm:$0xff]  }
 0x30c   : > { %v4373_v26 = vpop.f32.mrf.mxu1  ;;  %5421 = vmatpush1.bf16.msra.mxu0 %v6548_v21  ;;  %v6620_v21 = vld [vmem:[#allocation9 + $0xa0] ss:$8 sps:$4 sm:$0xff]   ;;  %v6626_v14 = vld [vmem:[#allocation9 + $0x90] ss:$8 sps:$4 sm:$0xff]  }
 0x30d   : > { %5462 = vmatpush1.bf16.msra.mxu1 %v6551_v22  ;;  %v4333_v27 = vpop.f32.mrf.mxu0  ;;  %5422 = vmatprep.subr.bf16.mxu0 %v6556_v23  ;;  %v6623_v22 = vld [vmem:[#allocation9 + $0x1a0] ss:$8 sps:$4 sm:$0xff]   ;;  %v6628_v23 = vld [vmem:[#allocation9 + $0x94] ss:$8 sps:$4 sm:$0xff]   ;;  %v6629_v26 = vld [vmem:[#allocation9 + $0x190] ss:$8 sps:$4 sm:$0xff]  }
 0x30e   : > { %v4374_v30 = vpop.f32.mrf.mxu1  ;;  %5463 = vmatprep.subr.bf16.mxu1 %v6559_v47  ;;  %v6631_v47 = vld [vmem:[#allocation9 + $0x194] ss:$8 sps:$4 sm:$0xff]   ;;  %v6637_v27 = vld [vmem:[#allocation9 + $0x184] ss:$8 sps:$4 sm:$0xff]  }
 0x30f   : > { %v4622_v30 = vmax.f32 %v7207_v43, 0.0  ;;  %v6691_v43 = vld [vmem:[#allocation9 + $0x364] ss:$8 sps:$4 sm:$0xff]  }
 0x310   : > { %5423 = vmatpush1.bf16.msra.mxu0 %v6554_v39  ;;  %v6634_v39 = vld [vmem:[#allocation9 + $0x84] ss:$8 sps:$4 sm:$0xff]  }
 0x311   : > { %5464 = vmatpush1.bf16.msra.mxu1 %v6557_v28  ;;  %5424 = vmatprep.subr.bf16.mxu0 %v6562_v29  ;;  %v1389_v28 = vrot.slane %v7242_v7, %v490_v53  ;;  %v6632_v29 = vld [vmem:[#allocation9 + $0x80] ss:$8 sps:$4 sm:$0xff]   ;;  %v6643_v53 = vld [vmem:[#allocation9 + $0x264] ss:$8 sps:$4 sm:$0xff]  }
 0x312   : > { %5465 = vmatprep.subr.bf16.mxu1 %v6565_v31  ;;  %v6635_v31 = vld [vmem:[#allocation9 + $0x180] ss:$8 sps:$4 sm:$0xff]  }
 0x314   : > { %5425 = vmatpush1.bf16.msra.mxu0 %v6560_v32  ;;  %v6640_v32 = vld [vmem:[#allocation9 + $0x274] ss:$8 sps:$4 sm:$0xff]  }
 0x315   : > { %5466 = vmatpush1.bf16.msra.mxu1 %v6563_v8  ;;  %5426 = vmatprep.subr.bf16.mxu0 %v6568_v35  ;;  %v4624_v8 = vmax.f32 %v7233_v51, 0.0  ;;  %v6688_v35 = vld [vmem:[#allocation9 + $0x374] ss:$8 sps:$4 sm:$0xff]  }
 0x316   : > { %5467 = vmatprep.subr.bf16.mxu1 %v6571_v3  ;;  %v4331_v3 = vadd.f32 %v7249_v61, %v1389_v28  ;;  %v6641_v61 = vld [vmem:[#allocation9 + $0x260] ss:$8 sps:$4 sm:$0xff]   ;;  %v6710_v28 = vld [vmem:[#allocation9 + $0x3f0] ss:$8 sps:$4 sm:$0xff]  }
 0x318   : > { %5427 = vmatpush1.bf16.msra.mxu0 %v6566_v36  ;;  %v6638_v36 = vld [vmem:[#allocation9 + $0x270] ss:$8 sps:$4 sm:$0xff]  }
 0x319   : > { %5468 = vmatpush1.bf16.msra.mxu1 %v6569_v37  ;;  %5428 = vmatprep.subr.bf16.mxu0 %v6574_v40  ;;  %v4630_v37 = vpack.c.bf16 %v4622_v30, %v4622_v30  ;;  %v6686_v40 = vld [vmem:[#allocation9 + $0x370] ss:$8 sps:$4 sm:$0xff]   ;;  %v6665_v30 = vld [vmem:[#allocation9 + $0x2e0] ss:$8 sps:$4 sm:$0xff]  }
 0x31a   : > { %5469 = vmatprep.subr.bf16.mxu1 %v6577_v46  ;;  %v4632_v46 = vpack.c.bf16 %v4624_v8, %v4624_v8  ;;  %v6718_v8 = vld [vmem:[#allocation9 + $0x3d4] ss:$8 sps:$4 sm:$0xff]  }
 0x31c   : > { %5429 = vmatpush1.bf16.msra.mxu0 %v6572_v15 }
 0x31d   : > { %5470 = vmatpush1.bf16.msra.mxu1 %v6575_v33  ;;  %5430 = vmatprep.subr.bf16.mxu0 %v6580_v50  ;;  %v4372_v33 = vadd.f32 %v7253_v25, %v4331_v3  ;;  %v6673_v3 = vld [vmem:[#allocation9 + $0x2c4] ss:$8 sps:$4 sm:$0xff]  }
 0x31e   : > { %5471 = vmatprep.subr.bf16.mxu1 %v6583_v52  ;;  %v6646_v52 = vld [vmem:[#allocation9 + $0x254] ss:$8 sps:$4 sm:$0xff]  }
 0x320   : > { %5431 = vmatpush1.bf16.msra.mxu0 %v6578_v17  ;;  %v6689_v17 = vld [vmem:[#allocation9 + $0x360] ss:$8 sps:$4 sm:$0xff]  }
 0x321   : > { %5472 = vmatpush1.bf16.msra.mxu1 %v6581_v5  ;;  %5432 = vmatprep.subr.bf16.mxu0 %v6586_v41 }
 0x322   : > { %5473 = vmatprep.subr.bf16.mxu1 %v6589_v54  ;;  %v6694_v54 = vld [vmem:[#allocation9 + $0x354] ss:$8 sps:$4 sm:$0xff]  }
 0x324   : > { %5433 = vmatpush1.bf16.msra.mxu0 %v6584_v55 }
 0x325   : > { %5474 = vmatpush1.bf16.msra.mxu1 %v6587_v34  ;;  %5434 = vmatprep.subr.bf16.mxu0 %v6592_v58 }
 0x326   : > { %5475 = vmatprep.subr.bf16.mxu1 %v6595_v60  ;;  %v6644_v60 = vld [vmem:[#allocation9 + $0x250] ss:$8 sps:$4 sm:$0xff]  }
 0x328   : > { %5435 = vmatpush2.bf16.msra.mxu0 %v6590_v62  ;;  %v6649_v62 = vld [vmem:[#allocation9 + $0x244] ss:$8 sps:$4 sm:$0xff]  }
 0x329   : > { %5476 = vmatpush2.bf16.msra.mxu1 %v6593_v63  ;;  %5436 = vmatprep.subr.bf16.mxu0 %v6598_v1  ;;  %v6692_v63 = vld [vmem:[#allocation9 + $0x350] ss:$8 sps:$4 sm:$0xff]  }
 0x32a   : > { %5477 = vmatprep.subr.bf16.mxu1 %v6601_v38 }
 0x32c   : > { %5437 = vmatpush2.bf16.msra.mxu0 %v6596_v48  ;;  %v6697_v48 = vld [vmem:[#allocation9 + $0x344] ss:$8 sps:$4 sm:$0xff]  }
 0x32d   : > { %5478 = vmatpush2.bf16.msra.mxu1 %v6599_v42  ;;  %5438 = vmatprep.subr.bf16.mxu0 %v6604_v4  ;;  %v6647_v4 = vld [vmem:[#allocation9 + $0x240] ss:$8 sps:$4 sm:$0xff]  }
 0x32e   : > { %5479 = vmatprep.subr.bf16.mxu1 %v6607_v6  ;;  %v6652_v6 = vld [vmem:[#allocation9 + $0x234] ss:$8 sps:$4 sm:$0xff]  }
 0x330   : > { %5439 = vmatpush2.bf16.msra.mxu0 %v6602_v2  ;;  %v6695_v2 = vld [vmem:[#allocation9 + $0x340] ss:$8 sps:$4 sm:$0xff]  }
 0x331   : > { %5480 = vmatpush2.bf16.msra.mxu1 %v6605_v49  ;;  %5440 = vmatprep.subr.bf16.mxu0 %v6610_v45  ;;  %v6700_v49 = vld [vmem:[#allocation9 + $0x334] ss:$8 sps:$4 sm:$0xff]   ;;  %v6650_v45 = vld [vmem:[#allocation9 + $0x230] ss:$8 sps:$4 sm:$0xff]  }
 0x332   : > { %5481 = vmatprep.subr.bf16.mxu1 %v6613_v9  ;;  %v6655_v9 = vld [vmem:[#allocation9 + $0x224] ss:$8 sps:$4 sm:$0xff]  }
 0x334   : > { %5441 = vmatpush2.bf16.msra.mxu0 %v6608_v44  ;;  %v6698_v44 = vld [vmem:[#allocation9 + $0x330] ss:$8 sps:$4 sm:$0xff]  }
 0x335   : > { %5482 = vmatpush2.bf16.msra.mxu1 %v6611_v0  ;;  %5442 = vmatprep.subr.bf16.mxu0 %v6616_v10  ;;  %v6703_v0 = vld [vmem:[#allocation9 + $0x324] ss:$8 sps:$4 sm:$0xff]   ;;  %v6653_v10 = vld [vmem:[#allocation9 + $0x220] ss:$8 sps:$4 sm:$0xff]  }
 0x336   : > { %5483 = vmatprep.subr.bf16.mxu1 %v6619_v11  ;;  %v6658_v11 = vld [vmem:[#allocation9 + $0x214] ss:$8 sps:$4 sm:$0xff]  }
 0x338   : > { %5443 = vmatpush2.bf16.msra.mxu0 %v6614_v18  ;;  %v6701_v18 = vld [vmem:[#allocation9 + $0x320] ss:$8 sps:$4 sm:$0xff]  }
 0x339   : > { %5484 = vmatpush2.bf16.msra.mxu1 %v6617_v57  ;;  %5444 = vmatprep.subr.bf16.mxu0 %v6622_v19  ;;  %v6706_v57 = vld [vmem:[#allocation9 + $0x314] ss:$8 sps:$4 sm:$0xff]   ;;  %v6656_v19 = vld [vmem:[#allocation9 + $0x210] ss:$8 sps:$4 sm:$0xff]  }
 0x33a   : > { %5485 = vmatprep.subr.bf16.mxu1 %v6625_v20  ;;  %v6661_v20 = vld [vmem:[#allocation9 + $0x204] ss:$8 sps:$4 sm:$0xff]  }
 0x33c   : > { %5445 = vmatpush2.bf16.msra.mxu0 %v6620_v21  ;;  %v6704_v21 = vld [vmem:[#allocation9 + $0x310] ss:$8 sps:$4 sm:$0xff]  }
 0x33d   : > { %5486 = vmatpush2.bf16.msra.mxu1 %v6623_v22  ;;  %5446 = vmatprep.subr.bf16.mxu0 %v6628_v23  ;;  %v6709_v22 = vld [vmem:[#allocation9 + $0x304] ss:$8 sps:$4 sm:$0xff]   ;;  %v6659_v23 = vld [vmem:[#allocation9 + $0x200] ss:$8 sps:$4 sm:$0xff]  }
 0x33e   : > { %5487 = vmatprep.subr.bf16.mxu1 %v6631_v47  ;;  %v6664_v47 = vld [vmem:[#allocation9 + $0x2f4] ss:$8 sps:$4 sm:$0xff]  }
 0x340   : > { %5447 = vmatpush2.bf16.msra.mxu0 %v6626_v14  ;;  %v6707_v14 = vld [vmem:[#allocation9 + $0x300] ss:$8 sps:$4 sm:$0xff]  }
 0x341   : > { %5488 = vmatpush2.bf16.msra.mxu1 %v6629_v26  ;;  %5448 = vmatprep.subr.bf16.mxu0 %v6634_v39  ;;  %v6712_v26 = vld [vmem:[#allocation9 + $0x3f4] ss:$8 sps:$4 sm:$0xff]   ;;  %v6662_v39 = vld [vmem:[#allocation9 + $0x2f0] ss:$8 sps:$4 sm:$0xff]  }
 0x342   : > { %5489 = vmatprep.subr.bf16.mxu1 %v6637_v27  ;;  %v6667_v27 = vld [vmem:[#allocation9 + $0x2e4] ss:$8 sps:$4 sm:$0xff]  }
 0x344   : > { %5449 = vmatpush2.bf16.msra.mxu0 %v6632_v29  ;;  %v6715_v29 = vld [vmem:[#allocation9 + $0x3e4] ss:$8 sps:$4 sm:$0xff]  }
 0x345   : > { %5490 = vmatpush2.bf16.msra.mxu1 %v6635_v31  ;;  %5500 = vmatprep.subr.bf16.mxu0 %v6640_v32  ;;  %v6670_v31 = vld [vmem:[#allocation9 + $0x2d4] ss:$8 sps:$4 sm:$0xff]   ;;  %v6713_v32 = vld [vmem:[#allocation9 + $0x3e0] ss:$8 sps:$4 sm:$0xff]  }
 0x346   : > { %5541 = vmatprep.subr.bf16.mxu1 %v6688_v35  ;;  %v6668_v35 = vld [vmem:[#allocation9 + $0x2d0] ss:$8 sps:$4 sm:$0xff]  }
 0x347   : > { %v7261_v15 = vpop.f32.mrf.mxu0  ;;  %5451 = vmatmul.mubr.bf16.vlgmr.msra.gmra.mxu0 %v4630_v37  ;;  %v6721_v37 = vld [vmem:[#allocation9 + $0x3c4] ss:$8 sps:$4 sm:$0xff]  }
 0x348   : > { %v7264_v51 = vpop.f32.mrf.mxu1  ;;  %5492 = vmatmul.mubr.bf16.vlgmr.msra.gmra.mxu1 %v4632_v46  ;;  %5501 = vmatpush1.bf16.msra.mxu0 %v6638_v36  ;;  %v6716_v36 = vld [vmem:[#allocation9 + $0x3d0] ss:$8 sps:$4 sm:$0xff]   ;;  %v6719_v46 = vld [vmem:[#allocation9 + $0x3c0] ss:$8 sps:$4 sm:$0xff]  }
 0x349   : > { %v4412_v50 = vpop.f32.mrf.mxu0  ;;  %5502 = vmatprep.subr.bf16.mxu0 %v6643_v53  ;;  %5542 = vmatpush1.bf16.msra.mxu1 %v6686_v40  ;;  %v6671_v53 = vld [vmem:[#allocation9 + $0x2c0] ss:$8 sps:$4 sm:$0xff]   ;;  %v6676_v40 = vld [vmem:[#allocation9 + $0x2b4] ss:$8 sps:$4 sm:$0xff]  }
 0x34a   : > { %v4413_v5 = vadd.f32 %v4412_v50, %v4372_v33  ;;  %v4453_v41 = vpop.f32.mrf.mxu1  ;;  %5543 = vmatprep.subr.bf16.mxu1 %v6691_v43  ;;  %v6724_v43 = vld [vmem:[#allocation9 + $0x3b4] ss:$8 sps:$4 sm:$0xff]   ;;  %v6674_v33 = vld [vmem:[#allocation9 + $0x2b0] ss:$8 sps:$4 sm:$0xff]  }
 0x34b   : > { %v4414_v55 = vpop.f32.mrf.mxu0  ;;  %v6722_v50 = vld [vmem:[#allocation9 + $0x3b0] ss:$8 sps:$4 sm:$0xff]  }
 0x34c   : > { %v4454_v34 = vadd.f32 %v4453_v41, %v4413_v5  ;;  %v4455_v58 = vpop.f32.mrf.mxu1  ;;  %5503 = vmatpush1.bf16.msra.mxu0 %v6641_v61  ;;  %v6679_v61 = vld [vmem:[#allocation9 + $0x2a4] ss:$8 sps:$4 sm:$0xff]   ;;  %v4411_v5 = vadd.f32 %v7261_v15, %v7251_v24  ;;  %v6682_v41 = vld [vmem:[#allocation9 + $0x294] ss:$8 sps:$4 sm:$0xff]   ;;  %v6731_v24 = vld [vmem:[#allocation9 + $0x380] ss:$8 sps:$4 sm:$0xff]  }
 0x34d   : > { %v4415_v25 = vpop.f32.mrf.mxu0  ;;  %5504 = vmatprep.subr.bf16.mxu0 %v6646_v52  ;;  %5544 = vmatpush1.bf16.msra.mxu1 %v6689_v17  ;;  %v6727_v52 = vld [vmem:[#allocation9 + $0x3a4] ss:$8 sps:$4 sm:$0xff]   ;;  %v6677_v17 = vld [vmem:[#allocation9 + $0x2a0] ss:$8 sps:$4 sm:$0xff]   ;;  %v6730_v55 = vld [vmem:[#allocation9 + $0x394] ss:$8 sps:$4 sm:$0xff]  }
 0x34e   : > { %v4627_v1 = vmax.f32 %v4454_v34, 0.0  ;;  %v4456_v38 = vpop.f32.mrf.mxu1  ;;  %5545 = vmatprep.subr.bf16.mxu1 %v6694_v54  ;;  %v6725_v54 = vld [vmem:[#allocation9 + $0x3a0] ss:$8 sps:$4 sm:$0xff]   ;;  %v6680_v34 = vld [vmem:[#allocation9 + $0x290] ss:$8 sps:$4 sm:$0xff]   ;;  %v4452_v58 = vadd.f32 %v7264_v51, %v4411_v5 }
 0x34f   : > { %v6728_v25 = vld [vmem:[#allocation9 + $0x390] ss:$8 sps:$4 sm:$0xff]  }
 0x350   : > { %v4635_v42 = vpack.c.bf16 %v4627_v1, %v4627_v1  ;;  %5505 = vmatpush1.bf16.msra.mxu0 %v6644_v60  ;;  %v6685_v60 = vld [vmem:[#allocation9 + $0x284] ss:$8 sps:$4 sm:$0xff]   ;;  %v4626_v1 = vmax.f32 %v4452_v58, 0.0 }
 0x351   : > { %5506 = vmatprep.subr.bf16.mxu0 %v6649_v62  ;;  %5546 = vmatpush1.bf16.msra.mxu1 %v6692_v63  ;;  %v6733_v62 = vld [vmem:[#allocation9 + $0x384] ss:$8 sps:$4 sm:$0xff]   ;;  %v6683_v63 = vld [vmem:[#allocation9 + $0x280] ss:$8 sps:$4 sm:$0xff]  }
 0x352   : > { %5532 = vmatprep.mubr.bf16.mxu0 %v4635_v42  ;;  %5547 = vmatprep.subr.bf16.mxu1 %v6697_v48  ;;  %v4634_v15 = vpack.c.bf16 %v4626_v1, %v4626_v1 }
 0x354   : > { %5507 = vmatpush1.bf16.msra.mxu0 %v6647_v4 }
 0x355   : > { %5508 = vmatprep.subr.bf16.mxu0 %v6652_v6  ;;  %5548 = vmatpush1.bf16.msra.mxu1 %v6695_v2 }
 0x356   : > { %5549 = vmatprep.subr.bf16.mxu1 %v6700_v49 }
 0x358   : > { %5509 = vmatpush1.bf16.msra.mxu0 %v6650_v45  ;;  %v1393_v45 = vrot.slane %v7242_v7, %v494_v59 }
 0x359   : > { %5510 = vmatprep.subr.bf16.mxu0 %v6655_v9  ;;  %5550 = vmatpush1.bf16.msra.mxu1 %v6698_v44  ;;  %v1397_v9 = vrot.slane %v7242_v7, %v498_v56  ;;  %v4766_v7 = vld [vmem:[#allocation10] sm:$0x3] }
 0x35a   : > { %5551 = vmatprep.subr.bf16.mxu1 %v6703_v0 }
 0x35c   : > { %5511 = vmatpush1.bf16.msra.mxu0 %v6653_v10 }
 0x35d   : > { %5512 = vmatprep.subr.bf16.mxu0 %v6658_v11  ;;  %5552 = vmatpush1.bf16.msra.mxu1 %v6701_v18 }
 0x35e   : > { %5553 = vmatprep.subr.bf16.mxu1 %v6706_v57 }
 0x360   : > { %5513 = vmatpush1.bf16.msra.mxu0 %v6656_v19 }
 0x361   : > { %5514 = vmatprep.subr.bf16.mxu0 %v6661_v20  ;;  %5554 = vmatpush1.bf16.msra.mxu1 %v6704_v21 }
 0x362   : > { %5555 = vmatprep.subr.bf16.mxu1 %v6709_v22 }
 0x364   : > { %5515 = vmatpush1.bf16.msra.mxu0 %v6659_v23 }
 0x365   : > { %5516 = vmatprep.subr.bf16.mxu0 %v6664_v47  ;;  %5556 = vmatpush1.bf16.msra.mxu1 %v6707_v14 }
 0x366   : > { %5557 = vmatprep.subr.bf16.mxu1 %v6712_v26 }
 0x368   : > { %5517 = vmatpush2.bf16.msra.mxu0 %v6662_v39 }
 0x369   : > { %5518 = vmatprep.subr.bf16.mxu0 %v6667_v27  ;;  %5558 = vmatpush2.bf16.msra.mxu1 %v6710_v28 }
 0x36a   : > { %5559 = vmatprep.subr.bf16.mxu1 %v6715_v29  ;;  %v4771_v29 = vrot.slane %v4766_v7, %v7118_v13 }
 0x36c   : > { %5519 = vmatpush2.bf16.msra.mxu0 %v6665_v30  ;;  %v4775_v30 = vrot.slane %v4766_v7, %v7124_v16 }
 0x36d   : > { %5520 = vmatprep.subr.bf16.mxu0 %v6670_v31  ;;  %5560 = vmatpush2.bf16.msra.mxu1 %v6713_v32 }
 0x36e   : > { %5561 = vmatprep.subr.bf16.mxu1 %v6718_v8 }
 0x370   : > { %5521 = vmatpush2.bf16.msra.mxu0 %v6668_v35 }
 0x371   : > { %5522 = vmatprep.subr.bf16.mxu0 %v6673_v3  ;;  %5562 = vmatpush2.bf16.msra.mxu1 %v6716_v36 }
 0x372   : > { %5563 = vmatprep.subr.bf16.mxu1 %v6721_v37 }
 0x374   : > { %5523 = vmatpush2.bf16.msra.mxu0 %v6671_v53 }
 0x375   : > { %5524 = vmatprep.subr.bf16.mxu0 %v6676_v40  ;;  %5564 = vmatpush2.bf16.msra.mxu1 %v6719_v46 }
 0x376   : > { %5565 = vmatprep.subr.bf16.mxu1 %v6724_v43 }
 0x378   : > { %5525 = vmatpush2.bf16.msra.mxu0 %v6674_v33 }
 0x379   : > { %5526 = vmatprep.subr.bf16.mxu0 %v6679_v61  ;;  %5566 = vmatpush2.bf16.msra.mxu1 %v6722_v50 }
 0x37a   : > { %5567 = vmatprep.subr.bf16.mxu1 %v6727_v52 }
 0x37c   : > { %5527 = vmatpush2.bf16.msra.mxu0 %v6677_v17 }
 0x37d   : > { %5528 = vmatprep.subr.bf16.mxu0 %v6682_v41  ;;  %5568 = vmatpush2.bf16.msra.mxu1 %v6725_v54 }
 0x37e   : > { %5569 = vmatprep.subr.bf16.mxu1 %v6730_v55 }
 0x380   : > { %5529 = vmatpush2.bf16.msra.mxu0 %v6680_v34 }
 0x381   : > { %5530 = vmatprep.subr.bf16.mxu0 %v6685_v60  ;;  %5570 = vmatpush2.bf16.msra.mxu1 %v6728_v25 }
 0x382   : > { %5571 = vmatprep.subr.bf16.mxu1 %v6733_v62 }
 0x384   : > { %5531 = vmatpush2.bf16.msra.mxu0 %v6683_v63 }
 0x385   : > { %5572 = vmatpush2.bf16.msra.mxu1 %v6731_v24 }
 0x387   : > { %v4492_v38 = vpop.f32.mrf.mxu0  ;;  %5533 = vmatmul.mubr.bf16.vlgmr.msra.gmra.mxu0 %v4634_v15 }
 0x388   : > { %v4533_v48 = vpop.f32.mrf.mxu1  ;;  %v4493_v44 = vadd.f32 %v4492_v38, %v1393_v45 }
 0x389   : > { %v4494_v51 = vpop.f32.mrf.mxu0 }
 0x38a   : > { %v4535_v42 = vpop.f32.mrf.mxu1  ;;  %v4495_v0 = vadd.f32 %v4494_v51, %v1397_v9  ;;  %v4534_v10 = vadd.f32 %v4533_v48, %v4493_v44 }
 0x38b   : > { %v4496_v4 = vpop.f32.mrf.mxu0 }
 0x38c   : > { %v4537_v6 = vpop.f32.mrf.mxu1  ;;  %v4536_v18 = vadd.f32 %v4535_v42, %v4495_v0 }
 0x38d   : > { %v4497_v2 = vpop.f32.mrf.mxu0 }
 0x38e   : > { %v4538_v49 = vpop.f32.mrf.mxu1 }
 0x3c7   : > { %v4574_v11 = vpop.f32.mrf.mxu0 }
 0x3c8   : > { %v4575_v57 = vadd.f32 %v4574_v11, %v4534_v10  ;;  %v4615_v19 = vpop.f32.mrf.mxu1 }
 0x3c9   : > { %v4576_v20 = vpop.f32.mrf.mxu0 }
 0x3ca   : > { %v4616_v21 = vadd.f32 %v4615_v19, %v4575_v57  ;;  %v4577_v22 = vadd.f32 %v4576_v20, %v4536_v18  ;;  %v4617_v23 = vpop.f32.mrf.mxu1 }
 0x3cb   : > { %v4578_v47 = vpop.f32.mrf.mxu0 }
 0x3cc   : > { %v4618_v14 = vadd.f32 %v4617_v23, %v4577_v22  ;;  %v4619_v26 = vpop.f32.mrf.mxu1  ;;  %v4628_v39 = vmax.f32 %v4616_v21, 0.0 }
 0x3cd   : > { %v4579_v59 = vpop.f32.mrf.mxu0 }
 0x3ce   : > { %v4629_v27 = vmax.f32 %v4618_v14, 0.0  ;;  %v4620_v12 = vpop.f32.mrf.mxu1  ;;  %v4636_v56 = vpack.c.bf16 %v4628_v39, %v4628_v39 }
 0x3d0   : > { %v4637_v28 = vpack.c.bf16 %v4629_v27, %v4629_v27 }
 0x3d2   : > { %5573 = vmatprep.mubr.bf16.mxu1 %v4637_v28 }
 0x3d3   : > { %5574 = vmatmul.mubr.bf16.vlgmr.msra.gmra.mxu1 %v4636_v56 }
 0x407   : > { %v5452_v31 = vpop.f32.mrf.mxu0 }
 0x408   : > { %v5453_v32 = vadd.f32 %v5452_v31, %v4771_v29  ;;  %v5493_v8 = vpop.f32.mrf.mxu1 }
 0x409   : > { %v5454_v35 = vpop.f32.mrf.mxu0 }
 0x40a   : > { %v5494_v3 = vadd.f32 %v5493_v8, %v5453_v32  ;;  %v5455_v36 = vadd.f32 %v5454_v35, %v4775_v30  ;;  %v5495_v37 = vpop.f32.mrf.mxu1 }
 0x40b   : > { %v5456_v53 = vpop.f32.mrf.mxu0 }
 0x40c   : > { %v5496_v40 = vadd.f32 %v5495_v37, %v5455_v36  ;;  %v5497_v46 = vpop.f32.mrf.mxu1 }
 0x40d   : > { %v5457_v43 = vpop.f32.mrf.mxu0 }
 0x40e   : > { %v5498_v33 = vpop.f32.mrf.mxu1 }
 0x447   : > { %v5534_v61 = vpop.f32.mrf.mxu0 }
 0x448   : > { %v5535_v50 = vadd.f32 %v5534_v61, %v5494_v3 }
 0x449   : > { %v5536_v52 = vpop.f32.mrf.mxu0 }
 0x44a   : > { %v5537_v13 = vadd.f32 %v5536_v52, %v5496_v40 }
 0x44b   : > { %v5538_v17 = vpop.f32.mrf.mxu0 }
 0x44d   : > { %v5539_v16 = vpop.f32.mrf.mxu0 }
 0x493   : > { %v5575_v5 = vpop.f32.mrf.mxu1 }
 0x494   : > { %v5576_v41 = vadd.f32 %v5575_v5, %v5535_v50 }
 0x495   : > { %v5577_v54 = vpop.f32.mrf.mxu1 }
 0x496   : > { %5582 = vst [vmem:[%s422_s16] sm:$0xff] %v5576_v41  ;;  %v5578_v55 = vadd.f32 %v5577_v54, %v5537_v13  ;;  %5584 = vmax.xlane.f32.xlu0 %v5576_v41 }
 0x497   : > { %v5579_v34 = vpop.f32.mrf.mxu1 }
 0x498   : > { %5583 = vst [vmem:[%s430_s17] sm:$0xff] %v5578_v55 }
 0x499   : > { %v5580_v58 = vpop.f32.mrf.mxu1 }
 0x51f   : > { %v5585_v60 = vpop.xlane.xlu0 %5584 }
 0x520   : > { %v5586_v25 = vsub.f32 %v5576_v41, %v5585_v60 }
 0x522   : > { %v5587_v62 = vmul.f32 1.442695, %v5586_v25 }
 0x524   : > { %6734 = vpow2.f32 %v5587_v62 }
 0x531   : > { %v6735_v63 = vpop.eup %6734 }
 0x532   : > { %5589 = vadd.xlane.f32.xlu0 %v6735_v63 }
 0x5bb   : > { %v5590_v1 = vpop.xlane.xlu0 %5589 }
 0x5bc   : > { %6736 = vrcp.f32 %v5590_v1 }
 0x5c9   : > { %v6737_v24 = vpop.eup %6736 }
 0x5ca   : > { %v5592_v15 = vmul.f32 %v6737_v24, %v6735_v63 }
 0x5cc   : > { %5593 = vst [vmem:[%s426_s25] sm:$0xff] %v5592_v15 }
 0x5cd PF: > { %s24_s30 = sadd.s32 1, %s6917_s30  }
 0x5ce   : > { %p21_p9 = scmp.ge.s32.totalorder %s24_s30, 4  }
 0x5d0   :  { %23 = sbr.rel (!%p21_p9) target bundleno = 4 (0x4), region = 127 }
 0x5d5   :  { %5641 = vsyncpa [#allocation3], 1 }
 0x5d6   :  { %5643 = vsyncpa [#allocation3 + $0x1], 1 }
 0x5d7   :  { %5644 = vsyncpa [#allocation5], 1 }
 0x5d8   :  { %5645 = vsyncpa [#allocation8], 1 }
 0x5d9   :  { %5646 = vsyncpa [#allocation11], 1 }

</bundles_post_ra>
